<compile_context>
chip_gen: v7x
topology: tpu7x:2x2x1
jax: 0.10.0
libtpu: 0.0.40
codegen_flags: <defaults>
</compile_context>

<pallas_src>
import functools

import jax
import jax.numpy as jnp
import numpy as np
from jax.experimental import pallas as pl
from jax.experimental.pallas import tpu as pltpu


# ---------------------------------------------------------------------------
# helpers
# ---------------------------------------------------------------------------
def _pick_time_chunk(s):
    # biggest timestep chunk we fully unroll inside the BiLSTM body
    for tc in (32, 16, 8):
        if s >= tc:
            return tc
    return 8  # very short sequences get padded up to one 8-step chunk


def _largest_divisor(n, cap):
    d = min(n, cap)
    while n % d:
        d -= 1
    return d


def _pick_label_tile(labels, max_tile=4096):
    # lane-dense label tiles (multiple of 128) for realistic MeSH label counts;
    # small L is kept untiled.  (On v7x halve max_tile to respect 64 MiB VMEM.)
    if labels <= max_tile:
        return labels
    for lt in range(max_tile, 127, -128):
        if labels % lt == 0:
            return lt
    return labels  # no aligned divisor: fall back to the full label dim


# ---------------------------------------------------------------------------
# Kernel 1: bidirectional LSTM encoder (packed-sequence semantics via masking)
# grid = (direction, time-chunk); hidden/cell state carried in VMEM scratch.
# ---------------------------------------------------------------------------
def _bilstm_kernel(x_ref, m_ref, wih_ref, whh_ref, b_ref, out_ref, h_sc, c_sc,
                   *, hidden, t_chunk):
    @pl.when(pl.program_id(1) == 0)     # reset recurrent state per direction
    def _():
        h_sc[...] = jnp.zeros_like(h_sc)
        c_sc[...] = jnp.zeros_like(c_sc)

    wih = wih_ref[0]                    # (E, 4H)
    whh = whh_ref[0]                    # (H, 4H)
    bias = b_ref[0]                     # (1, 4H)

    # Input projection for the whole chunk as ONE MXU matmul (it does not
    # depend on the recurrent state), instead of t_chunk tiny per-step matmuls.
    x_all = x_ref[...]                  # (t_chunk, B, E)
    tc, bsz, e = x_all.shape
    xg = (jnp.dot(x_all.reshape(tc * bsz, e), wih,
                  preferred_element_type=jnp.float32) + bias
          ).reshape(tc, bsz, 4 * hidden)          # (t_chunk, B, 4H)
    m_all = m_ref[...]                  # (t_chunk, B, 1) float {0,1}; 0 => pad

    def cell(t, h, c):
        # only h @ W_hh remains on the serial recurrence path
        gates = xg[t] + jnp.dot(h, whh, preferred_element_type=jnp.float32)
        # NOTE: with H < 128 these gate slices are sub-lane extracts; real
        # configs should use H that is a multiple of 128 for full-vreg gates.
        i_g = jax.nn.sigmoid(gates[:, 0 * hidden:1 * hidden])
        f_g = jax.nn.sigmoid(gates[:, 1 * hidden:2 * hidden])
        g_g = jnp.tanh(gates[:, 2 * hidden:3 * hidden])
        o_g = jax.nn.sigmoid(gates[:, 3 * hidden:4 * hidden])
        c_new = f_g * c + i_g * g_g
        h_new = o_g * jnp.tanh(c_new)
        keep = m_all[t] > 0.0
        # pack_padded_sequence semantics: freeze state / zero output on pads
        out_ref[0, t] = jnp.where(keep, h_new, 0.0)
        return jnp.where(keep, h_new, h), jnp.where(keep, c_new, c)

    def run(order):
        h, c = h_sc[...], c_sc[...]
        for t in order:                 # static indices -> static loads/stores
            h, c = cell(t, h, c)
        h_sc[...] = h
        c_sc[...] = c

    @pl.when(pl.program_id(0) == 0)     # forward: walk chunk left -> right
    def _():
        run(range(t_chunk))

    @pl.when(pl.program_id(0) == 1)     # backward: walk chunk right -> left
    def _():
        run(range(t_chunk - 1, -1, -1))


def bilstm(x_tm, m_tm, wih, whh, bias, *, t_chunk):
    S_pad, B, E = x_tm.shape
    H = whh.shape[1]
    nc = S_pad // t_chunk

    def chunk_idx(d, c):                # backward direction consumes chunks
        return jnp.where(d == 0, c, nc - 1 - c)   # in reverse order

    out = pl.pallas_call(
        functools.partial(_bilstm_kernel, hidden=H, t_chunk=t_chunk),
        out_shape=jax.ShapeDtypeStruct((2, S_pad, B, H), jnp.float32),
        grid_spec=pltpu.PrefetchScalarGridSpec(
            num_scalar_prefetch=0,
            grid=(2, nc),
            in_specs=[
                pl.BlockSpec((t_chunk, B, E),
                             lambda d, c: (chunk_idx(d, c), 0, 0)),
                pl.BlockSpec((t_chunk, B, 1),
                             lambda d, c: (chunk_idx(d, c), 0, 0)),
                pl.BlockSpec((1, E, 4 * H), lambda d, c: (d, 0, 0)),
                pl.BlockSpec((1, H, 4 * H), lambda d, c: (d, 0, 0)),
                pl.BlockSpec((1, 1, 4 * H), lambda d, c: (d, 0, 0)),
            ],
            out_specs=pl.BlockSpec((1, t_chunk, B, H),
                                   lambda d, c: (d, chunk_idx(d, c), 0, 0)),
            scratch_shapes=[pltpu.VMEM((B, H), jnp.float32),
                            pltpu.VMEM((B, H), jnp.float32)],
        ),
        compiler_params=pltpu.CompilerParams(
            dimension_semantics=("parallel", "arbitrary")),
    )(x_tm, m_tm, wih, whh, bias)
    return out   # (2, S_pad, B, H): [direction, time, batch, hidden]


# ---------------------------------------------------------------------------
# Kernel 2: MeSH probes (masked attention pooling), B_TILE sequences per step
# fully vectorized over the batch tile (no per-sequence Python loop)
# ---------------------------------------------------------------------------
def _probe_kernel(x_ref, m_ref, waf_ref, wab_ref, ctxf_ref, ctxb_ref):
    x_f = x_ref[0]                      # (b_tile, S, H) forward features
    x_b = x_ref[1]                      # (b_tile, S, H) backward features
    m = m_ref[...]                      # (b_tile, S, 1)
    waf = waf_ref[...]                  # (H, P) attention weights, fwd half
    wab = wab_ref[...]                  # (H, P) attention weights, bwd half
    bt, s, h = x_f.shape
    p = waf.shape[1]

    # one fused score matmul over the whole batch tile
    scores = (jnp.dot(x_f.reshape(bt * s, h), waf,
                      preferred_element_type=jnp.float32)
              + jnp.dot(x_b.reshape(bt * s, h), wab,
                        preferred_element_type=jnp.float32)
              ).reshape(bt, s, p)                           # (b_tile, S, P)

    # masked softmax over the sequence axis; the finite fill keeps a fully
    # padded sequence NaN-free (uniform weights over all-zero vectors)
    scores = jnp.where(m > 0.0, scores, -1e30)
    scores = scores - jnp.max(scores, axis=1, keepdims=True)
    e = jnp.exp(scores)
    attn = e / jnp.sum(e, axis=1, keepdims=True)            # (b_tile, S, P)

    pool = (((1,), (1,)), ((0,), (0,)))                     # batched, contract S
    ctxf_ref[...] = jax.lax.dot_general(attn, x_f, pool,
                                        preferred_element_type=jnp.float32)
    ctxb_ref[...] = jax.lax.dot_general(attn, x_b, pool,
                                        preferred_element_type=jnp.float32)


def mesh_probes(birnn_bm, mask_bm, waf, wab, *, b_tile):
    _, B, S_pad, H = birnn_bm.shape
    P = waf.shape[1]
    nb = B // b_tile
    ctx_f, ctx_b = pl.pallas_call(
        _probe_kernel,
        out_shape=(jax.ShapeDtypeStruct((B, P, H), jnp.float32),
                   jax.ShapeDtypeStruct((B, P, H), jnp.float32)),
        grid_spec=pltpu.PrefetchScalarGridSpec(
            num_scalar_prefetch=0,
            grid=(nb,),
            in_specs=[
                pl.BlockSpec((2, b_tile, S_pad, H), lambda b: (0, b, 0, 0)),
                pl.BlockSpec((b_tile, S_pad, 1), lambda b: (b, 0, 0)),
                pl.BlockSpec((H, P), lambda b: (0, 0)),
                pl.BlockSpec((H, P), lambda b: (0, 0)),
            ],
            out_specs=(pl.BlockSpec((b_tile, P, H), lambda b: (b, 0, 0)),
                       pl.BlockSpec((b_tile, P, H), lambda b: (b, 0, 0))),
        ),
        compiler_params=pltpu.CompilerParams(
            dimension_semantics=("parallel",)),
    )(birnn_bm, mask_bm, waf, wab)
    return ctx_f, ctx_b                 # each (B, P, H)


# ---------------------------------------------------------------------------
# Kernel 3: PlainC classifier, batched over sequences and tiled over labels
# ---------------------------------------------------------------------------
def _classifier_kernel(cf_ref, cb_ref, wcf_ref, wcb_ref, bc_ref, out_ref):
    out_ref[...] = (jnp.dot(cf_ref[...], wcf_ref[...],
                            preferred_element_type=jnp.float32)
                    + jnp.dot(cb_ref[...], wcb_ref[...],
                              preferred_element_type=jnp.float32)
                    + bc_ref[...])


def plain_classifier(ctx_f, ctx_b, wcf, wcb, bc, *, b_tile, l_tile):
    B = ctx_f.shape[0]
    K, L = wcf.shape                    # K = n_probes * hidden
    cf = ctx_f.reshape(B, K)            # (B, P, H) -> (B, P*H): contiguous, free
    cb = ctx_b.reshape(B, K)
    nb, nl = B // b_tile, L // l_tile
    return pl.pallas_call(
        _classifier_kernel,
        out_shape=jax.ShapeDtypeStruct((B, L), jnp.float32),
        grid_spec=pltpu.PrefetchScalarGridSpec(
            num_scalar_prefetch=0,
            grid=(nb, nl),
            in_specs=[
                pl.BlockSpec((b_tile, K), lambda b, l: (b, 0)),   # resident
                pl.BlockSpec((b_tile, K), lambda b, l: (b, 0)),   # across l
                pl.BlockSpec((K, l_tile), lambda b, l: (0, l)),
                pl.BlockSpec((K, l_tile), lambda b, l: (0, l)),
                pl.BlockSpec((1, l_tile), lambda b, l: (0, l)),
            ],
            out_specs=pl.BlockSpec((b_tile, l_tile), lambda b, l: (b, l)),
        ),
        compiler_params=pltpu.CompilerParams(
            dimension_semantics=("parallel", "parallel")),
    )(cf, cb, wcf, wcb, bc)


# ---------------------------------------------------------------------------
# Parameters (deterministic synthetic init mimicking the module's __init__)
# ---------------------------------------------------------------------------
def init_params(key, vocab, E, H, P, L):
    ks = jax.random.split(key, 7)

    def uni(k, shape, bound):
        return jax.random.uniform(k, shape, jnp.float32, -bound, bound)

    emb = jax.random.normal(ks[0], (vocab, E), jnp.float32) * 0.1
    emb = emb.at[0].set(0.0)                        # padding_idx = 0

    lstm_bound = 1.0 / np.sqrt(H)                   # torch nn.LSTM default init
    wih = uni(ks[1], (2, E, 4 * H), lstm_bound)     # per direction, (E, 4H)
    whh = uni(ks[2], (2, H, 4 * H), lstm_bound)     # per direction, (H, 4H)
    bias = uni(ks[3], (2, 1, 4 * H), lstm_bound)    # b_ih + b_hh merged
    # NOTE: when loading real torch.nn.LSTM weights, transpose (4H, E) -> (E, 4H)
    # and actually sum b_ih + b_hh into this merged bias.

    H2 = 2 * H
    wa = uni(ks[4], (H2, P), np.sqrt(6.0 / (H2 + P)))            # xavier, W^T
    waf, wab = wa[:H], wa[H:]                                    # fwd / bwd halves
    wc = uni(ks[5], (L, P * H2), np.sqrt(6.0 / (P * H2 + L)))    # xavier, torch layout
    wc4 = wc.reshape(L, P, 2, H)                                 # (L, probe, dir, H)
    wcf = jnp.transpose(wc4[:, :, 0, :], (1, 2, 0)).reshape(P * H, L)
    wcb = jnp.transpose(wc4[:, :, 1, :], (1, 2, 0)).reshape(P * H, L)
    bc = uni(ks[6], (1, L), 1.0 / np.sqrt(P * H2))
    return dict(emb=emb, wih=wih, whh=whh, bias=bias,
                waf=waf, wab=wab, wcf=wcf, wcb=wcb, bc=bc)


# ---------------------------------------------------------------------------
# Forward pass
# ---------------------------------------------------------------------------
def meshprobenet_forward(tokens, params):
    B, S = tokens.shape
    H = params["whh"].shape[1]
    L = params["bc"].shape[1]

    t_chunk = _pick_time_chunk(S)
    s_pad = (S + t_chunk - 1) // t_chunk * t_chunk
    if s_pad != S:
        tokens = jnp.pad(tokens, ((0, 0), (0, s_pad - S)))  # pad with padding_idx

    # Embedding lookup (eval mode => dropout is identity), produced time-major
    # directly so the BiLSTM needs no large input transpose.
    # TODO(synk): the data-dependent embedding gather has no clean static Pallas
    # form and stays in plain-JAX glue.
    tokens_tm = tokens.T                                     # (S_pad, B)
    x_tm = params["emb"][tokens_tm].astype(jnp.float32)      # (S_pad, B, E)
    m_tm = (tokens_tm != 0)[:, :, None].astype(jnp.float32)  # (S_pad, B, 1)

    birnn = bilstm(x_tm, m_tm, params["wih"], params["whh"], params["bias"],
                   t_chunk=t_chunk)                          # (2, S_pad, B, H)

    # One small transpose to batch-major so the probe kernel can slice whole
    # per-sequence (S, H) slabs off leading dims.
    # TODO(synk): with H % 128 == 0 the BiLSTM could store batch-major directly
    # and skip this HBM roundtrip; not satisfied at this demo size.
    birnn_bm = jnp.transpose(birnn, (0, 2, 1, 3))            # (2, B, S_pad, H)
    mask_bm = (tokens != 0)[:, :, None].astype(jnp.float32)  # (B, S_pad, 1)

    probe_bt = _largest_divisor(B, 8)
    ctx_f, ctx_b = mesh_probes(birnn_bm, mask_bm, params["waf"], params["wab"],
                               b_tile=probe_bt)

    cls_bt = 8 if B % 8 == 0 else B                          # 8-sublane aligned
    l_tile = _pick_label_tile(L)
    logits = plain_classifier(ctx_f, ctx_b, params["wcf"], params["wcb"],
                              params["bc"], b_tile=cls_bt, l_tile=l_tile)
    return logits


# ---------------------------------------------------------------------------
# Pure-JAX reference for verification
# ---------------------------------------------------------------------------
def reference_forward(tokens, params):
    mask = tokens != 0
    mf = mask.astype(jnp.float32)
    x = params["emb"][tokens]
    B, S, E = x.shape
    H = params["whh"].shape[1]

    def run_dir(d, reverse):
        wih, whh, b = params["wih"][d], params["whh"][d], params["bias"][d][0]

        def step(carry, inp):
            h, c = carry
            xt, mt = inp
            gates = xt @ wih + h @ whh + b
            i = jax.nn.sigmoid(gates[:, :H])
            f = jax.nn.sigmoid(gates[:, H:2 * H])
            g = jnp.tanh(gates[:, 2 * H:3 * H])
            o = jax.nn.sigmoid(gates[:, 3 * H:4 * H])
            c_new = f * c + i * g
            h_new = o * jnp.tanh(c_new)
            m = mt[:, None]
            return (m * h_new + (1 - m) * h, m * c_new + (1 - m) * c), m * h_new

        init = (jnp.zeros((B, H), jnp.float32), jnp.zeros((B, H), jnp.float32))
        xs = (jnp.transpose(x, (1, 0, 2)), jnp.transpose(mf, (1, 0)))
        _, outs = jax.lax.scan(step, init, xs, reverse=reverse)
        return jnp.transpose(outs, (1, 0, 2))

    birnn = jnp.concatenate([run_dir(0, False), run_dir(1, True)], axis=-1)
    wa = jnp.concatenate([params["waf"], params["wab"]], axis=0)   # (2H, P)
    P = wa.shape[1]
    scores = jnp.einsum('bsd,dp->bps', birnn, wa)
    scores = jnp.where(mask[:, None, :], scores, -jnp.inf)
    attn = jax.nn.softmax(scores, axis=-1)
    ctx = jnp.einsum('bps,bsd->bpd', attn, birnn)                  # (B, P, 2H)
    ctx_f = ctx[:, :, :H].reshape(B, P * H)
    ctx_b = ctx[:, :, H:].reshape(B, P * H)
    return ctx_f @ params["wcf"] + ctx_b @ params["wcb"] + params["bc"]


if __name__ == "__main__":
    B, S = 2, 8
    vocab, E, H, P, L = 50, 32, 32, 4, 16   # hidden_size=32 -> birnn dim 64

    key = jax.random.PRNGKey(0)
    pkey, tkey = jax.random.split(key)
    params = init_params(pkey, vocab, E, H, P, L)

    tokens = jax.random.randint(tkey, (B, S), 1, vocab, dtype=jnp.int32)
    tokens = tokens.at[1, 5:].set(0)        # trailing padding in sequence 1

    logits = jax.jit(meshprobenet_forward)(tokens, params)
    jax.block_until_ready(logits)

    ref = reference_forward(tokens, params)
    np.testing.assert_allclose(np.asarray(logits), np.asarray(ref),
                               rtol=1e-4, atol=1e-4)
    print("KERNEL_OK")
</pallas_src>

<mosaic_0001>
module attributes {stable_mosaic.version = 11 : i64} {
  func.func @_probe_kernel(%arg0: i32, %arg1: memref<2x2x8x32xf32, #tpu.memory_space<vmem>>, %arg2: memref<2x8x1xf32, #tpu.memory_space<vmem>>, %arg3: memref<32x4xf32, #tpu.memory_space<vmem>>, %arg4: memref<32x4xf32, #tpu.memory_space<vmem>>, %arg5: memref<2x4x32xf32, #tpu.memory_space<vmem>>, %arg6: memref<2x4x32xf32, #tpu.memory_space<vmem>>) attributes {dimension_semantics = [#tpu.dimension_semantics<parallel>], iteration_bounds = array<i64: 1>, scalar_prefetch = 0 : i64, scratch_operands = 0 : i64, tpu.core_type = #tpu.core_type<tc>, window_params = [{transform_indices = @transform_0, window_bounds = array<i64: 2, 2, 8, 32>}, {transform_indices = @transform_1, window_bounds = array<i64: 2, 8, 1>}, {pipeline_mode = #tpu.pipeline_mode<synchronous>, transform_indices = @transform_2, window_bounds = array<i64: 32, 4>}, {pipeline_mode = #tpu.pipeline_mode<synchronous>, transform_indices = @transform_3, window_bounds = array<i64: 32, 4>}, {transform_indices = @transform_4, window_bounds = array<i64: 2, 4, 32>}, {transform_indices = @transform_5, window_bounds = array<i64: 2, 4, 32>}]} {
    %c0 = arith.constant 0 : index
    %c0_0 = arith.constant 0 : index
    %c0_1 = arith.constant 0 : index
    %c0_2 = arith.constant 0 : index
    %0 = vector.load %arg1[%c0, %c0_0, %c0_1, %c0_2] : memref<2x2x8x32xf32, #tpu.memory_space<vmem>>, vector<1x2x8x32xf32>
    %1 = vector.shape_cast %0 : vector<1x2x8x32xf32> to vector<2x8x32xf32>
    %c1 = arith.constant 1 : index
    %c0_3 = arith.constant 0 : index
    %c0_4 = arith.constant 0 : index
    %c0_5 = arith.constant 0 : index
    %2 = vector.load %arg1[%c1, %c0_3, %c0_4, %c0_5] : memref<2x2x8x32xf32, #tpu.memory_space<vmem>>, vector<1x2x8x32xf32>
    %3 = vector.shape_cast %2 : vector<1x2x8x32xf32> to vector<2x8x32xf32>
    %c0_6 = arith.constant 0 : index
    %c0_7 = arith.constant 0 : index
    %c0_8 = arith.constant 0 : index
    %4 = vector.load %arg2[%c0_6, %c0_7, %c0_8] : memref<2x8x1xf32, #tpu.memory_space<vmem>>, vector<2x8x1xf32>
    %c0_9 = arith.constant 0 : index
    %c0_10 = arith.constant 0 : index
    %5 = vector.load %arg3[%c0_9, %c0_10] : memref<32x4xf32, #tpu.memory_space<vmem>>, vector<32x4xf32>
    %c0_11 = arith.constant 0 : index
    %c0_12 = arith.constant 0 : index
    %6 = vector.load %arg4[%c0_11, %c0_12] : memref<32x4xf32, #tpu.memory_space<vmem>>, vector<32x4xf32>
    %7 = vector.shape_cast %1 : vector<2x8x32xf32> to vector<16x32xf32>
    %cst = arith.constant dense<0.000000e+00> : vector<16x4xf32>
    %8 = tpu.matmul %7, %5, %cst {dimension_numbers = #tpu.dot_dimension_numbers<[1], [0], [0], [1], [0, 0, 1, 1], [], []>} : vector<16x32xf32>, vector<32x4xf32>, vector<16x4xf32> -> vector<16x4xf32>
    %9 = vector.shape_cast %3 : vector<2x8x32xf32> to vector<16x32xf32>
    %cst_13 = arith.constant dense<0.000000e+00> : vector<16x4xf32>
    %10 = tpu.matmul %9, %6, %cst_13 {dimension_numbers = #tpu.dot_dimension_numbers<[1], [0], [0], [1], [0, 0, 1, 1], [], []>} : vector<16x32xf32>, vector<32x4xf32>, vector<16x4xf32> -> vector<16x4xf32>
    %11 = arith.addf %8, %10 : vector<16x4xf32>
    %12 = vector.shape_cast %11 : vector<16x4xf32> to vector<2x8x4xf32>
    %cst_14 = arith.constant 0.000000e+00 : f32
    %13 = vector.broadcast %cst_14 : f32 to vector<2x8x1xf32>
    %14 = arith.cmpf ogt, %4, %13 : vector<2x8x1xf32>
    %cst_15 = arith.constant -1.000000e+30 : f32
    %15 = vector.shape_cast %14 : vector<2x8x1xi1> to vector<2x8x1xi1>
    %16 = vector.broadcast %15 : vector<2x8x1xi1> to vector<2x8x4xi1>
    %17 = vector.broadcast %cst_15 : f32 to vector<2x8x4xf32>
    %18 = arith.select %16, %12, %17 : vector<2x8x4xi1>, vector<2x8x4xf32>
    %cst_16 = arith.constant dense<0xFF800000> : vector<2x4xf32>
    %19 = vector.multi_reduction <maximumf>, %18, %cst_16 [1] : vector<2x8x4xf32> to vector<2x4xf32>
    %20 = vector.shape_cast %19 : vector<2x4xf32> to vector<2x1x4xf32>
    %21 = vector.broadcast %20 : vector<2x1x4xf32> to vector<2x8x4xf32>
    %22 = arith.subf %18, %21 : vector<2x8x4xf32>
    %23 = math.exp %22 : vector<2x8x4xf32>
    %cst_17 = arith.constant dense<0.000000e+00> : vector<2x4xf32>
    %24 = vector.multi_reduction <add>, %23, %cst_17 [1] : vector<2x8x4xf32> to vector<2x4xf32>
    %25 = vector.shape_cast %24 : vector<2x4xf32> to vector<2x1x4xf32>
    %26 = vector.broadcast %25 : vector<2x1x4xf32> to vector<2x8x4xf32>
    %27 = arith.divf %23, %26 : vector<2x8x4xf32>
    %cst_18 = arith.constant dense<0.000000e+00> : vector<2x4x32xf32>
    %28 = tpu.matmul %27, %1, %cst_18 {dimension_numbers = #tpu.dot_dimension_numbers<[1], [1], [2], [2], [0, 0, 0, 2, 1, 2], [0], [0]>} : vector<2x8x4xf32>, vector<2x8x32xf32>, vector<2x4x32xf32> -> vector<2x4x32xf32>
    %c0_19 = arith.constant 0 : index
    %c0_20 = arith.constant 0 : index
    %c0_21 = arith.constant 0 : index
    %29 = vector.load %arg5[%c0_19, %c0_20, %c0_21] : memref<2x4x32xf32, #tpu.memory_space<vmem>>, vector<2x4x32xf32>
    tpu.vector_store %arg5[%c0_19, %c0_20, %c0_21], %28 {strides = array<i32>} : memref<2x4x32xf32, #tpu.memory_space<vmem>>, vector<2x4x32xf32>,
    %cst_22 = arith.constant dense<0.000000e+00> : vector<2x4x32xf32>
    %30 = tpu.matmul %27, %3, %cst_22 {dimension_numbers = #tpu.dot_dimension_numbers<[1], [1], [2], [2], [0, 0, 0, 2, 1, 2], [0], [0]>} : vector<2x8x4xf32>, vector<2x8x32xf32>, vector<2x4x32xf32> -> vector<2x4x32xf32>
    %c0_23 = arith.constant 0 : index
    %c0_24 = arith.constant 0 : index
    %c0_25 = arith.constant 0 : index
    %31 = vector.load %arg6[%c0_23, %c0_24, %c0_25] : memref<2x4x32xf32, #tpu.memory_space<vmem>>, vector<2x4x32xf32>
    tpu.vector_store %arg6[%c0_23, %c0_24, %c0_25], %30 {strides = array<i32>} : memref<2x4x32xf32, #tpu.memory_space<vmem>>, vector<2x4x32xf32>,
    return
  }
  func.func @transform_0(%arg0: i32) -> (i32, i32, i32, i32) {
    %c0_i32 = arith.constant 0 : i32
    %c0_i32_0 = arith.constant 0 : i32
    %c0_i32_1 = arith.constant 0 : i32
    %c0_i32_2 = arith.constant 0 : i32
    return %c0_i32, %arg0, %c0_i32_0, %c0_i32_1 : i32, i32, i32, i32
  }
  func.func @transform_1(%arg0: i32) -> (i32, i32, i32) {
    %c0_i32 = arith.constant 0 : i32
    %c0_i32_0 = arith.constant 0 : i32
    %c0_i32_1 = arith.constant 0 : i32
    return %arg0, %c0_i32, %c0_i32_0 : i32, i32, i32
  }
  func.func @transform_2(%arg0: i32) -> (i32, i32) {
    %c0_i32 = arith.constant 0 : i32
    %c0_i32_0 = arith.constant 0 : i32
    %c0_i32_1 = arith.constant 0 : i32
    return %c0_i32, %c0_i32_0 : i32, i32
  }
  func.func @transform_3(%arg0: i32) -> (i32, i32) {
    %c0_i32 = arith.constant 0 : i32
    %c0_i32_0 = arith.constant 0 : i32
    %c0_i32_1 = arith.constant 0 : i32
    return %c0_i32, %c0_i32_0 : i32, i32
  }
  func.func @transform_4(%arg0: i32) -> (i32, i32, i32) {
    %c0_i32 = arith.constant 0 : i32
    %c0_i32_0 = arith.constant 0 : i32
    %c0_i32_1 = arith.constant 0 : i32
    return %arg0, %c0_i32, %c0_i32_0 : i32, i32, i32
  }
  func.func @transform_5(%arg0: i32) -> (i32, i32, i32) {
    %c0_i32 = arith.constant 0 : i32
    %c0_i32_0 = arith.constant 0 : i32
    %c0_i32_1 = arith.constant 0 : i32
    return %arg0, %c0_i32, %c0_i32_0 : i32, i32, i32
  }
}

module attributes {stable_mosaic.version = 11 : i64} {
  func.func @_classifier_kernel(%arg0: i32, %arg1: i32, %arg2: memref<2x128xf32, #tpu.memory_space<vmem>>, %arg3: memref<2x128xf32, #tpu.memory_space<vmem>>, %arg4: memref<128x16xf32, #tpu.memory_space<vmem>>, %arg5: memref<128x16xf32, #tpu.memory_space<vmem>>, %arg6: memref<1x16xf32, #tpu.memory_space<vmem>>, %arg7: memref<2x16xf32, #tpu.memory_space<vmem>>) attributes {dimension_semantics = [#tpu.dimension_semantics<parallel>, #tpu.dimension_semantics<parallel>], iteration_bounds = array<i64: 1, 1>, scalar_prefetch = 0 : i64, scratch_operands = 0 : i64, tpu.core_type = #tpu.core_type<tc>, window_params = [{transform_indices = @transform_0, window_bounds = array<i64: 2, 128>}, {transform_indices = @transform_1, window_bounds = array<i64: 2, 128>}, {transform_indices = @transform_2, window_bounds = array<i64: 128, 16>}, {transform_indices = @transform_3, window_bounds = array<i64: 128, 16>}, {transform_indices = @transform_4, window_bounds = array<i64: 1, 16>}, {transform_indices = @transform_5, window_bounds = array<i64: 2, 16>}]} {
    %c0 = arith.constant 0 : index
    %c0_0 = arith.constant 0 : index
    %0 = vector.load %arg2[%c0, %c0_0] : memref<2x128xf32, #tpu.memory_space<vmem>>, vector<2x128xf32>
    %c0_1 = arith.constant 0 : index
    %c0_2 = arith.constant 0 : index
    %1 = vector.load %arg4[%c0_1, %c0_2] : memref<128x16xf32, #tpu.memory_space<vmem>>, vector<128x16xf32>
    %cst = arith.constant dense<0.000000e+00> : vector<2x16xf32>
    %2 = tpu.matmul %0, %1, %cst {dimension_numbers = #tpu.dot_dimension_numbers<[1], [0], [0], [1], [0, 0, 1, 1], [], []>} : vector<2x128xf32>, vector<128x16xf32>, vector<2x16xf32> -> vector<2x16xf32>
    %c0_3 = arith.constant 0 : index
    %c0_4 = arith.constant 0 : index
    %3 = vector.load %arg3[%c0_3, %c0_4] : memref<2x128xf32, #tpu.memory_space<vmem>>, vector<2x128xf32>
    %c0_5 = arith.constant 0 : index
    %c0_6 = arith.constant 0 : index
    %4 = vector.load %arg5[%c0_5, %c0_6] : memref<128x16xf32, #tpu.memory_space<vmem>>, vector<128x16xf32>
    %cst_7 = arith.constant dense<0.000000e+00> : vector<2x16xf32>
    %5 = tpu.matmul %3, %4, %cst_7 {dimension_numbers = #tpu.dot_dimension_numbers<[1], [0], [0], [1], [0, 0, 1, 1], [], []>} : vector<2x128xf32>, vector<128x16xf32>, vector<2x16xf32> -> vector<2x16xf32>
    %6 = arith.addf %2, %5 : vector<2x16xf32>
    %c0_8 = arith.constant 0 : index
    %c0_9 = arith.constant 0 : index
    %7 = vector.load %arg6[%c0_8, %c0_9] : memref<1x16xf32, #tpu.memory_space<vmem>>, vector<1x16xf32>
    %8 = vector.broadcast %7 : vector<1x16xf32> to vector<2x16xf32>
    %9 = arith.addf %6, %8 : vector<2x16xf32>
    %c0_10 = arith.constant 0 : index
    %c0_11 = arith.constant 0 : index
    %10 = vector.load %arg7[%c0_10, %c0_11] : memref<2x16xf32, #tpu.memory_space<vmem>>, vector<2x16xf32>
    tpu.vector_store %arg7[%c0_10, %c0_11], %9 {strides = array<i32>} : memref<2x16xf32, #tpu.memory_space<vmem>>, vector<2x16xf32>,
    return
  }
  func.func @transform_0(%arg0: i32, %arg1: i32) -> (i32, i32) {
    %c0_i32 = arith.constant 0 : i32
    %c0_i32_0 = arith.constant 0 : i32
    return %arg0, %c0_i32 : i32, i32
  }
  func.func @transform_1(%arg0: i32, %arg1: i32) -> (i32, i32) {
    %c0_i32 = arith.constant 0 : i32
    %c0_i32_0 = arith.constant 0 : i32
    return %arg0, %c0_i32 : i32, i32
  }
  func.func @transform_2(%arg0: i32, %arg1: i32) -> (i32, i32) {
    %c0_i32 = arith.constant 0 : i32
    %c0_i32_0 = arith.constant 0 : i32
    return %c0_i32, %arg1 : i32, i32
  }
  func.func @transform_3(%arg0: i32, %arg1: i32) -> (i32, i32) {
    %c0_i32 = arith.constant 0 : i32
    %c0_i32_0 = arith.constant 0 : i32
    return %c0_i32, %arg1 : i32, i32
  }
  func.func @transform_4(%arg0: i32, %arg1: i32) -> (i32, i32) {
    %c0_i32 = arith.constant 0 : i32
    %c0_i32_0 = arith.constant 0 : i32
    return %c0_i32, %arg1 : i32, i32
  }
  func.func @transform_5(%arg0: i32, %arg1: i32) -> (i32, i32) {
    %c0_i32 = arith.constant 0 : i32
    return %arg0, %arg1 : i32, i32
  }
}

module attributes {stable_mosaic.version = 11 : i64} {
  func.func @_bilstm_kernel(%arg0: i32, %arg1: i32, %arg2: memref<8x2x32xf32, #tpu.memory_space<vmem>>, %arg3: memref<8x2x1xf32, #tpu.memory_space<vmem>>, %arg4: memref<1x32x128xf32, #tpu.memory_space<vmem>>, %arg5: memref<1x32x128xf32, #tpu.memory_space<vmem>>, %arg6: memref<1x1x128xf32, #tpu.memory_space<vmem>>, %arg7: memref<1x8x2x32xf32, #tpu.memory_space<vmem>>, %arg8: memref<2x32xf32, #tpu.memory_space<vmem>>, %arg9: memref<2x32xf32, #tpu.memory_space<vmem>>) attributes {dimension_semantics = [#tpu.dimension_semantics<parallel>, #tpu.dimension_semantics<arbitrary>], iteration_bounds = array<i64: 2, 1>, scalar_prefetch = 0 : i64, scratch_operands = 2 : i64, tpu.core_type = #tpu.core_type<tc>, window_params = [{transform_indices = @transform_0, window_bounds = array<i64: 8, 2, 32>}, {transform_indices = @transform_1, window_bounds = array<i64: 8, 2, 1>}, {transform_indices = @transform_2, window_bounds = array<i64: 1, 32, 128>}, {transform_indices = @transform_3, window_bounds = array<i64: 1, 32, 128>}, {transform_indices = @transform_4, window_bounds = array<i64: 1, 1, 128>}, {transform_indices = @transform_5, window_bounds = array<i64: 1, 8, 2, 32>}]} {
    %c0_i32 = arith.constant 0 : i32
    %0 = arith.cmpi eq, %arg1, %c0_i32 : i32
    %1 = arith.extui %0 : i1 to i32
    %c0_i32_0 = arith.constant 0 : i32
    %2 = arith.cmpi ne, %1, %c0_i32_0 : i32
    scf.if %2 {
      %cst_18 = arith.constant 0.000000e+00 : f32
      %22 = vector.broadcast %cst_18 : f32 to vector<2x32xf32>
      %c0_19 = arith.constant 0 : index
      %c0_20 = arith.constant 0 : index
      %23 = vector.load %arg8[%c0_19, %c0_20] : memref<2x32xf32, #tpu.memory_space<vmem>>, vector<2x32xf32>
      tpu.vector_store %arg8[%c0_19, %c0_20], %22 {strides = array<i32>} : memref<2x32xf32, #tpu.memory_space<vmem>>, vector<2x32xf32>,
      %cst_21 = arith.constant 0.000000e+00 : f32
      %24 = vector.broadcast %cst_21 : f32 to vector<2x32xf32>
      %c0_22 = arith.constant 0 : index
      %c0_23 = arith.constant 0 : index
      %25 = vector.load %arg9[%c0_22, %c0_23] : memref<2x32xf32, #tpu.memory_space<vmem>>, vector<2x32xf32>
      tpu.vector_store %arg9[%c0_22, %c0_23], %24 {strides = array<i32>} : memref<2x32xf32, #tpu.memory_space<vmem>>, vector<2x32xf32>,
    } else {
    }
    %c0 = arith.constant 0 : index
    %c0_1 = arith.constant 0 : index
    %c0_2 = arith.constant 0 : index
    %3 = vector.load %arg4[%c0, %c0_1, %c0_2] : memref<1x32x128xf32, #tpu.memory_space<vmem>>, vector<1x32x128xf32>
    %4 = vector.shape_cast %3 : vector<1x32x128xf32> to vector<32x128xf32>
    %c0_3 = arith.constant 0 : index
    %c0_4 = arith.constant 0 : index
    %c0_5 = arith.constant 0 : index
    %5 = vector.load %arg5[%c0_3, %c0_4, %c0_5] : memref<1x32x128xf32, #tpu.memory_space<vmem>>, vector<1x32x128xf32>
    %6 = vector.shape_cast %5 : vector<1x32x128xf32> to vector<32x128xf32>
    %c0_6 = arith.constant 0 : index
    %c0_7 = arith.constant 0 : index
    %c0_8 = arith.constant 0 : index
    %7 = vector.load %arg6[%c0_6, %c0_7, %c0_8] : memref<1x1x128xf32, #tpu.memory_space<vmem>>, vector<1x1x128xf32>
    %8 = vector.shape_cast %7 : vector<1x1x128xf32> to vector<1x128xf32>
    %c0_9 = arith.constant 0 : index
    %c0_10 = arith.constant 0 : index
    %c0_11 = arith.constant 0 : index
    %9 = vector.load %arg2[%c0_9, %c0_10, %c0_11] : memref<8x2x32xf32, #tpu.memory_space<vmem>>, vector<8x2x32xf32>
    %10 = vector.shape_cast %9 : vector<8x2x32xf32> to vector<16x32xf32>
    %cst = arith.constant dense<0.000000e+00> : vector<16x128xf32>
    %11 = tpu.matmul %10, %4, %cst {dimension_numbers = #tpu.dot_dimension_numbers<[1], [0], [0], [1], [0, 0, 1, 1], [], []>} : vector<16x32xf32>, vector<32x128xf32>, vector<16x128xf32> -> vector<16x128xf32>
    %12 = vector.broadcast %8 : vector<1x128xf32> to vector<16x128xf32>
    %13 = arith.addf %11, %12 : vector<16x128xf32>
    %14 = vector.shape_cast %13 : vector<16x128xf32> to vector<8x2x128xf32>
    %c0_12 = arith.constant 0 : index
    %c0_13 = arith.constant 0 : index
    %c0_14 = arith.constant 0 : index
    %15 = vector.load %arg3[%c0_12, %c0_13, %c0_14] : memref<8x2x1xf32, #tpu.memory_space<vmem>>, vector<8x2x1xf32>
    %c0_i32_15 = arith.constant 0 : i32
    %16 = arith.cmpi eq, %arg0, %c0_i32_15 : i32
    %17 = arith.extui %16 : i1 to i32
    %c0_i32_16 = arith.constant 0 : i32
    %18 = arith.cmpi ne, %17, %c0_i32_16 : i32
    scf.if %18 {
      %c0_18 = arith.constant 0 : index
      %c0_19 = arith.constant 0 : index
      %22 = vector.load %arg8[%c0_18, %c0_19] : memref<2x32xf32, #tpu.memory_space<vmem>>, vector<2x32xf32>
      %c0_20 = arith.constant 0 : index
      %c0_21 = arith.constant 0 : index
      %23 = vector.load %arg9[%c0_20, %c0_21] : memref<2x32xf32, #tpu.memory_space<vmem>>, vector<2x32xf32>
      %24 = vector.extract_strided_slice %14 {offsets = [0, 0, 0], sizes = [1, 2, 128], strides = [1, 1, 1]} : vector<8x2x128xf32> to vector<1x2x128xf32>
      %25 = vector.shape_cast %24 : vector<1x2x128xf32> to vector<2x128xf32>
      %cst_22 = arith.constant dense<0.000000e+00> : vector<2x128xf32>
      %26 = tpu.matmul %22, %6, %cst_22 {dimension_numbers = #tpu.dot_dimension_numbers<[1], [0], [0], [1], [0, 0, 1, 1], [], []>} : vector<2x32xf32>, vector<32x128xf32>, vector<2x128xf32> -> vector<2x128xf32>
      %27 = arith.addf %25, %26 : vector<2x128xf32>
      %28 = vector.extract_strided_slice %27 {offsets = [0, 0], sizes = [2, 32], strides = [1, 1]} : vector<2x128xf32> to vector<2x32xf32>
      %29 = arith.negf %28 : vector<2x32xf32>
      %30 = math.exp %29 : vector<2x32xf32>
      %cst_23 = arith.constant 1.000000e+00 : f32
      %31 = vector.broadcast %cst_23 : f32 to vector<2x32xf32>
      %32 = arith.addf %31, %30 : vector<2x32xf32>
      %33 = arith.divf %31, %32 : vector<2x32xf32>
      %34 = vector.extract_strided_slice %27 {offsets = [0, 32], sizes = [2, 32], strides = [1, 1]} : vector<2x128xf32> to vector<2x32xf32>
      %35 = arith.negf %34 : vector<2x32xf32>
      %36 = math.exp %35 : vector<2x32xf32>
      %cst_24 = arith.constant 1.000000e+00 : f32
      %37 = vector.broadcast %cst_24 : f32 to vector<2x32xf32>
      %38 = arith.addf %37, %36 : vector<2x32xf32>
      %39 = arith.divf %37, %38 : vector<2x32xf32>
      %40 = vector.extract_strided_slice %27 {offsets = [0, 64], sizes = [2, 32], strides = [1, 1]} : vector<2x128xf32> to vector<2x32xf32>
      %41 = math.tanh %40 : vector<2x32xf32>
      %42 = vector.extract_strided_slice %27 {offsets = [0, 96], sizes = [2, 32], strides = [1, 1]} : vector<2x128xf32> to vector<2x32xf32>
      %43 = arith.negf %42 : vector<2x32xf32>
      %44 = math.exp %43 : vector<2x32xf32>
      %cst_25 = arith.constant 1.000000e+00 : f32
      %45 = vector.broadcast %cst_25 : f32 to vector<2x32xf32>
      %46 = arith.addf %45, %44 : vector<2x32xf32>
      %47 = arith.divf %45, %46 : vector<2x32xf32>
      %48 = arith.mulf %39, %23 : vector<2x32xf32>
      %49 = arith.mulf %33, %41 : vector<2x32xf32>
      %50 = arith.addf %48, %49 : vector<2x32xf32>
      %51 = math.tanh %50 : vector<2x32xf32>
      %52 = arith.mulf %47, %51 : vector<2x32xf32>
      %53 = vector.extract_strided_slice %15 {offsets = [0, 0, 0], sizes = [1, 2, 1], strides = [1, 1, 1]} : vector<8x2x1xf32> to vector<1x2x1xf32>
      %54 = vector.shape_cast %53 : vector<1x2x1xf32> to vector<2x1xf32>
      %cst_26 = arith.constant 0.000000e+00 : f32
      %55 = vector.broadcast %cst_26 : f32 to vector<2x1xf32>
      %56 = arith.cmpf ogt, %54, %55 : vector<2x1xf32>
      %cst_27 = arith.constant 0.000000e+00 : f32
      %57 = vector.shape_cast %56 : vector<2x1xi1> to vector<2x1xi1>
      %58 = vector.broadcast %57 : vector<2x1xi1> to vector<2x32xi1>
      %59 = vector.broadcast %cst_27 : f32 to vector<2x32xf32>
      %60 = arith.select %58, %52, %59 : vector<2x32xi1>, vector<2x32xf32>
      %c0_28 = arith.constant 0 : index
      %c0_29 = arith.constant 0 : index
      %c0_30 = arith.constant 0 : index
      %c0_31 = arith.constant 0 : index
      %61 = vector.load %arg7[%c0_28, %c0_29, %c0_30, %c0_31] : memref<1x8x2x32xf32, #tpu.memory_space<vmem>>, vector<1x1x2x32xf32>
      %62 = vector.shape_cast %61 : vector<1x1x2x32xf32> to vector<2x32xf32>
      %63 = vector.shape_cast %60 : vector<2x32xf32> to vector<1x1x2x32xf32>
      tpu.vector_store %arg7[%c0_28, %c0_29, %c0_30, %c0_31], %63 {strides = array<i32>} : memref<1x8x2x32xf32, #tpu.memory_space<vmem>>, vector<1x1x2x32xf32>,
      %64 = vector.shape_cast %56 : vector<2x1xi1> to vector<2x1xi1>
      %65 = vector.broadcast %64 : vector<2x1xi1> to vector<2x32xi1>
      %66 = arith.select %65, %52, %22 : vector<2x32xi1>, vector<2x32xf32>
      %67 = vector.shape_cast %56 : vector<2x1xi1> to vector<2x1xi1>
      %68 = vector.broadcast %67 : vector<2x1xi1> to vector<2x32xi1>
      %69 = arith.select %68, %50, %23 : vector<2x32xi1>, vector<2x32xf32>
      %70 = vector.extract_strided_slice %14 {offsets = [1, 0, 0], sizes = [1, 2, 128], strides = [1, 1, 1]} : vector<8x2x128xf32> to vector<1x2x128xf32>
      %71 = vector.shape_cast %70 : vector<1x2x128xf32> to vector<2x128xf32>
      %cst_32 = arith.constant dense<0.000000e+00> : vector<2x128xf32>
      %72 = tpu.matmul %66, %6, %cst_32 {dimension_numbers = #tpu.dot_dimension_numbers<[1], [0], [0], [1], [0, 0, 1, 1], [], []>} : vector<2x32xf32>, vector<32x128xf32>, vector<2x128xf32> -> vector<2x128xf32>
      %73 = arith.addf %71, %72 : vector<2x128xf32>
      %74 = vector.extract_strided_slice %73 {offsets = [0, 0], sizes = [2, 32], strides = [1, 1]} : vector<2x128xf32> to vector<2x32xf32>
      %75 = arith.negf %74 : vector<2x32xf32>
      %76 = math.exp %75 : vector<2x32xf32>
      %cst_33 = arith.constant 1.000000e+00 : f32
      %77 = vector.broadcast %cst_33 : f32 to vector<2x32xf32>
      %78 = arith.addf %77, %76 : vector<2x32xf32>
      %79 = arith.divf %77, %78 : vector<2x32xf32>
      %80 = vector.extract_strided_slice %73 {offsets = [0, 32], sizes = [2, 32], strides = [1, 1]} : vector<2x128xf32> to vector<2x32xf32>
      %81 = arith.negf %80 : vector<2x32xf32>
      %82 = math.exp %81 : vector<2x32xf32>
      %cst_34 = arith.constant 1.000000e+00 : f32
      %83 = vector.broadcast %cst_34 : f32 to vector<2x32xf32>
      %84 = arith.addf %83, %82 : vector<2x32xf32>
      %85 = arith.divf %83, %84 : vector<2x32xf32>
      %86 = vector.extract_strided_slice %73 {offsets = [0, 64], sizes = [2, 32], strides = [1, 1]} : vector<2x128xf32> to vector<2x32xf32>
      %87 = math.tanh %86 : vector<2x32xf32>
      %88 = vector.extract_strided_slice %73 {offsets = [0, 96], sizes = [2, 32], strides = [1, 1]} : vector<2x128xf32> to vector<2x32xf32>
      %89 = arith.negf %88 : vector<2x32xf32>
      %90 = math.exp %89 : vector<2x32xf32>
      %cst_35 = arith.constant 1.000000e+00 : f32
      %91 = vector.broadcast %cst_35 : f32 to vector<2x32xf32>
      %92 = arith.addf %91, %90 : vector<2x32xf32>
      %93 = arith.divf %91, %92 : vector<2x32xf32>
      %94 = arith.mulf %85, %69 : vector<2x32xf32>
      %95 = arith.mulf %79, %87 : vector<2x32xf32>
      %96 = arith.addf %94, %95 : vector<2x32xf32>
      %97 = math.tanh %96 : vector<2x32xf32>
      %98 = arith.mulf %93, %97 : vector<2x32xf32>
      %99 = vector.extract_strided_slice %15 {offsets = [1, 0, 0], sizes = [1, 2, 1], strides = [1, 1, 1]} : vector<8x2x1xf32> to vector<1x2x1xf32>
      %100 = vector.shape_cast %99 : vector<1x2x1xf32> to vector<2x1xf32>
      %cst_36 = arith.constant 0.000000e+00 : f32
      %101 = vector.broadcast %cst_36 : f32 to vector<2x1xf32>
      %102 = arith.cmpf ogt, %100, %101 : vector<2x1xf32>
      %cst_37 = arith.constant 0.000000e+00 : f32
      %103 = vector.shape_cast %102 : vector<2x1xi1> to vector<2x1xi1>
      %104 = vector.broadcast %103 : vector<2x1xi1> to vector<2x32xi1>
      %105 = vector.broadcast %cst_37 : f32 to vector<2x32xf32>
      %106 = arith.select %104, %98, %105 : vector<2x32xi1>, vector<2x32xf32>
      %c0_38 = arith.constant 0 : index
      %c1 = arith.constant 1 : index
      %c0_39 = arith.constant 0 : index
      %c0_40 = arith.constant 0 : index
      %107 = vector.load %arg7[%c0_38, %c1, %c0_39, %c0_40] : memref<1x8x2x32xf32, #tpu.memory_space<vmem>>, vector<1x1x2x32xf32>
      %108 = vector.shape_cast %107 : vector<1x1x2x32xf32> to vector<2x32xf32>
      %109 = vector.shape_cast %106 : vector<2x32xf32> to vector<1x1x2x32xf32>
      tpu.vector_store %arg7[%c0_38, %c1, %c0_39, %c0_40], %109 {strides = array<i32>} : memref<1x8x2x32xf32, #tpu.memory_space<vmem>>, vector<1x1x2x32xf32>,
      %110 = vector.shape_cast %102 : vector<2x1xi1> to vector<2x1xi1>
      %111 = vector.broadcast %110 : vector<2x1xi1> to vector<2x32xi1>
      %112 = arith.select %111, %98, %66 : vector<2x32xi1>, vector<2x32xf32>
      %113 = vector.shape_cast %102 : vector<2x1xi1> to vector<2x1xi1>
      %114 = vector.broadcast %113 : vector<2x1xi1> to vector<2x32xi1>
      %115 = arith.select %114, %96, %69 : vector<2x32xi1>, vector<2x32xf32>
      %116 = vector.extract_strided_slice %14 {offsets = [2, 0, 0], sizes = [1, 2, 128], strides = [1, 1, 1]} : vector<8x2x128xf32> to vector<1x2x128xf32>
      %117 = vector.shape_cast %116 : vector<1x2x128xf32> to vector<2x128xf32>
      %cst_41 = arith.constant dense<0.000000e+00> : vector<2x128xf32>
      %118 = tpu.matmul %112, %6, %cst_41 {dimension_numbers = #tpu.dot_dimension_numbers<[1], [0], [0], [1], [0, 0, 1, 1], [], []>} : vector<2x32xf32>, vector<32x128xf32>, vector<2x128xf32> -> vector<2x128xf32>
      %119 = arith.addf %117, %118 : vector<2x128xf32>
      %120 = vector.extract_strided_slice %119 {offsets = [0, 0], sizes = [2, 32], strides = [1, 1]} : vector<2x128xf32> to vector<2x32xf32>
      %121 = arith.negf %120 : vector<2x32xf32>
      %122 = math.exp %121 : vector<2x32xf32>
      %cst_42 = arith.constant 1.000000e+00 : f32
      %123 = vector.broadcast %cst_42 : f32 to vector<2x32xf32>
      %124 = arith.addf %123, %122 : vector<2x32xf32>
      %125 = arith.divf %123, %124 : vector<2x32xf32>
      %126 = vector.extract_strided_slice %119 {offsets = [0, 32], sizes = [2, 32], strides = [1, 1]} : vector<2x128xf32> to vector<2x32xf32>
      %127 = arith.negf %126 : vector<2x32xf32>
      %128 = math.exp %127 : vector<2x32xf32>
      %cst_43 = arith.constant 1.000000e+00 : f32
      %129 = vector.broadcast %cst_43 : f32 to vector<2x32xf32>
      %130 = arith.addf %129, %128 : vector<2x32xf32>
      %131 = arith.divf %129, %130 : vector<2x32xf32>
      %132 = vector.extract_strided_slice %119 {offsets = [0, 64], sizes = [2, 32], strides = [1, 1]} : vector<2x128xf32> to vector<2x32xf32>
      %133 = math.tanh %132 : vector<2x32xf32>
      %134 = vector.extract_strided_slice %119 {offsets = [0, 96], sizes = [2, 32], strides = [1, 1]} : vector<2x128xf32> to vector<2x32xf32>
      %135 = arith.negf %134 : vector<2x32xf32>
      %136 = math.exp %135 : vector<2x32xf32>
      %cst_44 = arith.constant 1.000000e+00 : f32
      %137 = vector.broadcast %cst_44 : f32 to vector<2x32xf32>
      %138 = arith.addf %137, %136 : vector<2x32xf32>
      %139 = arith.divf %137, %138 : vector<2x32xf32>
      %140 = arith.mulf %131, %115 : vector<2x32xf32>
      %141 = arith.mulf %125, %133 : vector<2x32xf32>
      %142 = arith.addf %140, %141 : vector<2x32xf32>
      %143 = math.tanh %142 : vector<2x32xf32>
      %144 = arith.mulf %139, %143 : vector<2x32xf32>
      %145 = vector.extract_strided_slice %15 {offsets = [2, 0, 0], sizes = [1, 2, 1], strides = [1, 1, 1]} : vector<8x2x1xf32> to vector<1x2x1xf32>
      %146 = vector.shape_cast %145 : vector<1x2x1xf32> to vector<2x1xf32>
      %cst_45 = arith.constant 0.000000e+00 : f32
      %147 = vector.broadcast %cst_45 : f32 to vector<2x1xf32>
      %148 = arith.cmpf ogt, %146, %147 : vector<2x1xf32>
      %cst_46 = arith.constant 0.000000e+00 : f32
      %149 = vector.shape_cast %148 : vector<2x1xi1> to vector<2x1xi1>
      %150 = vector.broadcast %149 : vector<2x1xi1> to vector<2x32xi1>
      %151 = vector.broadcast %cst_46 : f32 to vector<2x32xf32>
      %152 = arith.select %150, %144, %151 : vector<2x32xi1>, vector<2x32xf32>
      %c0_47 = arith.constant 0 : index
      %c2 = arith.constant 2 : index
      %c0_48 = arith.constant 0 : index
      %c0_49 = arith.constant 0 : index
      %153 = vector.load %arg7[%c0_47, %c2, %c0_48, %c0_49] : memref<1x8x2x32xf32, #tpu.memory_space<vmem>>, vector<1x1x2x32xf32>
      %154 = vector.shape_cast %153 : vector<1x1x2x32xf32> to vector<2x32xf32>
      %155 = vector.shape_cast %152 : vector<2x32xf32> to vector<1x1x2x32xf32>
      tpu.vector_store %arg7[%c0_47, %c2, %c0_48, %c0_49], %155 {strides = array<i32>} : memref<1x8x2x32xf32, #tpu.memory_space<vmem>>, vector<1x1x2x32xf32>,
      %156 = vector.shape_cast %148 : vector<2x1xi1> to vector<2x1xi1>
      %157 = vector.broadcast %156 : vector<2x1xi1> to vector<2x32xi1>
      %158 = arith.select %157, %144, %112 : vector<2x32xi1>, vector<2x32xf32>
      %159 = vector.shape_cast %148 : vector<2x1xi1> to vector<2x1xi1>
      %160 = vector.broadcast %159 : vector<2x1xi1> to vector<2x32xi1>
      %161 = arith.select %160, %142, %115 : vector<2x32xi1>, vector<2x32xf32>
      %162 = vector.extract_strided_slice %14 {offsets = [3, 0, 0], sizes = [1, 2, 128], strides = [1, 1, 1]} : vector<8x2x128xf32> to vector<1x2x128xf32>
      %163 = vector.shape_cast %162 : vector<1x2x128xf32> to vector<2x128xf32>
      %cst_50 = arith.constant dense<0.000000e+00> : vector<2x128xf32>
      %164 = tpu.matmul %158, %6, %cst_50 {dimension_numbers = #tpu.dot_dimension_numbers<[1], [0], [0], [1], [0, 0, 1, 1], [], []>} : vector<2x32xf32>, vector<32x128xf32>, vector<2x128xf32> -> vector<2x128xf32>
      %165 = arith.addf %163, %164 : vector<2x128xf32>
      %166 = vector.extract_strided_slice %165 {offsets = [0, 0], sizes = [2, 32], strides = [1, 1]} : vector<2x128xf32> to vector<2x32xf32>
      %167 = arith.negf %166 : vector<2x32xf32>
      %168 = math.exp %167 : vector<2x32xf32>
      %cst_51 = arith.constant 1.000000e+00 : f32
      %169 = vector.broadcast %cst_51 : f32 to vector<2x32xf32>
      %170 = arith.addf %169, %168 : vector<2x32xf32>
      %171 = arith.divf %169, %170 : vector<2x32xf32>
      %172 = vector.extract_strided_slice %165 {offsets = [0, 32], sizes = [2, 32], strides = [1, 1]} : vector<2x128xf32> to vector<2x32xf32>
      %173 = arith.negf %172 : vector<2x32xf32>
      %174 = math.exp %173 : vector<2x32xf32>
      %cst_52 = arith.constant 1.000000e+00 : f32
      %175 = vector.broadcast %cst_52 : f32 to vector<2x32xf32>
      %176 = arith.addf %175, %174 : vector<2x32xf32>
      %177 = arith.divf %175, %176 : vector<2x32xf32>
      %178 = vector.extract_strided_slice %165 {offsets = [0, 64], sizes = [2, 32], strides = [1, 1]} : vector<2x128xf32> to vector<2x32xf32>
      %179 = math.tanh %178 : vector<2x32xf32>
      %180 = vector.extract_strided_slice %165 {offsets = [0, 96], sizes = [2, 32], strides = [1, 1]} : vector<2x128xf32> to vector<2x32xf32>
      %181 = arith.negf %180 : vector<2x32xf32>
      %182 = math.exp %181 : vector<2x32xf32>
      %cst_53 = arith.constant 1.000000e+00 : f32
      %183 = vector.broadcast %cst_53 : f32 to vector<2x32xf32>
      %184 = arith.addf %183, %182 : vector<2x32xf32>
      %185 = arith.divf %183, %184 : vector<2x32xf32>
      %186 = arith.mulf %177, %161 : vector<2x32xf32>
      %187 = arith.mulf %171, %179 : vector<2x32xf32>
      %188 = arith.addf %186, %187 : vector<2x32xf32>
      %189 = math.tanh %188 : vector<2x32xf32>
      %190 = arith.mulf %185, %189 : vector<2x32xf32>
      %191 = vector.extract_strided_slice %15 {offsets = [3, 0, 0], sizes = [1, 2, 1], strides = [1, 1, 1]} : vector<8x2x1xf32> to vector<1x2x1xf32>
      %192 = vector.shape_cast %191 : vector<1x2x1xf32> to vector<2x1xf32>
      %cst_54 = arith.constant 0.000000e+00 : f32
      %193 = vector.broadcast %cst_54 : f32 to vector<2x1xf32>
      %194 = arith.cmpf ogt, %192, %193 : vector<2x1xf32>
      %cst_55 = arith.constant 0.000000e+00 : f32
      %195 = vector.shape_cast %194 : vector<2x1xi1> to vector<2x1xi1>
      %196 = vector.broadcast %195 : vector<2x1xi1> to vector<2x32xi1>
      %197 = vector.broadcast %cst_55 : f32 to vector<2x32xf32>
      %198 = arith.select %196, %190, %197 : vector<2x32xi1>, vector<2x32xf32>
      %c0_56 = arith.constant 0 : index
      %c3 = arith.constant 3 : index
      %c0_57 = arith.constant 0 : index
      %c0_58 = arith.constant 0 : index
      %199 = vector.load %arg7[%c0_56, %c3, %c0_57, %c0_58] : memref<1x8x2x32xf32, #tpu.memory_space<vmem>>, vector<1x1x2x32xf32>
      %200 = vector.shape_cast %199 : vector<1x1x2x32xf32> to vector<2x32xf32>
      %201 = vector.shape_cast %198 : vector<2x32xf32> to vector<1x1x2x32xf32>
      tpu.vector_store %arg7[%c0_56, %c3, %c0_57, %c0_58], %201 {strides = array<i32>} : memref<1x8x2x32xf32, #tpu.memory_space<vmem>>, vector<1x1x2x32xf32>,
      %202 = vector.shape_cast %194 : vector<2x1xi1> to vector<2x1xi1>
      %203 = vector.broadcast %202 : vector<2x1xi1> to vector<2x32xi1>
      %204 = arith.select %203, %190, %158 : vector<2x32xi1>, vector<2x32xf32>
      %205 = vector.shape_cast %194 : vector<2x1xi1> to vector<2x1xi1>
      %206 = vector.broadcast %205 : vector<2x1xi1> to vector<2x32xi1>
      %207 = arith.select %206, %188, %161 : vector<2x32xi1>, vector<2x32xf32>
      %208 = vector.extract_strided_slice %14 {offsets = [4, 0, 0], sizes = [1, 2, 128], strides = [1, 1, 1]} : vector<8x2x128xf32> to vector<1x2x128xf32>
      %209 = vector.shape_cast %208 : vector<1x2x128xf32> to vector<2x128xf32>
      %cst_59 = arith.constant dense<0.000000e+00> : vector<2x128xf32>
      %210 = tpu.matmul %204, %6, %cst_59 {dimension_numbers = #tpu.dot_dimension_numbers<[1], [0], [0], [1], [0, 0, 1, 1], [], []>} : vector<2x32xf32>, vector<32x128xf32>, vector<2x128xf32> -> vector<2x128xf32>
      %211 = arith.addf %209, %210 : vector<2x128xf32>
      %212 = vector.extract_strided_slice %211 {offsets = [0, 0], sizes = [2, 32], strides = [1, 1]} : vector<2x128xf32> to vector<2x32xf32>
      %213 = arith.negf %212 : vector<2x32xf32>
      %214 = math.exp %213 : vector<2x32xf32>
      %cst_60 = arith.constant 1.000000e+00 : f32
      %215 = vector.broadcast %cst_60 : f32 to vector<2x32xf32>
      %216 = arith.addf %215, %214 : vector<2x32xf32>
      %217 = arith.divf %215, %216 : vector<2x32xf32>
      %218 = vector.extract_strided_slice %211 {offsets = [0, 32], sizes = [2, 32], strides = [1, 1]} : vector<2x128xf32> to vector<2x32xf32>
      %219 = arith.negf %218 : vector<2x32xf32>
      %220 = math.exp %219 : vector<2x32xf32>
      %cst_61 = arith.constant 1.000000e+00 : f32
      %221 = vector.broadcast %cst_61 : f32 to vector<2x32xf32>
      %222 = arith.addf %221, %220 : vector<2x32xf32>
      %223 = arith.divf %221, %222 : vector<2x32xf32>
      %224 = vector.extract_strided_slice %211 {offsets = [0, 64], sizes = [2, 32], strides = [1, 1]} : vector<2x128xf32> to vector<2x32xf32>
      %225 = math.tanh %224 : vector<2x32xf32>
      %226 = vector.extract_strided_slice %211 {offsets = [0, 96], sizes = [2, 32], strides = [1, 1]} : vector<2x128xf32> to vector<2x32xf32>
      %227 = arith.negf %226 : vector<2x32xf32>
      %228 = math.exp %227 : vector<2x32xf32>
      %cst_62 = arith.constant 1.000000e+00 : f32
      %229 = vector.broadcast %cst_62 : f32 to vector<2x32xf32>
      %230 = arith.addf %229, %228 : vector<2x32xf32>
      %231 = arith.divf %229, %230 : vector<2x32xf32>
      %232 = arith.mulf %223, %207 : vector<2x32xf32>
      %233 = arith.mulf %217, %225 : vector<2x32xf32>
      %234 = arith.addf %232, %233 : vector<2x32xf32>
      %235 = math.tanh %234 : vector<2x32xf32>
      %236 = arith.mulf %231, %235 : vector<2x32xf32>
      %237 = vector.extract_strided_slice %15 {offsets = [4, 0, 0], sizes = [1, 2, 1], strides = [1, 1, 1]} : vector<8x2x1xf32> to vector<1x2x1xf32>
      %238 = vector.shape_cast %237 : vector<1x2x1xf32> to vector<2x1xf32>
      %cst_63 = arith.constant 0.000000e+00 : f32
      %239 = vector.broadcast %cst_63 : f32 to vector<2x1xf32>
      %240 = arith.cmpf ogt, %238, %239 : vector<2x1xf32>
      %cst_64 = arith.constant 0.000000e+00 : f32
      %241 = vector.shape_cast %240 : vector<2x1xi1> to vector<2x1xi1>
      %242 = vector.broadcast %241 : vector<2x1xi1> to vector<2x32xi1>
      %243 = vector.broadcast %cst_64 : f32 to vector<2x32xf32>
      %244 = arith.select %242, %236, %243 : vector<2x32xi1>, vector<2x32xf32>
      %c0_65 = arith.constant 0 : index
      %c4 = arith.constant 4 : index
      %c0_66 = arith.constant 0 : index
      %c0_67 = arith.constant 0 : index
      %245 = vector.load %arg7[%c0_65, %c4, %c0_66, %c0_67] : memref<1x8x2x32xf32, #tpu.memory_space<vmem>>, vector<1x1x2x32xf32>
      %246 = vector.shape_cast %245 : vector<1x1x2x32xf32> to vector<2x32xf32>
      %247 = vector.shape_cast %244 : vector<2x32xf32> to vector<1x1x2x32xf32>
      tpu.vector_store %arg7[%c0_65, %c4, %c0_66, %c0_67], %247 {strides = array<i32>} : memref<1x8x2x32xf32, #tpu.memory_space<vmem>>, vector<1x1x2x32xf32>,
      %248 = vector.shape_cast %240 : vector<2x1xi1> to vector<2x1xi1>
      %249 = vector.broadcast %248 : vector<2x1xi1> to vector<2x32xi1>
      %250 = arith.select %249, %236, %204 : vector<2x32xi1>, vector<2x32xf32>
      %251 = vector.shape_cast %240 : vector<2x1xi1> to vector<2x1xi1>
      %252 = vector.broadcast %251 : vector<2x1xi1> to vector<2x32xi1>
      %253 = arith.select %252, %234, %207 : vector<2x32xi1>, vector<2x32xf32>
      %254 = vector.extract_strided_slice %14 {offsets = [5, 0, 0], sizes = [1, 2, 128], strides = [1, 1, 1]} : vector<8x2x128xf32> to vector<1x2x128xf32>
      %255 = vector.shape_cast %254 : vector<1x2x128xf32> to vector<2x128xf32>
      %cst_68 = arith.constant dense<0.000000e+00> : vector<2x128xf32>
      %256 = tpu.matmul %250, %6, %cst_68 {dimension_numbers = #tpu.dot_dimension_numbers<[1], [0], [0], [1], [0, 0, 1, 1], [], []>} : vector<2x32xf32>, vector<32x128xf32>, vector<2x128xf32> -> vector<2x128xf32>
      %257 = arith.addf %255, %256 : vector<2x128xf32>
      %258 = vector.extract_strided_slice %257 {offsets = [0, 0], sizes = [2, 32], strides = [1, 1]} : vector<2x128xf32> to vector<2x32xf32>
      %259 = arith.negf %258 : vector<2x32xf32>
      %260 = math.exp %259 : vector<2x32xf32>
      %cst_69 = arith.constant 1.000000e+00 : f32
      %261 = vector.broadcast %cst_69 : f32 to vector<2x32xf32>
      %262 = arith.addf %261, %260 : vector<2x32xf32>
      %263 = arith.divf %261, %262 : vector<2x32xf32>
      %264 = vector.extract_strided_slice %257 {offsets = [0, 32], sizes = [2, 32], strides = [1, 1]} : vector<2x128xf32> to vector<2x32xf32>
      %265 = arith.negf %264 : vector<2x32xf32>
      %266 = math.exp %265 : vector<2x32xf32>
      %cst_70 = arith.constant 1.000000e+00 : f32
      %267 = vector.broadcast %cst_70 : f32 to vector<2x32xf32>
      %268 = arith.addf %267, %266 : vector<2x32xf32>
      %269 = arith.divf %267, %268 : vector<2x32xf32>
      %270 = vector.extract_strided_slice %257 {offsets = [0, 64], sizes = [2, 32], strides = [1, 1]} : vector<2x128xf32> to vector<2x32xf32>
      %271 = math.tanh %270 : vector<2x32xf32>
      %272 = vector.extract_strided_slice %257 {offsets = [0, 96], sizes = [2, 32], strides = [1, 1]} : vector<2x128xf32> to vector<2x32xf32>
      %273 = arith.negf %272 : vector<2x32xf32>
      %274 = math.exp %273 : vector<2x32xf32>
      %cst_71 = arith.constant 1.000000e+00 : f32
      %275 = vector.broadcast %cst_71 : f32 to vector<2x32xf32>
      %276 = arith.addf %275, %274 : vector<2x32xf32>
      %277 = arith.divf %275, %276 : vector<2x32xf32>
      %278 = arith.mulf %269, %253 : vector<2x32xf32>
      %279 = arith.mulf %263, %271 : vector<2x32xf32>
      %280 = arith.addf %278, %279 : vector<2x32xf32>
      %281 = math.tanh %280 : vector<2x32xf32>
      %282 = arith.mulf %277, %281 : vector<2x32xf32>
      %283 = vector.extract_strided_slice %15 {offsets = [5, 0, 0], sizes = [1, 2, 1], strides = [1, 1, 1]} : vector<8x2x1xf32> to vector<1x2x1xf32>
      %284 = vector.shape_cast %283 : vector<1x2x1xf32> to vector<2x1xf32>
      %cst_72 = arith.constant 0.000000e+00 : f32
      %285 = vector.broadcast %cst_72 : f32 to vector<2x1xf32>
      %286 = arith.cmpf ogt, %284, %285 : vector<2x1xf32>
      %cst_73 = arith.constant 0.000000e+00 : f32
      %287 = vector.shape_cast %286 : vector<2x1xi1> to vector<2x1xi1>
      %288 = vector.broadcast %287 : vector<2x1xi1> to vector<2x32xi1>
      %289 = vector.broadcast %cst_73 : f32 to vector<2x32xf32>
      %290 = arith.select %288, %282, %289 : vector<2x32xi1>, vector<2x32xf32>
      %c0_74 = arith.constant 0 : index
      %c5 = arith.constant 5 : index
      %c0_75 = arith.constant 0 : index
      %c0_76 = arith.constant 0 : index
      %291 = vector.load %arg7[%c0_74, %c5, %c0_75, %c0_76] : memref<1x8x2x32xf32, #tpu.memory_space<vmem>>, vector<1x1x2x32xf32>
      %292 = vector.shape_cast %291 : vector<1x1x2x32xf32> to vector<2x32xf32>
      %293 = vector.shape_cast %290 : vector<2x32xf32> to vector<1x1x2x32xf32>
      tpu.vector_store %arg7[%c0_74, %c5, %c0_75, %c0_76], %293 {strides = array<i32>} : memref<1x8x2x32xf32, #tpu.memory_space<vmem>>, vector<1x1x2x32xf32>,
      %294 = vector.shape_cast %286 : vector<2x1xi1> to vector<2x1xi1>
      %295 = vector.broadcast %294 : vector<2x1xi1> to vector<2x32xi1>
      %296 = arith.select %295, %282, %250 : vector<2x32xi1>, vector<2x32xf32>
      %297 = vector.shape_cast %286 : vector<2x1xi1> to vector<2x1xi1>
      %298 = vector.broadcast %297 : vector<2x1xi1> to vector<2x32xi1>
      %299 = arith.select %298, %280, %253 : vector<2x32xi1>, vector<2x32xf32>
      %300 = vector.extract_strided_slice %14 {offsets = [6, 0, 0], sizes = [1, 2, 128], strides = [1, 1, 1]} : vector<8x2x128xf32> to vector<1x2x128xf32>
      %301 = vector.shape_cast %300 : vector<1x2x128xf32> to vector<2x128xf32>
      %cst_77 = arith.constant dense<0.000000e+00> : vector<2x128xf32>
      %302 = tpu.matmul %296, %6, %cst_77 {dimension_numbers = #tpu.dot_dimension_numbers<[1], [0], [0], [1], [0, 0, 1, 1], [], []>} : vector<2x32xf32>, vector<32x128xf32>, vector<2x128xf32> -> vector<2x128xf32>
      %303 = arith.addf %301, %302 : vector<2x128xf32>
      %304 = vector.extract_strided_slice %303 {offsets = [0, 0], sizes = [2, 32], strides = [1, 1]} : vector<2x128xf32> to vector<2x32xf32>
      %305 = arith.negf %304 : vector<2x32xf32>
      %306 = math.exp %305 : vector<2x32xf32>
      %cst_78 = arith.constant 1.000000e+00 : f32
      %307 = vector.broadcast %cst_78 : f32 to vector<2x32xf32>
      %308 = arith.addf %307, %306 : vector<2x32xf32>
      %309 = arith.divf %307, %308 : vector<2x32xf32>
      %310 = vector.extract_strided_slice %303 {offsets = [0, 32], sizes = [2, 32], strides = [1, 1]} : vector<2x128xf32> to vector<2x32xf32>
      %311 = arith.negf %310 : vector<2x32xf32>
      %312 = math.exp %311 : vector<2x32xf32>
      %cst_79 = arith.constant 1.000000e+00 : f32
      %313 = vector.broadcast %cst_79 : f32 to vector<2x32xf32>
      %314 = arith.addf %313, %312 : vector<2x32xf32>
      %315 = arith.divf %313, %314 : vector<2x32xf32>
      %316 = vector.extract_strided_slice %303 {offsets = [0, 64], sizes = [2, 32], strides = [1, 1]} : vector<2x128xf32> to vector<2x32xf32>
      %317 = math.tanh %316 : vector<2x32xf32>
      %318 = vector.extract_strided_slice %303 {offsets = [0, 96], sizes = [2, 32], strides = [1, 1]} : vector<2x128xf32> to vector<2x32xf32>
      %319 = arith.negf %318 : vector<2x32xf32>
      %320 = math.exp %319 : vector<2x32xf32>
      %cst_80 = arith.constant 1.000000e+00 : f32
      %321 = vector.broadcast %cst_80 : f32 to vector<2x32xf32>
      %322 = arith.addf %321, %320 : vector<2x32xf32>
      %323 = arith.divf %321, %322 : vector<2x32xf32>
      %324 = arith.mulf %315, %299 : vector<2x32xf32>
      %325 = arith.mulf %309, %317 : vector<2x32xf32>
      %326 = arith.addf %324, %325 : vector<2x32xf32>
      %327 = math.tanh %326 : vector<2x32xf32>
      %328 = arith.mulf %323, %327 : vector<2x32xf32>
      %329 = vector.extract_strided_slice %15 {offsets = [6, 0, 0], sizes = [1, 2, 1], strides = [1, 1, 1]} : vector<8x2x1xf32> to vector<1x2x1xf32>
      %330 = vector.shape_cast %329 : vector<1x2x1xf32> to vector<2x1xf32>
      %cst_81 = arith.constant 0.000000e+00 : f32
      %331 = vector.broadcast %cst_81 : f32 to vector<2x1xf32>
      %332 = arith.cmpf ogt, %330, %331 : vector<2x1xf32>
      %cst_82 = arith.constant 0.000000e+00 : f32
      %333 = vector.shape_cast %332 : vector<2x1xi1> to vector<2x1xi1>
      %334 = vector.broadcast %333 : vector<2x1xi1> to vector<2x32xi1>
      %335 = vector.broadcast %cst_82 : f32 to vector<2x32xf32>
      %336 = arith.select %334, %328, %335 : vector<2x32xi1>, vector<2x32xf32>
      %c0_83 = arith.constant 0 : index
      %c6 = arith.constant 6 : index
      %c0_84 = arith.constant 0 : index
      %c0_85 = arith.constant 0 : index
      %337 = vector.load %arg7[%c0_83, %c6, %c0_84, %c0_85] : memref<1x8x2x32xf32, #tpu.memory_space<vmem>>, vector<1x1x2x32xf32>
      %338 = vector.shape_cast %337 : vector<1x1x2x32xf32> to vector<2x32xf32>
      %339 = vector.shape_cast %336 : vector<2x32xf32> to vector<1x1x2x32xf32>
      tpu.vector_store %arg7[%c0_83, %c6, %c0_84, %c0_85], %339 {strides = array<i32>} : memref<1x8x2x32xf32, #tpu.memory_space<vmem>>, vector<1x1x2x32xf32>,
      %340 = vector.shape_cast %332 : vector<2x1xi1> to vector<2x1xi1>
      %341 = vector.broadcast %340 : vector<2x1xi1> to vector<2x32xi1>
      %342 = arith.select %341, %328, %296 : vector<2x32xi1>, vector<2x32xf32>
      %343 = vector.shape_cast %332 : vector<2x1xi1> to vector<2x1xi1>
      %344 = vector.broadcast %343 : vector<2x1xi1> to vector<2x32xi1>
      %345 = arith.select %344, %326, %299 : vector<2x32xi1>, vector<2x32xf32>
      %346 = vector.extract_strided_slice %14 {offsets = [7, 0, 0], sizes = [1, 2, 128], strides = [1, 1, 1]} : vector<8x2x128xf32> to vector<1x2x128xf32>
      %347 = vector.shape_cast %346 : vector<1x2x128xf32> to vector<2x128xf32>
      %cst_86 = arith.constant dense<0.000000e+00> : vector<2x128xf32>
      %348 = tpu.matmul %342, %6, %cst_86 {dimension_numbers = #tpu.dot_dimension_numbers<[1], [0], [0], [1], [0, 0, 1, 1], [], []>} : vector<2x32xf32>, vector<32x128xf32>, vector<2x128xf32> -> vector<2x128xf32>
      %349 = arith.addf %347, %348 : vector<2x128xf32>
      %350 = vector.extract_strided_slice %349 {offsets = [0, 0], sizes = [2, 32], strides = [1, 1]} : vector<2x128xf32> to vector<2x32xf32>
      %351 = arith.negf %350 : vector<2x32xf32>
      %352 = math.exp %351 : vector<2x32xf32>
      %cst_87 = arith.constant 1.000000e+00 : f32
      %353 = vector.broadcast %cst_87 : f32 to vector<2x32xf32>
      %354 = arith.addf %353, %352 : vector<2x32xf32>
      %355 = arith.divf %353, %354 : vector<2x32xf32>
      %356 = vector.extract_strided_slice %349 {offsets = [0, 32], sizes = [2, 32], strides = [1, 1]} : vector<2x128xf32> to vector<2x32xf32>
      %357 = arith.negf %356 : vector<2x32xf32>
      %358 = math.exp %357 : vector<2x32xf32>
      %cst_88 = arith.constant 1.000000e+00 : f32
      %359 = vector.broadcast %cst_88 : f32 to vector<2x32xf32>
      %360 = arith.addf %359, %358 : vector<2x32xf32>
      %361 = arith.divf %359, %360 : vector<2x32xf32>
      %362 = vector.extract_strided_slice %349 {offsets = [0, 64], sizes = [2, 32], strides = [1, 1]} : vector<2x128xf32> to vector<2x32xf32>
      %363 = math.tanh %362 : vector<2x32xf32>
      %364 = vector.extract_strided_slice %349 {offsets = [0, 96], sizes = [2, 32], strides = [1, 1]} : vector<2x128xf32> to vector<2x32xf32>
      %365 = arith.negf %364 : vector<2x32xf32>
      %366 = math.exp %365 : vector<2x32xf32>
      %cst_89 = arith.constant 1.000000e+00 : f32
      %367 = vector.broadcast %cst_89 : f32 to vector<2x32xf32>
      %368 = arith.addf %367, %366 : vector<2x32xf32>
      %369 = arith.divf %367, %368 : vector<2x32xf32>
      %370 = arith.mulf %361, %345 : vector<2x32xf32>
      %371 = arith.mulf %355, %363 : vector<2x32xf32>
      %372 = arith.addf %370, %371 : vector<2x32xf32>
      %373 = math.tanh %372 : vector<2x32xf32>
      %374 = arith.mulf %369, %373 : vector<2x32xf32>
      %375 = vector.extract_strided_slice %15 {offsets = [7, 0, 0], sizes = [1, 2, 1], strides = [1, 1, 1]} : vector<8x2x1xf32> to vector<1x2x1xf32>
      %376 = vector.shape_cast %375 : vector<1x2x1xf32> to vector<2x1xf32>
      %cst_90 = arith.constant 0.000000e+00 : f32
      %377 = vector.broadcast %cst_90 : f32 to vector<2x1xf32>
      %378 = arith.cmpf ogt, %376, %377 : vector<2x1xf32>
      %cst_91 = arith.constant 0.000000e+00 : f32
      %379 = vector.shape_cast %378 : vector<2x1xi1> to vector<2x1xi1>
      %380 = vector.broadcast %379 : vector<2x1xi1> to vector<2x32xi1>
      %381 = vector.broadcast %cst_91 : f32 to vector<2x32xf32>
      %382 = arith.select %380, %374, %381 : vector<2x32xi1>, vector<2x32xf32>
      %c0_92 = arith.constant 0 : index
      %c7 = arith.constant 7 : index
      %c0_93 = arith.constant 0 : index
      %c0_94 = arith.constant 0 : index
      %383 = vector.load %arg7[%c0_92, %c7, %c0_93, %c0_94] : memref<1x8x2x32xf32, #tpu.memory_space<vmem>>, vector<1x1x2x32xf32>
      %384 = vector.shape_cast %383 : vector<1x1x2x32xf32> to vector<2x32xf32>
      %385 = vector.shape_cast %382 : vector<2x32xf32> to vector<1x1x2x32xf32>
      tpu.vector_store %arg7[%c0_92, %c7, %c0_93, %c0_94], %385 {strides = array<i32>} : memref<1x8x2x32xf32, #tpu.memory_space<vmem>>, vector<1x1x2x32xf32>,
      %386 = vector.shape_cast %378 : vector<2x1xi1> to vector<2x1xi1>
      %387 = vector.broadcast %386 : vector<2x1xi1> to vector<2x32xi1>
      %388 = arith.select %387, %374, %342 : vector<2x32xi1>, vector<2x32xf32>
      %389 = vector.shape_cast %378 : vector<2x1xi1> to vector<2x1xi1>
      %390 = vector.broadcast %389 : vector<2x1xi1> to vector<2x32xi1>
      %391 = arith.select %390, %372, %345 : vector<2x32xi1>, vector<2x32xf32>
      %c0_95 = arith.constant 0 : index
      %c0_96 = arith.constant 0 : index
      %392 = vector.load %arg8[%c0_95, %c0_96] : memref<2x32xf32, #tpu.memory_space<vmem>>, vector<2x32xf32>
      tpu.vector_store %arg8[%c0_95, %c0_96], %388 {strides = array<i32>} : memref<2x32xf32, #tpu.memory_space<vmem>>, vector<2x32xf32>,
      %c0_97 = arith.constant 0 : index
      %c0_98 = arith.constant 0 : index
      %393 = vector.load %arg9[%c0_97, %c0_98] : memref<2x32xf32, #tpu.memory_space<vmem>>, vector<2x32xf32>
      tpu.vector_store %arg9[%c0_97, %c0_98], %391 {strides = array<i32>} : memref<2x32xf32, #tpu.memory_space<vmem>>, vector<2x32xf32>,
    } else {
    }
    %c1_i32 = arith.constant 1 : i32
    %19 = arith.cmpi eq, %arg0, %c1_i32 : i32
    %20 = arith.extui %19 : i1 to i32
    %c0_i32_17 = arith.constant 0 : i32
    %21 = arith.cmpi ne, %20, %c0_i32_17 : i32
    scf.if %21 {
      %c0_18 = arith.constant 0 : index
      %c0_19 = arith.constant 0 : index
      %22 = vector.load %arg8[%c0_18, %c0_19] : memref<2x32xf32, #tpu.memory_space<vmem>>, vector<2x32xf32>
      %c0_20 = arith.constant 0 : index
      %c0_21 = arith.constant 0 : index
      %23 = vector.load %arg9[%c0_20, %c0_21] : memref<2x32xf32, #tpu.memory_space<vmem>>, vector<2x32xf32>
      %24 = vector.extract_strided_slice %14 {offsets = [7, 0, 0], sizes = [1, 2, 128], strides = [1, 1, 1]} : vector<8x2x128xf32> to vector<1x2x128xf32>
      %25 = vector.shape_cast %24 : vector<1x2x128xf32> to vector<2x128xf32>
      %cst_22 = arith.constant dense<0.000000e+00> : vector<2x128xf32>
      %26 = tpu.matmul %22, %6, %cst_22 {dimension_numbers = #tpu.dot_dimension_numbers<[1], [0], [0], [1], [0, 0, 1, 1], [], []>} : vector<2x32xf32>, vector<32x128xf32>, vector<2x128xf32> -> vector<2x128xf32>
      %27 = arith.addf %25, %26 : vector<2x128xf32>
      %28 = vector.extract_strided_slice %27 {offsets = [0, 0], sizes = [2, 32], strides = [1, 1]} : vector<2x128xf32> to vector<2x32xf32>
      %29 = arith.negf %28 : vector<2x32xf32>
      %30 = math.exp %29 : vector<2x32xf32>
      %cst_23 = arith.constant 1.000000e+00 : f32
      %31 = vector.broadcast %cst_23 : f32 to vector<2x32xf32>
      %32 = arith.addf %31, %30 : vector<2x32xf32>
      %33 = arith.divf %31, %32 : vector<2x32xf32>
      %34 = vector.extract_strided_slice %27 {offsets = [0, 32], sizes = [2, 32], strides = [1, 1]} : vector<2x128xf32> to vector<2x32xf32>
      %35 = arith.negf %34 : vector<2x32xf32>
      %36 = math.exp %35 : vector<2x32xf32>
      %cst_24 = arith.constant 1.000000e+00 : f32
      %37 = vector.broadcast %cst_24 : f32 to vector<2x32xf32>
      %38 = arith.addf %37, %36 : vector<2x32xf32>
      %39 = arith.divf %37, %38 : vector<2x32xf32>
      %40 = vector.extract_strided_slice %27 {offsets = [0, 64], sizes = [2, 32], strides = [1, 1]} : vector<2x128xf32> to vector<2x32xf32>
      %41 = math.tanh %40 : vector<2x32xf32>
      %42 = vector.extract_strided_slice %27 {offsets = [0, 96], sizes = [2, 32], strides = [1, 1]} : vector<2x128xf32> to vector<2x32xf32>
      %43 = arith.negf %42 : vector<2x32xf32>
      %44 = math.exp %43 : vector<2x32xf32>
      %cst_25 = arith.constant 1.000000e+00 : f32
      %45 = vector.broadcast %cst_25 : f32 to vector<2x32xf32>
      %46 = arith.addf %45, %44 : vector<2x32xf32>
      %47 = arith.divf %45, %46 : vector<2x32xf32>
      %48 = arith.mulf %39, %23 : vector<2x32xf32>
      %49 = arith.mulf %33, %41 : vector<2x32xf32>
      %50 = arith.addf %48, %49 : vector<2x32xf32>
      %51 = math.tanh %50 : vector<2x32xf32>
      %52 = arith.mulf %47, %51 : vector<2x32xf32>
      %53 = vector.extract_strided_slice %15 {offsets = [7, 0, 0], sizes = [1, 2, 1], strides = [1, 1, 1]} : vector<8x2x1xf32> to vector<1x2x1xf32>
      %54 = vector.shape_cast %53 : vector<1x2x1xf32> to vector<2x1xf32>
      %cst_26 = arith.constant 0.000000e+00 : f32
      %55 = vector.broadcast %cst_26 : f32 to vector<2x1xf32>
      %56 = arith.cmpf ogt, %54, %55 : vector<2x1xf32>
      %cst_27 = arith.constant 0.000000e+00 : f32
      %57 = vector.shape_cast %56 : vector<2x1xi1> to vector<2x1xi1>
      %58 = vector.broadcast %57 : vector<2x1xi1> to vector<2x32xi1>
      %59 = vector.broadcast %cst_27 : f32 to vector<2x32xf32>
      %60 = arith.select %58, %52, %59 : vector<2x32xi1>, vector<2x32xf32>
      %c0_28 = arith.constant 0 : index
      %c7 = arith.constant 7 : index
      %c0_29 = arith.constant 0 : index
      %c0_30 = arith.constant 0 : index
      %61 = vector.load %arg7[%c0_28, %c7, %c0_29, %c0_30] : memref<1x8x2x32xf32, #tpu.memory_space<vmem>>, vector<1x1x2x32xf32>
      %62 = vector.shape_cast %61 : vector<1x1x2x32xf32> to vector<2x32xf32>
      %63 = vector.shape_cast %60 : vector<2x32xf32> to vector<1x1x2x32xf32>
      tpu.vector_store %arg7[%c0_28, %c7, %c0_29, %c0_30], %63 {strides = array<i32>} : memref<1x8x2x32xf32, #tpu.memory_space<vmem>>, vector<1x1x2x32xf32>,
      %64 = vector.shape_cast %56 : vector<2x1xi1> to vector<2x1xi1>
      %65 = vector.broadcast %64 : vector<2x1xi1> to vector<2x32xi1>
      %66 = arith.select %65, %52, %22 : vector<2x32xi1>, vector<2x32xf32>
      %67 = vector.shape_cast %56 : vector<2x1xi1> to vector<2x1xi1>
      %68 = vector.broadcast %67 : vector<2x1xi1> to vector<2x32xi1>
      %69 = arith.select %68, %50, %23 : vector<2x32xi1>, vector<2x32xf32>
      %70 = vector.extract_strided_slice %14 {offsets = [6, 0, 0], sizes = [1, 2, 128], strides = [1, 1, 1]} : vector<8x2x128xf32> to vector<1x2x128xf32>
      %71 = vector.shape_cast %70 : vector<1x2x128xf32> to vector<2x128xf32>
      %cst_31 = arith.constant dense<0.000000e+00> : vector<2x128xf32>
      %72 = tpu.matmul %66, %6, %cst_31 {dimension_numbers = #tpu.dot_dimension_numbers<[1], [0], [0], [1], [0, 0, 1, 1], [], []>} : vector<2x32xf32>, vector<32x128xf32>, vector<2x128xf32> -> vector<2x128xf32>
      %73 = arith.addf %71, %72 : vector<2x128xf32>
      %74 = vector.extract_strided_slice %73 {offsets = [0, 0], sizes = [2, 32], strides = [1, 1]} : vector<2x128xf32> to vector<2x32xf32>
      %75 = arith.negf %74 : vector<2x32xf32>
      %76 = math.exp %75 : vector<2x32xf32>
      %cst_32 = arith.constant 1.000000e+00 : f32
      %77 = vector.broadcast %cst_32 : f32 to vector<2x32xf32>
      %78 = arith.addf %77, %76 : vector<2x32xf32>
      %79 = arith.divf %77, %78 : vector<2x32xf32>
      %80 = vector.extract_strided_slice %73 {offsets = [0, 32], sizes = [2, 32], strides = [1, 1]} : vector<2x128xf32> to vector<2x32xf32>
      %81 = arith.negf %80 : vector<2x32xf32>
      %82 = math.exp %81 : vector<2x32xf32>
      %cst_33 = arith.constant 1.000000e+00 : f32
      %83 = vector.broadcast %cst_33 : f32 to vector<2x32xf32>
      %84 = arith.addf %83, %82 : vector<2x32xf32>
      %85 = arith.divf %83, %84 : vector<2x32xf32>
      %86 = vector.extract_strided_slice %73 {offsets = [0, 64], sizes = [2, 32], strides = [1, 1]} : vector<2x128xf32> to vector<2x32xf32>
      %87 = math.tanh %86 : vector<2x32xf32>
      %88 = vector.extract_strided_slice %73 {offsets = [0, 96], sizes = [2, 32], strides = [1, 1]} : vector<2x128xf32> to vector<2x32xf32>
      %89 = arith.negf %88 : vector<2x32xf32>
      %90 = math.exp %89 : vector<2x32xf32>
      %cst_34 = arith.constant 1.000000e+00 : f32
      %91 = vector.broadcast %cst_34 : f32 to vector<2x32xf32>
      %92 = arith.addf %91, %90 : vector<2x32xf32>
      %93 = arith.divf %91, %92 : vector<2x32xf32>
      %94 = arith.mulf %85, %69 : vector<2x32xf32>
      %95 = arith.mulf %79, %87 : vector<2x32xf32>
      %96 = arith.addf %94, %95 : vector<2x32xf32>
      %97 = math.tanh %96 : vector<2x32xf32>
      %98 = arith.mulf %93, %97 : vector<2x32xf32>
      %99 = vector.extract_strided_slice %15 {offsets = [6, 0, 0], sizes = [1, 2, 1], strides = [1, 1, 1]} : vector<8x2x1xf32> to vector<1x2x1xf32>
      %100 = vector.shape_cast %99 : vector<1x2x1xf32> to vector<2x1xf32>
      %cst_35 = arith.constant 0.000000e+00 : f32
      %101 = vector.broadcast %cst_35 : f32 to vector<2x1xf32>
      %102 = arith.cmpf ogt, %100, %101 : vector<2x1xf32>
      %cst_36 = arith.constant 0.000000e+00 : f32
      %103 = vector.shape_cast %102 : vector<2x1xi1> to vector<2x1xi1>
      %104 = vector.broadcast %103 : vector<2x1xi1> to vector<2x32xi1>
      %105 = vector.broadcast %cst_36 : f32 to vector<2x32xf32>
      %106 = arith.select %104, %98, %105 : vector<2x32xi1>, vector<2x32xf32>
      %c0_37 = arith.constant 0 : index
      %c6 = arith.constant 6 : index
      %c0_38 = arith.constant 0 : index
      %c0_39 = arith.constant 0 : index
      %107 = vector.load %arg7[%c0_37, %c6, %c0_38, %c0_39] : memref<1x8x2x32xf32, #tpu.memory_space<vmem>>, vector<1x1x2x32xf32>
      %108 = vector.shape_cast %107 : vector<1x1x2x32xf32> to vector<2x32xf32>
      %109 = vector.shape_cast %106 : vector<2x32xf32> to vector<1x1x2x32xf32>
      tpu.vector_store %arg7[%c0_37, %c6, %c0_38, %c0_39], %109 {strides = array<i32>} : memref<1x8x2x32xf32, #tpu.memory_space<vmem>>, vector<1x1x2x32xf32>,
      %110 = vector.shape_cast %102 : vector<2x1xi1> to vector<2x1xi1>
      %111 = vector.broadcast %110 : vector<2x1xi1> to vector<2x32xi1>
      %112 = arith.select %111, %98, %66 : vector<2x32xi1>, vector<2x32xf32>
      %113 = vector.shape_cast %102 : vector<2x1xi1> to vector<2x1xi1>
      %114 = vector.broadcast %113 : vector<2x1xi1> to vector<2x32xi1>
      %115 = arith.select %114, %96, %69 : vector<2x32xi1>, vector<2x32xf32>
      %116 = vector.extract_strided_slice %14 {offsets = [5, 0, 0], sizes = [1, 2, 128], strides = [1, 1, 1]} : vector<8x2x128xf32> to vector<1x2x128xf32>
      %117 = vector.shape_cast %116 : vector<1x2x128xf32> to vector<2x128xf32>
      %cst_40 = arith.constant dense<0.000000e+00> : vector<2x128xf32>
      %118 = tpu.matmul %112, %6, %cst_40 {dimension_numbers = #tpu.dot_dimension_numbers<[1], [0], [0], [1], [0, 0, 1, 1], [], []>} : vector<2x32xf32>, vector<32x128xf32>, vector<2x128xf32> -> vector<2x128xf32>
      %119 = arith.addf %117, %118 : vector<2x128xf32>
      %120 = vector.extract_strided_slice %119 {offsets = [0, 0], sizes = [2, 32], strides = [1, 1]} : vector<2x128xf32> to vector<2x32xf32>
      %121 = arith.negf %120 : vector<2x32xf32>
      %122 = math.exp %121 : vector<2x32xf32>
      %cst_41 = arith.constant 1.000000e+00 : f32
      %123 = vector.broadcast %cst_41 : f32 to vector<2x32xf32>
      %124 = arith.addf %123, %122 : vector<2x32xf32>
      %125 = arith.divf %123, %124 : vector<2x32xf32>
      %126 = vector.extract_strided_slice %119 {offsets = [0, 32], sizes = [2, 32], strides = [1, 1]} : vector<2x128xf32> to vector<2x32xf32>
      %127 = arith.negf %126 : vector<2x32xf32>
      %128 = math.exp %127 : vector<2x32xf32>
      %cst_42 = arith.constant 1.000000e+00 : f32
      %129 = vector.broadcast %cst_42 : f32 to vector<2x32xf32>
      %130 = arith.addf %129, %128 : vector<2x32xf32>
      %131 = arith.divf %129, %130 : vector<2x32xf32>
      %132 = vector.extract_strided_slice %119 {offsets = [0, 64], sizes = [2, 32], strides = [1, 1]} : vector<2x128xf32> to vector<2x32xf32>
      %133 = math.tanh %132 : vector<2x32xf32>
      %134 = vector.extract_strided_slice %119 {offsets = [0, 96], sizes = [2, 32], strides = [1, 1]} : vector<2x128xf32> to vector<2x32xf32>
      %135 = arith.negf %134 : vector<2x32xf32>
      %136 = math.exp %135 : vector<2x32xf32>
      %cst_43 = arith.constant 1.000000e+00 : f32
      %137 = vector.broadcast %cst_43 : f32 to vector<2x32xf32>
      %138 = arith.addf %137, %136 : vector<2x32xf32>
      %139 = arith.divf %137, %138 : vector<2x32xf32>
      %140 = arith.mulf %131, %115 : vector<2x32xf32>
      %141 = arith.mulf %125, %133 : vector<2x32xf32>
      %142 = arith.addf %140, %141 : vector<2x32xf32>
      %143 = math.tanh %142 : vector<2x32xf32>
      %144 = arith.mulf %139, %143 : vector<2x32xf32>
      %145 = vector.extract_strided_slice %15 {offsets = [5, 0, 0], sizes = [1, 2, 1], strides = [1, 1, 1]} : vector<8x2x1xf32> to vector<1x2x1xf32>
      %146 = vector.shape_cast %145 : vector<1x2x1xf32> to vector<2x1xf32>
      %cst_44 = arith.constant 0.000000e+00 : f32
      %147 = vector.broadcast %cst_44 : f32 to vector<2x1xf32>
      %148 = arith.cmpf ogt, %146, %147 : vector<2x1xf32>
      %cst_45 = arith.constant 0.000000e+00 : f32
      %149 = vector.shape_cast %148 : vector<2x1xi1> to vector<2x1xi1>
      %150 = vector.broadcast %149 : vector<2x1xi1> to vector<2x32xi1>
      %151 = vector.broadcast %cst_45 : f32 to vector<2x32xf32>
      %152 = arith.select %150, %144, %151 : vector<2x32xi1>, vector<2x32xf32>
      %c0_46 = arith.constant 0 : index
      %c5 = arith.constant 5 : index
      %c0_47 = arith.constant 0 : index
      %c0_48 = arith.constant 0 : index
      %153 = vector.load %arg7[%c0_46, %c5, %c0_47, %c0_48] : memref<1x8x2x32xf32, #tpu.memory_space<vmem>>, vector<1x1x2x32xf32>
      %154 = vector.shape_cast %153 : vector<1x1x2x32xf32> to vector<2x32xf32>
      %155 = vector.shape_cast %152 : vector<2x32xf32> to vector<1x1x2x32xf32>
      tpu.vector_store %arg7[%c0_46, %c5, %c0_47, %c0_48], %155 {strides = array<i32>} : memref<1x8x2x32xf32, #tpu.memory_space<vmem>>, vector<1x1x2x32xf32>,
      %156 = vector.shape_cast %148 : vector<2x1xi1> to vector<2x1xi1>
      %157 = vector.broadcast %156 : vector<2x1xi1> to vector<2x32xi1>
      %158 = arith.select %157, %144, %112 : vector<2x32xi1>, vector<2x32xf32>
      %159 = vector.shape_cast %148 : vector<2x1xi1> to vector<2x1xi1>
      %160 = vector.broadcast %159 : vector<2x1xi1> to vector<2x32xi1>
      %161 = arith.select %160, %142, %115 : vector<2x32xi1>, vector<2x32xf32>
      %162 = vector.extract_strided_slice %14 {offsets = [4, 0, 0], sizes = [1, 2, 128], strides = [1, 1, 1]} : vector<8x2x128xf32> to vector<1x2x128xf32>
      %163 = vector.shape_cast %162 : vector<1x2x128xf32> to vector<2x128xf32>
      %cst_49 = arith.constant dense<0.000000e+00> : vector<2x128xf32>
      %164 = tpu.matmul %158, %6, %cst_49 {dimension_numbers = #tpu.dot_dimension_numbers<[1], [0], [0], [1], [0, 0, 1, 1], [], []>} : vector<2x32xf32>, vector<32x128xf32>, vector<2x128xf32> -> vector<2x128xf32>
      %165 = arith.addf %163, %164 : vector<2x128xf32>
      %166 = vector.extract_strided_slice %165 {offsets = [0, 0], sizes = [2, 32], strides = [1, 1]} : vector<2x128xf32> to vector<2x32xf32>
      %167 = arith.negf %166 : vector<2x32xf32>
      %168 = math.exp %167 : vector<2x32xf32>
      %cst_50 = arith.constant 1.000000e+00 : f32
      %169 = vector.broadcast %cst_50 : f32 to vector<2x32xf32>
      %170 = arith.addf %169, %168 : vector<2x32xf32>
      %171 = arith.divf %169, %170 : vector<2x32xf32>
      %172 = vector.extract_strided_slice %165 {offsets = [0, 32], sizes = [2, 32], strides = [1, 1]} : vector<2x128xf32> to vector<2x32xf32>
      %173 = arith.negf %172 : vector<2x32xf32>
      %174 = math.exp %173 : vector<2x32xf32>
      %cst_51 = arith.constant 1.000000e+00 : f32
      %175 = vector.broadcast %cst_51 : f32 to vector<2x32xf32>
      %176 = arith.addf %175, %174 : vector<2x32xf32>
      %177 = arith.divf %175, %176 : vector<2x32xf32>
      %178 = vector.extract_strided_slice %165 {offsets = [0, 64], sizes = [2, 32], strides = [1, 1]} : vector<2x128xf32> to vector<2x32xf32>
      %179 = math.tanh %178 : vector<2x32xf32>
      %180 = vector.extract_strided_slice %165 {offsets = [0, 96], sizes = [2, 32], strides = [1, 1]} : vector<2x128xf32> to vector<2x32xf32>
      %181 = arith.negf %180 : vector<2x32xf32>
      %182 = math.exp %181 : vector<2x32xf32>
      %cst_52 = arith.constant 1.000000e+00 : f32
      %183 = vector.broadcast %cst_52 : f32 to vector<2x32xf32>
      %184 = arith.addf %183, %182 : vector<2x32xf32>
      %185 = arith.divf %183, %184 : vector<2x32xf32>
      %186 = arith.mulf %177, %161 : vector<2x32xf32>
      %187 = arith.mulf %171, %179 : vector<2x32xf32>
      %188 = arith.addf %186, %187 : vector<2x32xf32>
      %189 = math.tanh %188 : vector<2x32xf32>
      %190 = arith.mulf %185, %189 : vector<2x32xf32>
      %191 = vector.extract_strided_slice %15 {offsets = [4, 0, 0], sizes = [1, 2, 1], strides = [1, 1, 1]} : vector<8x2x1xf32> to vector<1x2x1xf32>
      %192 = vector.shape_cast %191 : vector<1x2x1xf32> to vector<2x1xf32>
      %cst_53 = arith.constant 0.000000e+00 : f32
      %193 = vector.broadcast %cst_53 : f32 to vector<2x1xf32>
      %194 = arith.cmpf ogt, %192, %193 : vector<2x1xf32>
      %cst_54 = arith.constant 0.000000e+00 : f32
      %195 = vector.shape_cast %194 : vector<2x1xi1> to vector<2x1xi1>
      %196 = vector.broadcast %195 : vector<2x1xi1> to vector<2x32xi1>
      %197 = vector.broadcast %cst_54 : f32 to vector<2x32xf32>
      %198 = arith.select %196, %190, %197 : vector<2x32xi1>, vector<2x32xf32>
      %c0_55 = arith.constant 0 : index
      %c4 = arith.constant 4 : index
      %c0_56 = arith.constant 0 : index
      %c0_57 = arith.constant 0 : index
      %199 = vector.load %arg7[%c0_55, %c4, %c0_56, %c0_57] : memref<1x8x2x32xf32, #tpu.memory_space<vmem>>, vector<1x1x2x32xf32>
      %200 = vector.shape_cast %199 : vector<1x1x2x32xf32> to vector<2x32xf32>
      %201 = vector.shape_cast %198 : vector<2x32xf32> to vector<1x1x2x32xf32>
      tpu.vector_store %arg7[%c0_55, %c4, %c0_56, %c0_57], %201 {strides = array<i32>} : memref<1x8x2x32xf32, #tpu.memory_space<vmem>>, vector<1x1x2x32xf32>,
      %202 = vector.shape_cast %194 : vector<2x1xi1> to vector<2x1xi1>
      %203 = vector.broadcast %202 : vector<2x1xi1> to vector<2x32xi1>
      %204 = arith.select %203, %190, %158 : vector<2x32xi1>, vector<2x32xf32>
      %205 = vector.shape_cast %194 : vector<2x1xi1> to vector<2x1xi1>
      %206 = vector.broadcast %205 : vector<2x1xi1> to vector<2x32xi1>
      %207 = arith.select %206, %188, %161 : vector<2x32xi1>, vector<2x32xf32>
      %208 = vector.extract_strided_slice %14 {offsets = [3, 0, 0], sizes = [1, 2, 128], strides = [1, 1, 1]} : vector<8x2x128xf32> to vector<1x2x128xf32>
      %209 = vector.shape_cast %208 : vector<1x2x128xf32> to vector<2x128xf32>
      %cst_58 = arith.constant dense<0.000000e+00> : vector<2x128xf32>
      %210 = tpu.matmul %204, %6, %cst_58 {dimension_numbers = #tpu.dot_dimension_numbers<[1], [0], [0], [1], [0, 0, 1, 1], [], []>} : vector<2x32xf32>, vector<32x128xf32>, vector<2x128xf32> -> vector<2x128xf32>
      %211 = arith.addf %209, %210 : vector<2x128xf32>
      %212 = vector.extract_strided_slice %211 {offsets = [0, 0], sizes = [2, 32], strides = [1, 1]} : vector<2x128xf32> to vector<2x32xf32>
      %213 = arith.negf %212 : vector<2x32xf32>
      %214 = math.exp %213 : vector<2x32xf32>
      %cst_59 = arith.constant 1.000000e+00 : f32
      %215 = vector.broadcast %cst_59 : f32 to vector<2x32xf32>
      %216 = arith.addf %215, %214 : vector<2x32xf32>
      %217 = arith.divf %215, %216 : vector<2x32xf32>
      %218 = vector.extract_strided_slice %211 {offsets = [0, 32], sizes = [2, 32], strides = [1, 1]} : vector<2x128xf32> to vector<2x32xf32>
      %219 = arith.negf %218 : vector<2x32xf32>
      %220 = math.exp %219 : vector<2x32xf32>
      %cst_60 = arith.constant 1.000000e+00 : f32
      %221 = vector.broadcast %cst_60 : f32 to vector<2x32xf32>
      %222 = arith.addf %221, %220 : vector<2x32xf32>
      %223 = arith.divf %221, %222 : vector<2x32xf32>
      %224 = vector.extract_strided_slice %211 {offsets = [0, 64], sizes = [2, 32], strides = [1, 1]} : vector<2x128xf32> to vector<2x32xf32>
      %225 = math.tanh %224 : vector<2x32xf32>
      %226 = vector.extract_strided_slice %211 {offsets = [0, 96], sizes = [2, 32], strides = [1, 1]} : vector<2x128xf32> to vector<2x32xf32>
      %227 = arith.negf %226 : vector<2x32xf32>
      %228 = math.exp %227 : vector<2x32xf32>
      %cst_61 = arith.constant 1.000000e+00 : f32
      %229 = vector.broadcast %cst_61 : f32 to vector<2x32xf32>
      %230 = arith.addf %229, %228 : vector<2x32xf32>
      %231 = arith.divf %229, %230 : vector<2x32xf32>
      %232 = arith.mulf %223, %207 : vector<2x32xf32>
      %233 = arith.mulf %217, %225 : vector<2x32xf32>
      %234 = arith.addf %232, %233 : vector<2x32xf32>
      %235 = math.tanh %234 : vector<2x32xf32>
      %236 = arith.mulf %231, %235 : vector<2x32xf32>
      %237 = vector.extract_strided_slice %15 {offsets = [3, 0, 0], sizes = [1, 2, 1], strides = [1, 1, 1]} : vector<8x2x1xf32> to vector<1x2x1xf32>
      %238 = vector.shape_cast %237 : vector<1x2x1xf32> to vector<2x1xf32>
      %cst_62 = arith.constant 0.000000e+00 : f32
      %239 = vector.broadcast %cst_62 : f32 to vector<2x1xf32>
      %240 = arith.cmpf ogt, %238, %239 : vector<2x1xf32>
      %cst_63 = arith.constant 0.000000e+00 : f32
      %241 = vector.shape_cast %240 : vector<2x1xi1> to vector<2x1xi1>
      %242 = vector.broadcast %241 : vector<2x1xi1> to vector<2x32xi1>
      %243 = vector.broadcast %cst_63 : f32 to vector<2x32xf32>
      %244 = arith.select %242, %236, %243 : vector<2x32xi1>, vector<2x32xf32>
      %c0_64 = arith.constant 0 : index
      %c3 = arith.constant 3 : index
      %c0_65 = arith.constant 0 : index
      %c0_66 = arith.constant 0 : index
      %245 = vector.load %arg7[%c0_64, %c3, %c0_65, %c0_66] : memref<1x8x2x32xf32, #tpu.memory_space<vmem>>, vector<1x1x2x32xf32>
      %246 = vector.shape_cast %245 : vector<1x1x2x32xf32> to vector<2x32xf32>
      %247 = vector.shape_cast %244 : vector<2x32xf32> to vector<1x1x2x32xf32>
      tpu.vector_store %arg7[%c0_64, %c3, %c0_65, %c0_66], %247 {strides = array<i32>} : memref<1x8x2x32xf32, #tpu.memory_space<vmem>>, vector<1x1x2x32xf32>,
      %248 = vector.shape_cast %240 : vector<2x1xi1> to vector<2x1xi1>
      %249 = vector.broadcast %248 : vector<2x1xi1> to vector<2x32xi1>
      %250 = arith.select %249, %236, %204 : vector<2x32xi1>, vector<2x32xf32>
      %251 = vector.shape_cast %240 : vector<2x1xi1> to vector<2x1xi1>
      %252 = vector.broadcast %251 : vector<2x1xi1> to vector<2x32xi1>
      %253 = arith.select %252, %234, %207 : vector<2x32xi1>, vector<2x32xf32>
      %254 = vector.extract_strided_slice %14 {offsets = [2, 0, 0], sizes = [1, 2, 128], strides = [1, 1, 1]} : vector<8x2x128xf32> to vector<1x2x128xf32>
      %255 = vector.shape_cast %254 : vector<1x2x128xf32> to vector<2x128xf32>
      %cst_67 = arith.constant dense<0.000000e+00> : vector<2x128xf32>
      %256 = tpu.matmul %250, %6, %cst_67 {dimension_numbers = #tpu.dot_dimension_numbers<[1], [0], [0], [1], [0, 0, 1, 1], [], []>} : vector<2x32xf32>, vector<32x128xf32>, vector<2x128xf32> -> vector<2x128xf32>
      %257 = arith.addf %255, %256 : vector<2x128xf32>
      %258 = vector.extract_strided_slice %257 {offsets = [0, 0], sizes = [2, 32], strides = [1, 1]} : vector<2x128xf32> to vector<2x32xf32>
      %259 = arith.negf %258 : vector<2x32xf32>
      %260 = math.exp %259 : vector<2x32xf32>
      %cst_68 = arith.constant 1.000000e+00 : f32
      %261 = vector.broadcast %cst_68 : f32 to vector<2x32xf32>
      %262 = arith.addf %261, %260 : vector<2x32xf32>
      %263 = arith.divf %261, %262 : vector<2x32xf32>
      %264 = vector.extract_strided_slice %257 {offsets = [0, 32], sizes = [2, 32], strides = [1, 1]} : vector<2x128xf32> to vector<2x32xf32>
      %265 = arith.negf %264 : vector<2x32xf32>
      %266 = math.exp %265 : vector<2x32xf32>
      %cst_69 = arith.constant 1.000000e+00 : f32
      %267 = vector.broadcast %cst_69 : f32 to vector<2x32xf32>
      %268 = arith.addf %267, %266 : vector<2x32xf32>
      %269 = arith.divf %267, %268 : vector<2x32xf32>
      %270 = vector.extract_strided_slice %257 {offsets = [0, 64], sizes = [2, 32], strides = [1, 1]} : vector<2x128xf32> to vector<2x32xf32>
      %271 = math.tanh %270 : vector<2x32xf32>
      %272 = vector.extract_strided_slice %257 {offsets = [0, 96], sizes = [2, 32], strides = [1, 1]} : vector<2x128xf32> to vector<2x32xf32>
      %273 = arith.negf %272 : vector<2x32xf32>
      %274 = math.exp %273 : vector<2x32xf32>
      %cst_70 = arith.constant 1.000000e+00 : f32
      %275 = vector.broadcast %cst_70 : f32 to vector<2x32xf32>
      %276 = arith.addf %275, %274 : vector<2x32xf32>
      %277 = arith.divf %275, %276 : vector<2x32xf32>
      %278 = arith.mulf %269, %253 : vector<2x32xf32>
      %279 = arith.mulf %263, %271 : vector<2x32xf32>
      %280 = arith.addf %278, %279 : vector<2x32xf32>
      %281 = math.tanh %280 : vector<2x32xf32>
      %282 = arith.mulf %277, %281 : vector<2x32xf32>
      %283 = vector.extract_strided_slice %15 {offsets = [2, 0, 0], sizes = [1, 2, 1], strides = [1, 1, 1]} : vector<8x2x1xf32> to vector<1x2x1xf32>
      %284 = vector.shape_cast %283 : vector<1x2x1xf32> to vector<2x1xf32>
      %cst_71 = arith.constant 0.000000e+00 : f32
      %285 = vector.broadcast %cst_71 : f32 to vector<2x1xf32>
      %286 = arith.cmpf ogt, %284, %285 : vector<2x1xf32>
      %cst_72 = arith.constant 0.000000e+00 : f32
      %287 = vector.shape_cast %286 : vector<2x1xi1> to vector<2x1xi1>
      %288 = vector.broadcast %287 : vector<2x1xi1> to vector<2x32xi1>
      %289 = vector.broadcast %cst_72 : f32 to vector<2x32xf32>
      %290 = arith.select %288, %282, %289 : vector<2x32xi1>, vector<2x32xf32>
      %c0_73 = arith.constant 0 : index
      %c2 = arith.constant 2 : index
      %c0_74 = arith.constant 0 : index
      %c0_75 = arith.constant 0 : index
      %291 = vector.load %arg7[%c0_73, %c2, %c0_74, %c0_75] : memref<1x8x2x32xf32, #tpu.memory_space<vmem>>, vector<1x1x2x32xf32>
      %292 = vector.shape_cast %291 : vector<1x1x2x32xf32> to vector<2x32xf32>
      %293 = vector.shape_cast %290 : vector<2x32xf32> to vector<1x1x2x32xf32>
      tpu.vector_store %arg7[%c0_73, %c2, %c0_74, %c0_75], %293 {strides = array<i32>} : memref<1x8x2x32xf32, #tpu.memory_space<vmem>>, vector<1x1x2x32xf32>,
      %294 = vector.shape_cast %286 : vector<2x1xi1> to vector<2x1xi1>
      %295 = vector.broadcast %294 : vector<2x1xi1> to vector<2x32xi1>
      %296 = arith.select %295, %282, %250 : vector<2x32xi1>, vector<2x32xf32>
      %297 = vector.shape_cast %286 : vector<2x1xi1> to vector<2x1xi1>
      %298 = vector.broadcast %297 : vector<2x1xi1> to vector<2x32xi1>
      %299 = arith.select %298, %280, %253 : vector<2x32xi1>, vector<2x32xf32>
      %300 = vector.extract_strided_slice %14 {offsets = [1, 0, 0], sizes = [1, 2, 128], strides = [1, 1, 1]} : vector<8x2x128xf32> to vector<1x2x128xf32>
      %301 = vector.shape_cast %300 : vector<1x2x128xf32> to vector<2x128xf32>
      %cst_76 = arith.constant dense<0.000000e+00> : vector<2x128xf32>
      %302 = tpu.matmul %296, %6, %cst_76 {dimension_numbers = #tpu.dot_dimension_numbers<[1], [0], [0], [1], [0, 0, 1, 1], [], []>} : vector<2x32xf32>, vector<32x128xf32>, vector<2x128xf32> -> vector<2x128xf32>
      %303 = arith.addf %301, %302 : vector<2x128xf32>
      %304 = vector.extract_strided_slice %303 {offsets = [0, 0], sizes = [2, 32], strides = [1, 1]} : vector<2x128xf32> to vector<2x32xf32>
      %305 = arith.negf %304 : vector<2x32xf32>
      %306 = math.exp %305 : vector<2x32xf32>
      %cst_77 = arith.constant 1.000000e+00 : f32
      %307 = vector.broadcast %cst_77 : f32 to vector<2x32xf32>
      %308 = arith.addf %307, %306 : vector<2x32xf32>
      %309 = arith.divf %307, %308 : vector<2x32xf32>
      %310 = vector.extract_strided_slice %303 {offsets = [0, 32], sizes = [2, 32], strides = [1, 1]} : vector<2x128xf32> to vector<2x32xf32>
      %311 = arith.negf %310 : vector<2x32xf32>
      %312 = math.exp %311 : vector<2x32xf32>
      %cst_78 = arith.constant 1.000000e+00 : f32
      %313 = vector.broadcast %cst_78 : f32 to vector<2x32xf32>
      %314 = arith.addf %313, %312 : vector<2x32xf32>
      %315 = arith.divf %313, %314 : vector<2x32xf32>
      %316 = vector.extract_strided_slice %303 {offsets = [0, 64], sizes = [2, 32], strides = [1, 1]} : vector<2x128xf32> to vector<2x32xf32>
      %317 = math.tanh %316 : vector<2x32xf32>
      %318 = vector.extract_strided_slice %303 {offsets = [0, 96], sizes = [2, 32], strides = [1, 1]} : vector<2x128xf32> to vector<2x32xf32>
      %319 = arith.negf %318 : vector<2x32xf32>
      %320 = math.exp %319 : vector<2x32xf32>
      %cst_79 = arith.constant 1.000000e+00 : f32
      %321 = vector.broadcast %cst_79 : f32 to vector<2x32xf32>
      %322 = arith.addf %321, %320 : vector<2x32xf32>
      %323 = arith.divf %321, %322 : vector<2x32xf32>
      %324 = arith.mulf %315, %299 : vector<2x32xf32>
      %325 = arith.mulf %309, %317 : vector<2x32xf32>
      %326 = arith.addf %324, %325 : vector<2x32xf32>
      %327 = math.tanh %326 : vector<2x32xf32>
      %328 = arith.mulf %323, %327 : vector<2x32xf32>
      %329 = vector.extract_strided_slice %15 {offsets = [1, 0, 0], sizes = [1, 2, 1], strides = [1, 1, 1]} : vector<8x2x1xf32> to vector<1x2x1xf32>
      %330 = vector.shape_cast %329 : vector<1x2x1xf32> to vector<2x1xf32>
      %cst_80 = arith.constant 0.000000e+00 : f32
      %331 = vector.broadcast %cst_80 : f32 to vector<2x1xf32>
      %332 = arith.cmpf ogt, %330, %331 : vector<2x1xf32>
      %cst_81 = arith.constant 0.000000e+00 : f32
      %333 = vector.shape_cast %332 : vector<2x1xi1> to vector<2x1xi1>
      %334 = vector.broadcast %333 : vector<2x1xi1> to vector<2x32xi1>
      %335 = vector.broadcast %cst_81 : f32 to vector<2x32xf32>
      %336 = arith.select %334, %328, %335 : vector<2x32xi1>, vector<2x32xf32>
      %c0_82 = arith.constant 0 : index
      %c1 = arith.constant 1 : index
      %c0_83 = arith.constant 0 : index
      %c0_84 = arith.constant 0 : index
      %337 = vector.load %arg7[%c0_82, %c1, %c0_83, %c0_84] : memref<1x8x2x32xf32, #tpu.memory_space<vmem>>, vector<1x1x2x32xf32>
      %338 = vector.shape_cast %337 : vector<1x1x2x32xf32> to vector<2x32xf32>
      %339 = vector.shape_cast %336 : vector<2x32xf32> to vector<1x1x2x32xf32>
      tpu.vector_store %arg7[%c0_82, %c1, %c0_83, %c0_84], %339 {strides = array<i32>} : memref<1x8x2x32xf32, #tpu.memory_space<vmem>>, vector<1x1x2x32xf32>,
      %340 = vector.shape_cast %332 : vector<2x1xi1> to vector<2x1xi1>
      %341 = vector.broadcast %340 : vector<2x1xi1> to vector<2x32xi1>
      %342 = arith.select %341, %328, %296 : vector<2x32xi1>, vector<2x32xf32>
      %343 = vector.shape_cast %332 : vector<2x1xi1> to vector<2x1xi1>
      %344 = vector.broadcast %343 : vector<2x1xi1> to vector<2x32xi1>
      %345 = arith.select %344, %326, %299 : vector<2x32xi1>, vector<2x32xf32>
      %346 = vector.extract_strided_slice %14 {offsets = [0, 0, 0], sizes = [1, 2, 128], strides = [1, 1, 1]} : vector<8x2x128xf32> to vector<1x2x128xf32>
      %347 = vector.shape_cast %346 : vector<1x2x128xf32> to vector<2x128xf32>
      %cst_85 = arith.constant dense<0.000000e+00> : vector<2x128xf32>
      %348 = tpu.matmul %342, %6, %cst_85 {dimension_numbers = #tpu.dot_dimension_numbers<[1], [0], [0], [1], [0, 0, 1, 1], [], []>} : vector<2x32xf32>, vector<32x128xf32>, vector<2x128xf32> -> vector<2x128xf32>
      %349 = arith.addf %347, %348 : vector<2x128xf32>
      %350 = vector.extract_strided_slice %349 {offsets = [0, 0], sizes = [2, 32], strides = [1, 1]} : vector<2x128xf32> to vector<2x32xf32>
      %351 = arith.negf %350 : vector<2x32xf32>
      %352 = math.exp %351 : vector<2x32xf32>
      %cst_86 = arith.constant 1.000000e+00 : f32
      %353 = vector.broadcast %cst_86 : f32 to vector<2x32xf32>
      %354 = arith.addf %353, %352 : vector<2x32xf32>
      %355 = arith.divf %353, %354 : vector<2x32xf32>
      %356 = vector.extract_strided_slice %349 {offsets = [0, 32], sizes = [2, 32], strides = [1, 1]} : vector<2x128xf32> to vector<2x32xf32>
      %357 = arith.negf %356 : vector<2x32xf32>
      %358 = math.exp %357 : vector<2x32xf32>
      %cst_87 = arith.constant 1.000000e+00 : f32
      %359 = vector.broadcast %cst_87 : f32 to vector<2x32xf32>
      %360 = arith.addf %359, %358 : vector<2x32xf32>
      %361 = arith.divf %359, %360 : vector<2x32xf32>
      %362 = vector.extract_strided_slice %349 {offsets = [0, 64], sizes = [2, 32], strides = [1, 1]} : vector<2x128xf32> to vector<2x32xf32>
      %363 = math.tanh %362 : vector<2x32xf32>
      %364 = vector.extract_strided_slice %349 {offsets = [0, 96], sizes = [2, 32], strides = [1, 1]} : vector<2x128xf32> to vector<2x32xf32>
      %365 = arith.negf %364 : vector<2x32xf32>
      %366 = math.exp %365 : vector<2x32xf32>
      %cst_88 = arith.constant 1.000000e+00 : f32
      %367 = vector.broadcast %cst_88 : f32 to vector<2x32xf32>
      %368 = arith.addf %367, %366 : vector<2x32xf32>
      %369 = arith.divf %367, %368 : vector<2x32xf32>
      %370 = arith.mulf %361, %345 : vector<2x32xf32>
      %371 = arith.mulf %355, %363 : vector<2x32xf32>
      %372 = arith.addf %370, %371 : vector<2x32xf32>
      %373 = math.tanh %372 : vector<2x32xf32>
      %374 = arith.mulf %369, %373 : vector<2x32xf32>
      %375 = vector.extract_strided_slice %15 {offsets = [0, 0, 0], sizes = [1, 2, 1], strides = [1, 1, 1]} : vector<8x2x1xf32> to vector<1x2x1xf32>
      %376 = vector.shape_cast %375 : vector<1x2x1xf32> to vector<2x1xf32>
      %cst_89 = arith.constant 0.000000e+00 : f32
      %377 = vector.broadcast %cst_89 : f32 to vector<2x1xf32>
      %378 = arith.cmpf ogt, %376, %377 : vector<2x1xf32>
      %cst_90 = arith.constant 0.000000e+00 : f32
      %379 = vector.shape_cast %378 : vector<2x1xi1> to vector<2x1xi1>
      %380 = vector.broadcast %379 : vector<2x1xi1> to vector<2x32xi1>
      %381 = vector.broadcast %cst_90 : f32 to vector<2x32xf32>
      %382 = arith.select %380, %374, %381 : vector<2x32xi1>, vector<2x32xf32>
      %c0_91 = arith.constant 0 : index
      %c0_92 = arith.constant 0 : index
      %c0_93 = arith.constant 0 : index
      %c0_94 = arith.constant 0 : index
      %383 = vector.load %arg7[%c0_91, %c0_92, %c0_93, %c0_94] : memref<1x8x2x32xf32, #tpu.memory_space<vmem>>, vector<1x1x2x32xf32>
      %384 = vector.shape_cast %383 : vector<1x1x2x32xf32> to vector<2x32xf32>
      %385 = vector.shape_cast %382 : vector<2x32xf32> to vector<1x1x2x32xf32>
      tpu.vector_store %arg7[%c0_91, %c0_92, %c0_93, %c0_94], %385 {strides = array<i32>} : memref<1x8x2x32xf32, #tpu.memory_space<vmem>>, vector<1x1x2x32xf32>,
      %386 = vector.shape_cast %378 : vector<2x1xi1> to vector<2x1xi1>
      %387 = vector.broadcast %386 : vector<2x1xi1> to vector<2x32xi1>
      %388 = arith.select %387, %374, %342 : vector<2x32xi1>, vector<2x32xf32>
      %389 = vector.shape_cast %378 : vector<2x1xi1> to vector<2x1xi1>
      %390 = vector.broadcast %389 : vector<2x1xi1> to vector<2x32xi1>
      %391 = arith.select %390, %372, %345 : vector<2x32xi1>, vector<2x32xf32>
      %c0_95 = arith.constant 0 : index
      %c0_96 = arith.constant 0 : index
      %392 = vector.load %arg8[%c0_95, %c0_96] : memref<2x32xf32, #tpu.memory_space<vmem>>, vector<2x32xf32>
      tpu.vector_store %arg8[%c0_95, %c0_96], %388 {strides = array<i32>} : memref<2x32xf32, #tpu.memory_space<vmem>>, vector<2x32xf32>,
      %c0_97 = arith.constant 0 : index
      %c0_98 = arith.constant 0 : index
      %393 = vector.load %arg9[%c0_97, %c0_98] : memref<2x32xf32, #tpu.memory_space<vmem>>, vector<2x32xf32>
      tpu.vector_store %arg9[%c0_97, %c0_98], %391 {strides = array<i32>} : memref<2x32xf32, #tpu.memory_space<vmem>>, vector<2x32xf32>,
    } else {
    }
    return
  }
  func.func @transform_0(%arg0: i32, %arg1: i32) -> (i32, i32, i32) {
    %c0_i32 = arith.constant 0 : i32
    %0 = arith.cmpi eq, %arg0, %c0_i32 : i32
    %c0_i32_0 = arith.constant 0 : i32
    %1 = arith.subi %c0_i32_0, %arg1 : i32
    %2 = arith.select %0, %arg1, %1 : i32
    %c0_i32_1 = arith.constant 0 : i32
    %c0_i32_2 = arith.constant 0 : i32
    %c0_i32_3 = arith.constant 0 : i32
    return %2, %c0_i32_1, %c0_i32_2 : i32, i32, i32
  }
  func.func @transform_1(%arg0: i32, %arg1: i32) -> (i32, i32, i32) {
    %c0_i32 = arith.constant 0 : i32
    %0 = arith.cmpi eq, %arg0, %c0_i32 : i32
    %c0_i32_0 = arith.constant 0 : i32
    %1 = arith.subi %c0_i32_0, %arg1 : i32
    %2 = arith.select %0, %arg1, %1 : i32
    %c0_i32_1 = arith.constant 0 : i32
    %c0_i32_2 = arith.constant 0 : i32
    %c0_i32_3 = arith.constant 0 : i32
    return %2, %c0_i32_1, %c0_i32_2 : i32, i32, i32
  }
  func.func @transform_2(%arg0: i32, %arg1: i32) -> (i32, i32, i32) {
    %c0_i32 = arith.constant 0 : i32
    %c0_i32_0 = arith.constant 0 : i32
    %c0_i32_1 = arith.constant 0 : i32
    return %arg0, %c0_i32, %c0_i32_0 : i32, i32, i32
  }
  func.func @transform_3(%arg0: i32, %arg1: i32) -> (i32, i32, i32) {
    %c0_i32 = arith.constant 0 : i32
    %c0_i32_0 = arith.constant 0 : i32
    %c0_i32_1 = arith.constant 0 : i32
    return %arg0, %c0_i32, %c0_i32_0 : i32, i32, i32
  }
  func.func @transform_4(%arg0: i32, %arg1: i32) -> (i32, i32, i32) {
    %c0_i32 = arith.constant 0 : i32
    %c0_i32_0 = arith.constant 0 : i32
    %c0_i32_1 = arith.constant 0 : i32
    return %arg0, %c0_i32, %c0_i32_0 : i32, i32, i32
  }
  func.func @transform_5(%arg0: i32, %arg1: i32) -> (i32, i32, i32, i32) {
    %c0_i32 = arith.constant 0 : i32
    %0 = arith.cmpi eq, %arg0, %c0_i32 : i32
    %c0_i32_0 = arith.constant 0 : i32
    %1 = arith.subi %c0_i32_0, %arg1 : i32
    %2 = arith.select %0, %arg1, %1 : i32
    %c0_i32_1 = arith.constant 0 : i32
    %c0_i32_2 = arith.constant 0 : i32
    %c0_i32_3 = arith.constant 0 : i32
    return %arg0, %2, %c0_i32_1, %c0_i32_2 : i32, i32, i32, i32
  }
}

</mosaic_0001>

<bundles_post_ra>
// kernel: meshprobenet_forward.5
= control target key start
LH: loop header
LB: loop body
LE: loop exit
PB: predicated region body
PF: predicated region fallthrough
CT: control target
= control target key end

     0   :  { %v400_v3 = vmov 0.0|0.0   ;;  %vm401_vm0 = vmmov 0   ;;  %v402_v11 = vmov 0.0   ;;  %s567_s0 = inlined_call_operand.vmem [shape: f32[2,128], index: 0, kind: input, shape index: {}]   ;;  %s568_s1 = inlined_call_operand.vmem [shape: f32[2,128], index: 1, kind: input, shape index: {}]   ;;  %s569_s2 = inlined_call_operand.vmem [shape: f32[128,16], index: 2, kind: input, shape index: {}]   ;;  %s570_s3 = inlined_call_operand.vmem [shape: f32[128,16], index: 3, kind: input, shape index: {}]   ;;  %s571_s4 = inlined_call_operand.vmem [shape: f32[1,16], index: 4, kind: input, shape index: {}]   ;;  %s572_s5 = inlined_call_operand.hbm [shape: f32[2,16], index: 5, kind: output, shape index: {}]  }
   0x1   :  { %v39_v0 = vld [vmem:[%s570_s3] sm:$0xff]  ;;  %v40_v1 = vld [vmem:[%s570_s3 + $0x8] sm:$0xff]  ;;  %324 = vmatprep.subr.bf16.mxu0 %v400_v3  ;;  %348 = vmatprep.subr.bf16.mxu1 %v400_v3  ;;  %v41_v6 = vld [vmem:[%s570_s3 + $0x10] sm:$0xff] }
   0x2   :  { %v22_v2 = vld [vmem:[%s569_s2] sm:$0xff]  ;;  %v325_v4 = vpack.c.bf16 %v40_v1, %v39_v0  ;;  %v23_v5 = vld [vmem:[%s569_s2 + $0x8] sm:$0xff]  ;;  %v42_v7 = vld [vmem:[%s570_s3 + $0x18] sm:$0xff]  ;;  %286 = vmatprep.mubr.msk.f32.mxu0 %vm401_vm0, %v402_v11  ;;  %321 = vmatprep.mubr.msk.f32.mxu1 %vm401_vm0, %v402_v11 }
   0x3   :  { %v349_v8 = vpack.c.bf16 %v23_v5, %v22_v2  ;;  %v24_v9 = vld [vmem:[%s569_s2 + $0x10] sm:$0xff]  ;;  %v25_v10 = vld [vmem:[%s569_s2 + $0x18] sm:$0xff]  ;;  %v328_v12 = vpack.c.bf16 %v42_v7, %v41_v6  ;;  %v43_v14 = vld [vmem:[%s570_s3 + $0x20] sm:$0xff] }
   0x4   :  { %326 = vmatpush3.bf16.msra.mxu0 %v325_v4  ;;  %v352_v13 = vpack.c.bf16 %v25_v10, %v24_v9  ;;  %v44_v15 = vld [vmem:[%s570_s3 + $0x28] sm:$0xff]  ;;  %v26_v16 = vld [vmem:[%s569_s2 + $0x20] sm:$0xff]  ;;  %v45_v20 = vld [vmem:[%s570_s3 + $0x30] sm:$0xff] }
   0x5   :  { %350 = vmatpush3.bf16.msra.mxu1 %v349_v8  ;;  %327 = vmatprep.subr.bf16.mxu0 %v400_v3  ;;  %v27_v17 = vld [vmem:[%s569_s2 + $0x28] sm:$0xff]  ;;  %v331_v18 = vpack.c.bf16 %v44_v15, %v43_v14  ;;  %v46_v21 = vld [vmem:[%s570_s3 + $0x38] sm:$0xff]  ;;  %v28_v22 = vld [vmem:[%s569_s2 + $0x30] sm:$0xff] }
   0x6   :  { %351 = vmatprep.subr.bf16.mxu1 %v400_v3  ;;  %v355_v19 = vpack.c.bf16 %v27_v17, %v26_v16  ;;  %v29_v23 = vld [vmem:[%s569_s2 + $0x38] sm:$0xff]  ;;  %v334_v24 = vpack.c.bf16 %v46_v21, %v45_v20 }
   0x8   :  { %329 = vmatpush3.bf16.msra.mxu0 %v328_v12 }
   0x9   :  { %353 = vmatpush3.bf16.msra.mxu1 %v352_v13  ;;  %330 = vmatprep.subr.bf16.mxu0 %v400_v3 }
   0xa   :  { %354 = vmatprep.subr.bf16.mxu1 %v400_v3 }
   0xc   :  { %332 = vmatpush3.bf16.msra.mxu0 %v331_v18 }
   0xd   :  { %10 = vsyncpa [#allocation3], 0  ;;  %356 = vmatpush3.bf16.msra.mxu1 %v355_v19  ;;  %333 = vmatprep.subr.bf16.mxu0 %v400_v3  ;;  %v358_v25 = vpack.c.bf16 %v29_v23, %v28_v22  ;;  %v47_v26 = vld [vmem:[%s570_s3 + $0x40] sm:$0xff]  ;;  %v48_v27 = vld [vmem:[%s570_s3 + $0x48] sm:$0xff]  ;;  %s403_s11 = smov [#allocation2]   ;;  %vm203_vm1 = vcmask 123904  }
   0xe   :  { %357 = vmatprep.subr.bf16.mxu1 %v400_v3  ;;  %v30_v28 = vld [vmem:[%s569_s2 + $0x40] sm:$0xff]  ;;  %v31_v29 = vld [vmem:[%s569_s2 + $0x48] sm:$0xff]  ;;  %v337_v30 = vpack.c.bf16 %v48_v27, %v47_v26  ;;  %v49_v32 = vld [vmem:[%s570_s3 + $0x50] sm:$0xff]  ;;  %s211_s12 = sshll.u32 %s403_s11, 4  ;;  %s212_s12 = int_to_ptr.vmem [resolvable:$true] %s211_s12 }
   0xf   :  { %v361_v31 = vpack.c.bf16 %v31_v29, %v30_v28  ;;  %v50_v33 = vld [vmem:[%s570_s3 + $0x58] sm:$0xff]  ;;  %v32_v34 = vld [vmem:[%s569_s2 + $0x50] sm:$0xff]  ;;  %v51_v38 = vld [vmem:[%s570_s3 + $0x60] sm:$0xff]  ;;  %p381_p1 = scmp.lt.s32.totalorder %s212_s12, %s212_s12 }
  0x10   :  { %335 = vmatpush3.bf16.msra.mxu0 %v334_v24  ;;  %v33_v35 = vld [vmem:[%s569_s2 + $0x58] sm:$0xff]  ;;  %v340_v36 = vpack.c.bf16 %v50_v33, %v49_v32  ;;  %v52_v39 = vld [vmem:[%s570_s3 + $0x68] sm:$0xff]  ;;  %v34_v40 = vld [vmem:[%s569_s2 + $0x60] sm:$0xff] }
  0x11   :  { %359 = vmatpush3.bf16.msra.mxu1 %v358_v25  ;;  %336 = vmatprep.subr.bf16.mxu0 %v400_v3  ;;  %v364_v37 = vpack.c.bf16 %v33_v35, %v32_v34  ;;  %v35_v41 = vld [vmem:[%s569_s2 + $0x68] sm:$0xff]  ;;  %v343_v42 = vpack.c.bf16 %v52_v39, %v51_v38  ;;  %v53_v44 = vld [vmem:[%s570_s3 + $0x70] sm:$0xff]  ;;  %v54_v45 = vld [vmem:[%s570_s3 + $0x78] sm:$0xff] }
  0x12   :  { %360 = vmatprep.subr.bf16.mxu1 %v400_v3  ;;  %v367_v43 = vpack.c.bf16 %v35_v41, %v34_v40  ;;  %v36_v46 = vld [vmem:[%s569_s2 + $0x70] sm:$0xff]  ;;  %v37_v47 = vld [vmem:[%s569_s2 + $0x78] sm:$0xff]  ;;  %v346_v48 = vpack.c.bf16 %v54_v45, %v53_v44  ;;  %v38_v50 = vld [vmem:[%s568_s1] sm:$0x3]  ;;  %s376_s1 = scalar_lea.vmem %s212_s12, 32 }
  0x13   :  { %v370_v49 = vpack.c.bf16 %v37_v47, %v36_v46  ;;  %v21_v51 = vld [vmem:[%s567_s0] sm:$0x3]  ;;  %p377_p0 = scmp.ne.s32.totalorder %s212_s12, %s376_s1  ;;  %p382_p2 = scmp.lt.s32.totalorder %s376_s1, %s376_s1 }
  0x14   :  { %338 = vmatpush3.bf16.msra.mxu0 %v337_v30  ;;  %v219_v54 = vld [vmem:[%s571_s4] ss:$0 sm:$0xff] }
  0x15   :  { %362 = vmatpush3.bf16.msra.mxu1 %v361_v31  ;;  %339 = vmatprep.subr.bf16.mxu0 %v400_v3  ;;  %p383_p3 = por %p382_p2, %p381_p1 }
  0x16   :  { %363 = vmatprep.subr.bf16.mxu1 %v400_v3 }
  0x17   :  { %p384_p4 = pnand %p383_p3, %p377_p0 }
  0x18   :  { %341 = vmatpush3.bf16.msra.mxu0 %v340_v36 }
  0x19   :  { %365 = vmatpush3.bf16.msra.mxu1 %v364_v37  ;;  %342 = vmatprep.subr.bf16.mxu0 %v400_v3 }
  0x1a   :  { %366 = vmatprep.subr.bf16.mxu1 %v400_v3 }
  0x1c   :  { %344 = vmatpush3.bf16.msra.mxu0 %v343_v42 }
  0x1d   :  { %368 = vmatpush3.bf16.msra.mxu1 %v367_v43  ;;  %345 = vmatprep.subr.bf16.mxu0 %v400_v3 }
  0x1e   :  { %369 = vmatprep.subr.bf16.mxu1 %v400_v3 }
  0x20   :  { %347 = vmatpush3.bf16.msra.mxu0 %v346_v48 }
  0x21   :  { %371 = vmatpush3.bf16.msra.mxu1 %v370_v49 }
  0x23   :  { %287 = vmatmul.mubr.f32.vlgmr.msra.gmra.mrb[0].mxu0 %v38_v50 }
  0x24   :  { %322 = vmatmul.mubr.f32.vlgmr.msra.gmra.mrb[0].mxu1 %v21_v51 }
  0xf6   :  { %v121_v52 = vpop.f32.mrb[0].mxu0 }
  0xf7   :  { %v191_v53 = vpop.f32.mrb[0].mxu1  ;;  %v288_v55 = vpop.f32.mrb[1].mxu0 }
  0xf8   :  { %v192_v56 = vadd.f32 %v191_v53, %v121_v52  ;;  %v323_v57 = vpop.f32.mrb[1].mxu1 }
  0xfa   :  { %v202_v58 = vadd.f32 %v219_v54, %v192_v56 }
  0xfc   :  { %204 = vst.msk [vmem:[#allocation2] sm:$0x3] %vm203_vm1, %v202_v58 }
  0xfd   :  { %387 = shalt.err (!%p384_p4)
}
  0xfe   :  { %s388_s4 = scalar_lea.hbm %s572_s5, 32 }
  0xff   :  { %p389_p5 = scmp.ne.s32.totalorder %s572_s5, %s388_s4  ;;  %p392_p6 = scmp.lt.u32.totalorder %s388_s4, %s572_s5 }
 0x101   :  { %p394_p7 = pnand %p392_p6, %p389_p5 }
 0x103   :  { %397 = shalt.err (!%p394_p7)
}
 0x104   :  { %214 = dma.vmem_to_hbm [thread:$0]  %s212_s12, 32, %s572_s5, [#allocation3]  }
 0x105   :  { %398 = dma.done.wait [#allocation3], 32  }
 0x106   :  { %399 = vsyncadd [#allocation3], 4294967264 }
 0x107   :  { %218 = vsyncpa [#allocation3], 1 }

// kernel: meshprobenet_forward.4
= control target key start
LH: loop header
LB: loop body
LE: loop exit
PB: predicated region body
PF: predicated region fallthrough
CT: control target
= control target key end

     0   :  { %vm34_vm0 = vcmask 261120   ;;  %v716_v3 = vmov 0   ;;  %v717_v21 = vmov 0.0   ;;  %vm718_vm3 = vmmov 0   ;;  %s835_s3 = inlined_call_operand.vmem [shape: f32[32,4], index: 3, kind: input, shape index: {}]   ;;  %s836_s0 = inlined_call_operand.vmem [shape: f32[2,2,8,32], index: 0, kind: input, shape index: {}]   ;;  %s837_s2 = inlined_call_operand.vmem [shape: f32[32,4], index: 2, kind: input, shape index: {}]   ;;  %s838_s1 = inlined_call_operand.vmem [shape: f32[2,8,1], index: 1, kind: input, shape index: {}]   ;;  %s839_s4 = inlined_call_operand.vmem [shape: f32[2,4,32], index: 4, kind: output, shape index: {0}]   ;;  %s840_s5 = inlined_call_operand.vmem [shape: f32[2,4,32], index: 5, kind: output, shape index: {1}]  }
   0x1   :  { %v30_v0 = vld [vmem:[%s835_s3] sm:$0xff]  ;;  %v31_v1 = vld [vmem:[%s835_s3 + $0x8] sm:$0xff]  ;;  %v32_v2 = vld [vmem:[%s835_s3 + $0x10] sm:$0xff]  ;;  %707 = vset.pattern.permute.xlu0 %v716_v3  ;;  %666 = vmatprep.subr.mxu1 %v717_v21  ;;  %vm211_vm6 = vcmask 31744   ;;  %vm282_vm7 = vcmask 64512   ;;  %vm461_vm8 = vcmask 257024  }
   0x2   :  { %v686_v4 = vpack.c.bf16 %v31_v1, %v30_v0  ;;  %v33_v5 = vld [vmem:[%s835_s3 + $0x18] sm:$0xff]  ;;  %v764_v6 = vld [vmem:[%s836_s0 + $0x10] sm:$0xff]  ;;  %v26_v8 = vld [vmem:[%s837_s2] sm:$0xff]  ;;  %668 = vmatprep.mubr.msk.f32.mxu1 %vm718_vm3, %v717_v21 }
   0x3   :  { %v690_v7 = vpack.c.bf16 %v33_v5, %v32_v2  ;;  %652 = vmatprep.mubr.msk.f32.mxu0 %vm34_vm0, %v764_v6  ;;  %v27_v9 = vld [vmem:[%s837_s2 + $0x8] sm:$0xff]  ;;  %v24_v10 = vld [vmem:[%s838_s1] sm:$0xff]  ;;  %v28_v13 = vld [vmem:[%s837_s2 + $0x10] sm:$0xff] }
   0x4   :  { %687 = vmatprep.subr.bf16.mxu0 %v686_v4  ;;  %v25_v11 = vld [vmem:[%s838_s1 + $0x8] sm:$0xff]  ;;  %v694_v12 = vpack.c.bf16 %v27_v9, %v26_v8  ;;  %vm197_vm1 = vcmp.gt.f32.partialorder %v24_v10, 0.0  ;;  %v29_v14 = vld [vmem:[%s837_s2 + $0x18] sm:$0xff]  ;;  %v19_v19 = vld [vmem:[%s836_s0] sm:$0xff] }
   0x5   :  { %689 = vmatpush3.bf16.msra.mxu0 %v686_v4  ;;  %vm198_vm2 = vcmp.gt.f32.partialorder %v25_v11, 0.0  ;;  %v199_v15 = vsel %vm197_vm1, 1, %v716_v3  ;;  %v789_v16 = vld [vmem:[%s836_s0 + $0x18] sm:$0xff]  ;;  %v698_v18 = vpack.c.bf16 %v29_v14, %v28_v13  ;;  %v800_v20 = vld [vmem:[%s836_s0 + $0x8] sm:$0xff]  ;;  %667 = vmatpush3.msra.mxu1 %v19_v19 }
   0x6   :  { %691 = vmatprep.subr.bf16.mxu0 %v690_v7  ;;  %202 = vperm.xlu0 %707, %v199_v15   ;;  %v200_v17 = vsel %vm198_vm2, 1, %v716_v3 }
   0x7   :  { %671 = vmatprep.subr.mxu1 %v717_v21 }
   0x9   :  { %693 = vmatpush3.bf16.msra.mxu0 %v690_v7 }
   0xa   :  { %695 = vmatprep.subr.bf16.mxu0 %v694_v12  ;;  %205 = vperm.xlu0 %707, %v200_v17  }
   0xc   :  { %653 = vmatmul.mubr.msk.f32.vlgmr.msra.gmra.mrb[0].mxu0 %vm34_vm0, %v789_v16 }
   0xd   :  { %697 = vmatpush3.bf16.msra.mxu0 %v694_v12  ;;  %663 = vmatprep.mubr.msk.f32.mxu0 %vm34_vm0, %v19_v19 }
   0xe   :  { %699 = vmatprep.subr.bf16.mxu0 %v698_v18 }
  0x11   :  { %701 = vmatpush3.bf16.msra.mxu0 %v698_v18 }
  0x14   :  { %664 = vmatmul.mubr.msk.f32.vlgmr.msra.gmra.mrb[0].mxu0 %vm34_vm0, %v800_v20 }
  0x85   :  { %v203_v22 = vpop.permute.xlu0 %202 }
  0x86   :  { %vm207_vm5 = vcmp.eq.s32.totalorder %v203_v22, 1 }
  0x89   :  { %v206_v23 = vpop.permute.xlu0 %205 }
  0x8a   :  { %vm208_vm4 = vcmp.eq.s32.totalorder %v206_v23, 1 }
  0xe7   :  { %v665_v24 = vpop.f32.mrb[0].mxu0 }
  0xe8   :  { %v210_v25 = vsel %vm208_vm4, %v665_v24, -1e+30  ;;  %v188_v26 = vpop.f32.mrb[1].mxu0 }
  0xe9   :  { %v219_v27 = vsel %vm211_vm6, %v210_v25, -inf  ;;  %v209_v28 = vsel %vm207_vm5, %v188_v26, -1e+30 }
  0xea   :  { %v220_v29 = vrot.slane %v219_v27, 4  ;;  %v212_v30 = vsel %vm211_vm6, %v209_v28, -inf }
  0xeb   :  { %v213_v31 = vrot.slane %v212_v30, 4 }
  0xec   :  { %v221_v32 = vmax.f32 %v219_v27, %v220_v29 }
  0xed   :  { %v214_v33 = vmax.f32 %v212_v30, %v213_v31 }
  0xee   :  { %v222_v34 = vrot.slane %v221_v32, 2 }
  0xef   :  { %v215_v35 = vrot.slane %v214_v33, 2 }
  0xf0   :  { %v223_v36 = vmax.f32 %v221_v32, %v222_v34 }
  0xf1   :  { %v216_v37 = vmax.f32 %v214_v33, %v215_v35 }
  0xf2   :  { %v224_v38 = vrot.slane %v223_v36, 1 }
  0xf3   :  { %v217_v39 = vrot.slane %v216_v37, 1 }
  0xf4   :  { %v225_v40 = vmax.f32 %v223_v36, %v224_v38 }
  0xf5   :  { %v218_v41 = vmax.f32 %v216_v37, %v217_v39 }
  0xf6   :  { %v227_v42 = vsub.f32 %v210_v25, %v225_v40 }
  0xf7   :  { %v226_v43 = vsub.f32 %v209_v28, %v218_v41 }
  0xf8   :  { %v230_v44 = vmul.f32 1.442695, %v227_v42 }
  0xf9   :  { %v228_v45 = vmul.f32 1.442695, %v226_v43 }
  0xfa   :  { %708 = vpow2.f32 %v230_v44 }
  0xfb   :  { %710 = vpow2.f32 %v228_v45 }
 0x104   :  { %v709_v46 = vpop.eup %708 }
 0x105   :  { %v711_v47 = vpop.eup %710  ;;  %v239_v48 = vsel %vm211_vm6, %v709_v46, 0.0 }
 0x106   :  { %v240_v49 = vrot.slane %v239_v48, 4  ;;  %v232_v50 = vsel %vm211_vm6, %v711_v47, 0.0 }
 0x107   :  { %v233_v51 = vrot.slane %v232_v50, 4 }
 0x108   :  { %v241_v52 = vadd.f32 %v240_v49, %v239_v48 }
 0x109   :  { %v234_v53 = vadd.f32 %v233_v51, %v232_v50 }
 0x10a   :  { %v242_v54 = vrot.slane %v241_v52, 2 }
 0x10b   :  { %v235_v55 = vrot.slane %v234_v53, 2 }
 0x10c   :  { %v243_v56 = vadd.f32 %v242_v54, %v241_v52 }
 0x10d   :  { %v236_v57 = vadd.f32 %v235_v55, %v234_v53 }
 0x10e   :  { %v244_v58 = vrot.slane %v243_v56, 1 }
 0x10f   :  { %v237_v59 = vrot.slane %v236_v57, 1 }
 0x110   :  { %v245_v61 = vadd.f32 %v244_v58, %v243_v56 }
 0x111   :  { %v238_v60 = vadd.f32 %v237_v59, %v236_v57 }
 0x113   :  { %712 = vrcp.f32 %v238_v60 }
 0x114   :  { %714 = vrcp.f32 %v245_v61 }
 0x11d   :  { %v713_v62 = vpop.eup %712 }
 0x11e   :  { %v247_v63 = vmul.f32 %v713_v62, %v711_v47  ;;  %v715_v0 = vpop.eup %714 }
 0x11f   :  { %v249_v1 = vmul.f32 %v715_v0, %v709_v46 }
 0x120   :  { %250 = vxpose.xlu1.b32.start.end [1/1] (short) (narrow) %v247_v63, 8 }
 0x124   :  { %356 = vxpose.xlu1.b32.start.end [1/1] (short) (narrow) %v249_v1, 8 }
 0x1a0   :  { %v266_v2 = vpop.trf.xlu1 }
 0x1a1   :  { %669 = vmatmul.mubr.msk.f32.vlgmr.msra.gmra.mrb[0].mxu1 %vm282_vm7, %v266_v2 }
 0x1a2   :  { %672 = vmatpush3.msra.mxu1 %v800_v20  ;;  %673 = vmatprep.mubr.msk.f32.mxu1 %vm718_vm3, %v717_v21 }
 0x1a3   :  { %676 = vmatprep.subr.mxu1 %v717_v21 }
 0x1a4   :  { %v372_v3 = vpop.trf.xlu1 }
 0x1a5   :  { %674 = vmatmul.mubr.msk.f32.vlgmr.msra.gmra.mrb[2].mxu1 %vm282_vm7, %v372_v3 }
 0x1a6   :  { %677 = vmatpush3.msra.mxu1 %v764_v6  ;;  %678 = vmatprep.mubr.msk.f32.mxu1 %vm718_vm3, %v717_v21 }
 0x1a7   :  { %681 = vmatprep.subr.mxu1 %v717_v21 }
 0x1a9   :  { %679 = vmatmul.mubr.msk.f32.vlgmr.msra.gmra.mrb[4].mxu1 %vm282_vm7, %v266_v2 }
 0x1aa   :  { %682 = vmatpush3.msra.mxu1 %v789_v16  ;;  %683 = vmatprep.mubr.msk.f32.mxu1 %vm718_vm3, %v717_v21 }
 0x1ad   :  { %684 = vmatmul.mubr.msk.f32.vlgmr.msra.gmra.mrb[6].mxu1 %vm282_vm7, %v372_v3 }
 0x274   :  { %v352_v4 = vpop.f32.mrb[0].mxu1 }
 0x275   :  { %462 = vst.msk [vmem:[%s839_s4] sm:$0xf] %vm461_vm8, %v352_v4  ;;  %v670_v5 = vpop.f32.mrb[1].mxu1 }
 0x278   :  { %v457_v6 = vpop.f32.mrb[2].mxu1 }
 0x279   :  { %463 = vst.msk [vmem:[%s839_s4 + $0x4] sm:$0xf] %vm461_vm8, %v457_v6  ;;  %v675_v7 = vpop.f32.mrb[3].mxu1 }
 0x27c   :  { %v530_v8 = vpop.f32.mrb[4].mxu1 }
 0x27d   :  { %604 = vst.msk [vmem:[%s840_s5] sm:$0xf] %vm461_vm8, %v530_v8  ;;  %v680_v9 = vpop.f32.mrb[5].mxu1 }
 0x280   :  { %v600_v10 = vpop.f32.mrb[6].mxu1 }
 0x281   :  { %605 = vst.msk [vmem:[%s840_s5 + $0x4] sm:$0xf] %vm461_vm8, %v600_v10  ;;  %v685_v11 = vpop.f32.mrb[7].mxu1 }

// kernel: meshprobenet_forward.3
= control target key start
LH: loop header
LB: loop body
LE: loop exit
PB: predicated region body
PF: predicated region fallthrough
CT: control target
= control target key end

     0   :  { %s3698_s18 = smov 0   ;;  %s3700_s19 = smov 0   ;;  %s4220_s0 = inlined_call_operand.vmem [shape: f32[8,2,32], index: 0, kind: input, shape index: {}]   ;;  %s4221_s1 = inlined_call_operand.vmem [shape: f32[8,2,1], index: 1, kind: input, shape index: {}]   ;;  %s4222_s2 = inlined_call_operand.vmem [shape: f32[2,32,128], index: 2, kind: input, shape index: {}]   ;;  %s4223_s3 = inlined_call_operand.vmem [shape: f32[2,32,128], index: 3, kind: input, shape index: {}]   ;;  %s4224_s4 = inlined_call_operand.vmem [shape: f32[2,1,128], index: 4, kind: input, shape index: {}]   ;;  %s4225_s5 = inlined_call_operand.vmem [shape: f32[2,8,2,32], index: 5, kind: output, shape index: {}]  }
   0x1   :  { %s3702_s20 = smov 0  }
   0x2 LB: > { %s27_s21 = sadd.s32 1, %s3646_s19  ;;  %p3016_p0 = scmp.ge.s32.totalorder %s3650_s20, 1  ;;  %s3650_s20 = sphi %s3702_s20, %s15_s20   ;;  %s3646_s19 = sphi %s3700_s19, %s4227_s19   ;;  %s3642_s18 = sphi %s3698_s18, %s4226_s18  }
   0x3   : > { %p29_p1 = scmp.ge.s32.totalorder %s27_s21, 2  ;;  %p271_p2 = scmp.lt.s32.totalorder %s3650_s20, 3 }
   0x5   : > { %s4229_s21 = smov (%p29_p1, %s27_s21), 0  ;;  %p272_p3 = pnand %p3016_p0, %p271_p2 }
   0x6   : > { %p354_p4 = scmp.lt.s32.totalorder (!%p272_p3), %s3642_s18, 1  ;;  %vm387_vm0 = vcmask (!%p272_p3), 254976   ;;  %v399_v0 = vld [vmem:[%s4220_s0] sm:$0x3] (!%p272_p3)  ;;  %v426_v1 = vlaneseq (!%p272_p3)  ;;  %v3652_v2 = vmov (!%p272_p3), 0.0   ;;  %vm455_vm1 = vcmask (!%p272_p3), 261120  }
   0x7   : > { %275 = sbr.rel (%p272_p3) target bundleno = 11533 (0x2d0d), region = 40  ;;  %388 = vst.msk [vmem:[#allocation2] sm:$0x3] (!%p272_p3), %vm387_vm0, %v3652_v2  ;;  %389 = vst.msk [vmem:[#allocation3] sm:$0x3] (!%p272_p3), %vm387_vm0, %v3652_v2  ;;  %p3026_p5 = scmp.ne.s32.totalorder (!%p272_p3), %s3642_s18, 0 }
   0x8   : > { %v400_v3 = vld [vmem:[%s4220_s0 + $0x2] sm:$0x3] (!%p272_p3)  ;;  %v401_v4 = vld [vmem:[%s4220_s0 + $0x4] sm:$0x3] (!%p272_p3)  ;;  %v402_v5 = vld [vmem:[%s4220_s0 + $0x6] sm:$0x3] (!%p272_p3) }
   0x9   : > { %v427_v6 = vshrl.u32 (!%p272_p3), %v426_v1, 7  ;;  %v403_v7 = vld [vmem:[%s4220_s0 + $0x8] sm:$0x3] (!%p272_p3)  ;;  %v3653_v8 = vmov (!%p272_p3), 1983009808   ;;  %v421_v13 = vcombine.low (!%p272_p3), %v399_v0, %v400_v3  ;;  %v422_v14 = vcombine.low (!%p272_p3), %v401_v4, %v402_v5 }
   0xa   : > { %v424_v9 = vunpack.c.l.s4 (!%p272_p3), %v3653_v8  ;;  %v404_v10 = vld [vmem:[%s4220_s0 + $0xa] sm:$0x3] (!%p272_p3)  ;;  %v405_v11 = vld [vmem:[%s4220_s0 + $0xc] sm:$0x3] (!%p272_p3)  ;;  %v406_v12 = vld [vmem:[%s4220_s0 + $0xe] sm:$0x3] (!%p272_p3) }
   0xb   : > { %v438_v16 = vcombine.low (!%p272_p3), %v403_v7, %v404_v10  ;;  %v439_v20 = vcombine.low (!%p272_p3), %v405_v11, %v406_v12  ;;  %v3780_v35 = vld [vmem:[%s4221_s1] sm:$0x3] (!%p272_p3)  ;;  %v3785_v36 = vld [vmem:[%s4221_s1 + $0x2] sm:$0x3] (!%p272_p3)  ;;  %v3790_v37 = vld [vmem:[%s4221_s1 + $0x4] sm:$0x3] (!%p272_p3) }
   0xc   : > { %v425_v15 = vunpack.c.0.s8 (!%p272_p3), %v424_v9  ;;  %v3795_v38 = vld [vmem:[%s4221_s1 + $0x6] sm:$0x3] (!%p272_p3)  ;;  %v3800_v39 = vld [vmem:[%s4221_s1 + $0x8] sm:$0x3] (!%p272_p3)  ;;  %v3805_v40 = vld [vmem:[%s4221_s1 + $0xa] sm:$0x3] (!%p272_p3) }
   0xd   : > { %v3810_v41 = vld [vmem:[%s4221_s1 + $0xc] sm:$0x3] (!%p272_p3)  ;;  %v3815_v42 = vld [vmem:[%s4221_s1 + $0xe] sm:$0x3] (!%p272_p3) }
   0xe   : > { %s3734_s30 = scalar_select %p354_p4, %s3642_s18, 1  ;;  %v3769_v25 = vsub.s32 %v425_v15, %v427_v6 }
   0xf   : > { %v3654_v59 = vmov (!%p3026_p5), 0.0|0.0   ;;  %vm3655_vm2 = vmmov (!%p3026_p5), 0   ;;  %v3656_v61 = vmov (!%p3026_p5), 0.0   ;;  %v591_v62 = vld [vmem:[#allocation2] sm:$0x3] (!%p3026_p5)  ;;  %s3658_s29 = smov (!%p3026_p5), 32  }
  0x10   : > { %s3076_s14 = sshll.u32 %s3734_s30, 5  ;;  %s3078_s15 = sshll.u32 %s3734_s30, 4  ;;  %v429_v29 = vrot.slane %v421_v13, %v3769_v25  ;;  %v436_v30 = vrot.slane %v422_v14, %v3769_v25  ;;  %v446_v31 = vrot.slane %v438_v16, %v3769_v25  ;;  %v453_v32 = vrot.slane %v439_v20, %v3769_v25  ;;  %3366 = vmatprep.subr.bf16.mxu1 (!%p3026_p5), %v3654_v59  ;;  %v592_v2 = vld [vmem:[#allocation3] sm:$0x3] (!%p3026_p5) }
  0x11   : > { %s358_s22 = scalar_lea.vmem %s4222_s2, %s3076_s14  ;;  %s363_s25 = scalar_lea.vmem %s4223_s3, %s3076_s14  ;;  %3195 = vmatprep.mubr.msk.f32.mxu1 (!%p3026_p5), %vm3655_vm2, %v3656_v61  ;;  %v681_v4 = vrot.slane (!%p3026_p5), %v592_v2, %v3769_v25  ;;  %vm702_vm3 = vcmp.gt.f32.partialorder (!%p3026_p5), %v3780_v35, 0.0  ;;  %v3659_v11 = vmov (!%p3026_p5), 0   ;;  %vm844_vm5 = vcmp.gt.f32.partialorder (!%p3026_p5), %v3785_v36, 0.0 }
  0x12   : > { %s3759_s28 = scalar_lea.vmem %s4225_s5, %s3078_s15  ;;  %v390_v17 = vld [vmem:[%s358_s22] sm:$0xff]  ;;  %v391_v18 = vld [vmem:[%s358_s22 + $0x8] sm:$0xff]  ;;  %v3765_v22 = vld [vmem:[%s363_s25 + $0x10] sm:$0xff]  ;;  %v437_v33 = vcombine.low %v429_v29, %v436_v30  ;;  %v454_v34 = vcombine.low %v446_v31, %v453_v32  ;;  %s366_s27 = scalar_lea.vmem %s4224_s4, %s3734_s30  ;;  %3496 = vset.pattern.permute.xlu0 (!%p3026_p5), %v3659_v11  ;;  %v703_v12 = vsel (!%p3026_p5), %vm702_vm3, 1, %v3659_v11  ;;  %3497 = vset.pattern.permute.xlu1 (!%p3026_p5), %v3659_v11  ;;  %vm986_vm7 = vcmp.gt.f32.partialorder (!%p3026_p5), %v3790_v37, 0.0 }
  0x13   : > { %v3761_v19 = vld [vmem:[%s363_s25] sm:$0xff]  ;;  %v3763_v21 = vld [vmem:[%s363_s25 + $0x8] sm:$0xff]  ;;  %v3767_v23 = vld [vmem:[%s363_s25 + $0x18] sm:$0xff]  ;;  %v3352_v24 = vpack.c.bf16 %v391_v18, %v390_v17  ;;  %s3657_s30 = smov (!%p3026_p5), 64   ;;  %s3660_s6 = smov (!%p3026_p5), 96   ;;  %vm1128_vm9 = vcmp.gt.f32.partialorder (!%p3026_p5), %v3795_v38, 0.0 }
  0x14   : > { %v392_v26 = vld [vmem:[%s358_s22 + $0x10] sm:$0xff]  ;;  %v393_v27 = vld [vmem:[%s358_s22 + $0x18] sm:$0xff]  ;;  %3173 = vmatprep.mubr.msk.f32.mxu0 %vm455_vm1, %v437_v33  ;;  %v3023_v43 = vld [vmem:[%s366_s27] ss:$0 sm:$0xff]  ;;  %v3852_v58 = vpack.c.bf16 (!%p3026_p5), %v3763_v21, %v3761_v19  ;;  %v3859_v60 = vpack.c.bf16 (!%p3026_p5), %v3767_v23, %v3765_v22  ;;  %vm1270_vm11 = vcmp.gt.f32.partialorder (!%p3026_p5), %v3800_v39, 0.0  ;;  %vm1412_vm13 = vcmp.gt.f32.partialorder (!%p3026_p5), %v3805_v40, 0.0 }
  0x15   : > { %3353 = vmatprep.subr.bf16.mxu0 %v3352_v24  ;;  %v3356_v28 = vpack.c.bf16 %v393_v27, %v392_v26  ;;  %vm1554_vm15 = vcmp.gt.f32.partialorder (!%p3026_p5), %v3810_v41, 0.0  ;;  %vm1696_vm3 = vcmp.gt.f32.partialorder (!%p3026_p5), %v3815_v42, 0.0 }
  0x16   : > { %3355 = vmatpush3.bf16.msra.mxu0 %v3352_v24  ;;  %3368 = vmatpush3.bf16.msra.mxu1 (!%p3026_p5), %v3852_v58 }
  0x17   : > { %3357 = vmatprep.subr.bf16.mxu0 %v3356_v28  ;;  %3369 = vmatprep.subr.bf16.mxu1 (!%p3026_p5), %v3654_v59 }
  0x1a   : > { %3359 = vmatpush3.bf16.msra.mxu0 %v3356_v28  ;;  %3371 = vmatpush3.bf16.msra.mxu1 (!%p3026_p5), %v3859_v60 }
  0x1b   : > { %3360 = vmatprep.subr.bf16.mxu0 (!%p3026_p5), %v3654_v59  ;;  %3378 = vmatprep.subr.bf16.mxu1 (!%p3026_p5), %v3654_v59 }
  0x1d   : > { %3174 = vmatmul.mubr.msk.f32.vlgmr.msra.gmra.mrb[0].mxu0 %vm455_vm1, %v454_v34 }
  0x1e   : > { %3362 = vmatpush3.bf16.msra.mxu0 (!%p3026_p5), %v3852_v58  ;;  %3184 = vmatprep.mubr.msk.f32.mxu0 (!%p3026_p5), %vm3655_vm2, %v3656_v61 }
  0x1f   : > { %3363 = vmatprep.subr.bf16.mxu0 (!%p3026_p5), %v3654_v59 }
  0x22   : > { %3365 = vmatpush3.bf16.msra.mxu0 (!%p3026_p5), %v3859_v60 }
  0x23   : > { %3372 = vmatprep.subr.bf16.mxu0 (!%p3026_p5), %v3654_v59 }
  0xf0   : > { %v3175_v44 = vpop.f32.mrb[0].mxu0 }
  0xf1   : > { %v532_v45 = vadd.f32 %v3175_v44, %v3023_v43  ;;  %v526_v46 = vpop.f32.mrb[1].mxu0  ;;  %3185 = vmatmul.mubr.msk.f32.vlgmr.msra.gmra.mrb[0].mxu0 (!%p3026_p5), %vm455_vm1, %v591_v62 }
  0xf2   : > { %v527_v47 = vadd.f32 %v3023_v43, %v526_v46  ;;  %590 = sbr.rel (%p3026_p5) target bundleno = 5882 (0x16fa), region = 48  ;;  %3374 = vmatpush3.bf16.msra.mxu0 (!%p3026_p5), %v3852_v58  ;;  %3206 = vmatprep.mubr.msk.f32.mxu0 (!%p3026_p5), %vm3655_vm2, %v3656_v61 }
  0xf3   : > { %v554_v48 = vcombine.high %v532_v45, %v532_v45  ;;  %v3822_v49 = vrot.slane %v532_v45, %v3769_v25  ;;  %3375 = vmatprep.subr.bf16.mxu0 (!%p3026_p5), %v3654_v59 }
  0xf4   : > { %v537_v50 = vcombine.high %v527_v47, %v527_v47  ;;  %v3825_v51 = vrot.slane %v527_v47, %v3769_v25 }
  0xf5   : > { %v3828_v52 = vrot.slane %v554_v48, %v3769_v25  ;;  %v3832_v53 = vcombine.high %v3822_v49, %v3822_v49 }
  0xf6   : > { %v3835_v54 = vrot.slane %v537_v50, %v3769_v25  ;;  %v3839_v55 = vcombine.high %v3825_v51, %v3825_v51  ;;  %3377 = vmatpush3.bf16.msra.mxu0 (!%p3026_p5), %v3859_v60 }
  0xf7   : > { %v3843_v56 = vcombine.high %v3828_v52, %v3828_v52  ;;  %3384 = vmatprep.subr.bf16.mxu0 (!%p3026_p5), %v3654_v59 }
  0xf8   : > { %v3847_v57 = vcombine.high %v3835_v54, %v3835_v54 }
 0x1c4   : > { %v662_v63 = vpop.f32.mrb[0].mxu0 }
 0x1c5   : > { %v666_v0 = vadd.f32 %v662_v63, %v3825_v51  ;;  %v3186_v1 = vpop.f32.mrb[1].mxu0 }
 0x1c7   : > { %3498 = vtanh.f32 %v666_v0  ;;  %v3028_v5 = vmul.f32 -1.442695, %v666_v0  ;;  %v845_v0 = vsel %vm844_vm5, 1, %v3659_v11 }
 0x1c9   : > { %3500 = vpow2.f32 %v3028_v5 }
 0x1d1   : > { %v3499_v3 = vpop.eup %3498 }
 0x1d2   : > { %687 = vrot.lane.b32.xlu0 %v3499_v3, %s3657_s30 }
 0x1d3   : > { %v3501_v6 = vpop.eup %3500 }
 0x1d4   : > { %v670_v7 = vadd.f32 1.0, %v3501_v6 }
 0x1d6   : > { %682 = vrot.lane.b32.xlu0 %v681_v4, %s3658_s29  ;;  %3502 = vrcp.f32 %v670_v7 }
 0x1da   : > { %705 = vperm.xlu0 %3496, %v703_v12  }
 0x1e0   : > { %v3503_v8 = vpop.eup %3502 }
 0x244   : > { %v688_v9 = vpop.permute.xlu0 %687 }
 0x245   : > { %v690_v10 = vmul.f32 %v3503_v8, %v688_v9 }
 0x247   : > { %692 = vrot.lane.b32.xlu1 %v690_v10, %s3658_s29 }
 0x248   : > { %v683_v13 = vpop.permute.xlu0 %682 }
 0x249   : > { %v685_v14 = vmul.f32 %v3503_v8, %v683_v13 }
 0x259   : > { %v706_v27 = vpop.permute.xlu0 %705 }
 0x25a   : > { %vm707_vm4 = vcmp.eq.s32.totalorder %v706_v27, 1 }
 0x2b9   : > { %v693_v15 = vpop.permute.xlu1 %692 }
 0x2ba   : > { %v695_v16 = vadd.f32 %v693_v15, %v685_v14 }
 0x2bc   : > { %3504 = vtanh.f32 %v695_v16  ;;  %v730_v26 = vrot.slane %v695_v16, %v3769_v25 }
 0x2c6   : > { %v3505_v17 = vpop.eup %3504 }
 0x2c7   : > { %698 = vrot.lane.b32.xlu1 %v3505_v17, %s3657_s30 }
 0x339   : > { %v699_v18 = vpop.permute.xlu1 %698 }
 0x33a   : > { %v701_v20 = vmul.f32 %v3503_v8, %v699_v18 }
 0x33c   : > { %v715_v24 = vrot.slane %v701_v20, %v3769_v25 }
 0x33e   : > { %716 = vrot.lane.b32.xlu1 %v715_v24, %s3658_s29 }
 0x342   : > { %731 = vrot.lane.b32.xlu1 %v730_v26, %s3660_s6 }
 0x3b0   : > { %v717_v28 = vpop.permute.xlu1 %716 }
 0x3b1   : > { %v719_v29 = vsel %vm707_vm4, %v717_v28, 0.0  ;;  %v722_v30 = vsel %vm707_vm4, %v717_v28, %v591_v62 }
 0x3b2   : > { %721 = vst.msk [vmem:[%s3759_s28] sm:$0x3] %vm387_vm0, %v719_v29  ;;  %3196 = vmatmul.mubr.msk.f32.vlgmr.msra.gmra.mrb[0].mxu1 %vm455_vm1, %v722_v30 }
 0x3b3   : > { %3380 = vmatpush3.bf16.msra.mxu1 %v3852_v58  ;;  %3217 = vmatprep.mubr.msk.f32.mxu1 %vm3655_vm2, %v3656_v61 }
 0x3b4   : > { %v732_v31 = vpop.permute.xlu1 %731  ;;  %3381 = vmatprep.subr.bf16.mxu1 %v3654_v59 }
 0x3b5   : > { %v734_v32 = vsel %vm707_vm4, %v732_v31, %v592_v2 }
 0x3b6   : > { %v823_v33 = vrot.slane %v734_v32, %v3769_v25 }
 0x3b7   : > { %3383 = vmatpush3.bf16.msra.mxu1 %v3859_v60 }
 0x3b8   : > { %824 = vrot.lane.b32.xlu1 %v823_v33, %s3658_s29  ;;  %3390 = vmatprep.subr.bf16.mxu1 %v3654_v59  ;;  %v987_v33 = vsel %vm986_vm7, 1, %v3659_v11 }
 0x42a   : > { %v825_v1 = vpop.permute.xlu1 %824 }
 0x485   : > { %v804_v34 = vpop.f32.mrb[0].mxu1 }
 0x486   : > { %v808_v43 = vadd.f32 %v804_v34, %v3839_v55  ;;  %v3197_v44 = vpop.f32.mrb[1].mxu1 }
 0x488   : > { %3506 = vtanh.f32 %v808_v43  ;;  %v3030_v46 = vmul.f32 -1.442695, %v808_v43 }
 0x48a   : > { %3508 = vpow2.f32 %v3030_v46 }
 0x492   : > { %v3507_v45 = vpop.eup %3506 }
 0x493   : > { %829 = vrot.lane.b32.xlu0 %v3507_v45, %s3657_s30 }
 0x494   : > { %v3509_v47 = vpop.eup %3508 }
 0x495   : > { %v812_v48 = vadd.f32 1.0, %v3509_v47 }
 0x497   : > { %3510 = vrcp.f32 %v812_v48 }
 0x4a1   : > { %v3511_v50 = vpop.eup %3510 }
 0x4a2   : > { %v827_v2 = vmul.f32 %v3511_v50, %v825_v1 }
 0x505   : > { %v830_v62 = vpop.permute.xlu0 %829 }
 0x506   : > { %v832_v63 = vmul.f32 %v3511_v50, %v830_v62 }
 0x508   : > { %834 = vrot.lane.b32.xlu0 %v832_v63, %s3658_s29 }
 0x50c   : > { %847 = vperm.xlu0 %3496, %v845_v0  }
 0x57a   : > { %v835_v3 = vpop.permute.xlu0 %834 }
 0x57b   : > { %v837_v4 = vadd.f32 %v835_v3, %v827_v2 }
 0x57d   : > { %3512 = vtanh.f32 %v837_v4  ;;  %v872_v5 = vrot.slane %v837_v4, %v3769_v25 }
 0x57f   : > { %873 = vrot.lane.b32.xlu0 %v872_v5, %s3660_s6 }
 0x587   : > { %v3513_v6 = vpop.eup %3512 }
 0x588   : > { %840 = vrot.lane.b32.xlu1 %v3513_v6, %s3657_s30 }
 0x58b   : > { %v848_v7 = vpop.permute.xlu0 %847 }
 0x58c   : > { %vm849_vm6 = vcmp.eq.s32.totalorder %v848_v7, 1 }
 0x5f1   : > { %v874_v8 = vpop.permute.xlu0 %873 }
 0x5f2   : > { %v876_v9 = vsel %vm849_vm6, %v874_v8, %v734_v32 }
 0x5f3   : > { %v965_v10 = vrot.slane %v876_v9, %v3769_v25 }
 0x5f5   : > { %966 = vrot.lane.b32.xlu0 %v965_v10, %s3658_s29 }
 0x5fa   : > { %v841_v12 = vpop.permute.xlu1 %840 }
 0x5fb   : > { %v843_v13 = vmul.f32 %v3511_v50, %v841_v12 }
 0x5fd   : > { %v857_v14 = vrot.slane %v843_v13, %v3769_v25 }
 0x5ff   : > { %858 = vrot.lane.b32.xlu1 %v857_v14, %s3658_s29 }
 0x667   : > { %v967_v34 = vpop.permute.xlu0 %966 }
 0x671   : > { %v859_v15 = vpop.permute.xlu1 %858 }
 0x672   : > { %v861_v16 = vsel %vm849_vm6, %v859_v15, 0.0  ;;  %v864_v17 = vsel %vm849_vm6, %v859_v15, %v722_v30 }
 0x673   : > { %3031 = vst.msk [vmem:[%s3759_s28 + $0x2] sm:$0x3] %vm387_vm0, %v861_v16  ;;  %3207 = vmatmul.mubr.msk.f32.vlgmr.msra.gmra.mrb[2].mxu0 %vm455_vm1, %v864_v17 }
 0x674   : > { %3386 = vmatpush3.bf16.msra.mxu0 %v3852_v58  ;;  %3228 = vmatprep.mubr.msk.f32.mxu0 %vm3655_vm2, %v3656_v61 }
 0x675   : > { %3387 = vmatprep.subr.bf16.mxu0 %v3654_v59 }
 0x678   : > { %3389 = vmatpush3.bf16.msra.mxu0 %v3859_v60 }
 0x679   : > { %3396 = vmatprep.subr.bf16.mxu0 %v3654_v59 }
 0x746   : > { %v946_v18 = vpop.f32.mrb[2].mxu0 }
 0x747   : > { %v950_v20 = vadd.f32 %v946_v18, %v3835_v54  ;;  %v3208_v24 = vpop.f32.mrb[3].mxu0 }
 0x749   : > { %3514 = vtanh.f32 %v950_v20  ;;  %v3033_v27 = vmul.f32 -1.442695, %v950_v20 }
 0x74b   : > { %3516 = vpow2.f32 %v3033_v27 }
 0x753   : > { %v3515_v26 = vpop.eup %3514 }
 0x754   : > { %971 = vrot.lane.b32.xlu1 %v3515_v26, %s3657_s30 }
 0x755   : > { %v3517_v28 = vpop.eup %3516 }
 0x756   : > { %v954_v29 = vadd.f32 1.0, %v3517_v28 }
 0x758   : > { %3518 = vrcp.f32 %v954_v29 }
 0x762   : > { %v3519_v30 = vpop.eup %3518 }
 0x763   : > { %v969_v43 = vmul.f32 %v3519_v30, %v967_v34 }
 0x7c6   : > { %v972_v31 = vpop.permute.xlu1 %971 }
 0x7c7   : > { %v974_v32 = vmul.f32 %v3519_v30, %v972_v31 }
 0x7c9   : > { %976 = vrot.lane.b32.xlu1 %v974_v32, %s3658_s29 }
 0x7cd   : > { %989 = vperm.xlu1 %3497, %v987_v33  }
 0x83b   : > { %v977_v44 = vpop.permute.xlu1 %976 }
 0x83c   : > { %v979_v45 = vadd.f32 %v977_v44, %v969_v43 }
 0x83e   : > { %3520 = vtanh.f32 %v979_v45  ;;  %v1014_v46 = vrot.slane %v979_v45, %v3769_v25 }
 0x840   : > { %1015 = vrot.lane.b32.xlu1 %v1014_v46, %s3660_s6 }
 0x848   : > { %v3521_v47 = vpop.eup %3520 }
 0x849   : > { %982 = vrot.lane.b32.xlu0 %v3521_v47, %s3657_s30 }
 0x84c   : > { %v990_v48 = vpop.permute.xlu1 %989 }
 0x84d   : > { %vm991_vm8 = vcmp.eq.s32.totalorder %v990_v48, 1 }
 0x8b2   : > { %v1016_v50 = vpop.permute.xlu1 %1015 }
 0x8b3   : > { %v1018_v62 = vsel %vm991_vm8, %v1016_v50, %v876_v9 }
 0x8b4   : > { %v1107_v63 = vrot.slane %v1018_v62, %v3769_v25 }
 0x8b6   : > { %1108 = vrot.lane.b32.xlu1 %v1107_v63, %s3658_s29 }
 0x8bb   : > { %v983_v0 = vpop.permute.xlu0 %982 }
 0x8bc   : > { %v985_v1 = vmul.f32 %v3519_v30, %v983_v0 }
 0x8be   : > { %v999_v2 = vrot.slane %v985_v1, %v3769_v25 }
 0x8c0   : > { %1000 = vrot.lane.b32.xlu0 %v999_v2, %s3658_s29 }
 0x928   : > { %v1109_v18 = vpop.permute.xlu1 %1108 }
 0x932   : > { %v1001_v3 = vpop.permute.xlu0 %1000 }
 0x933   : > { %v1003_v4 = vsel %vm991_vm8, %v1001_v3, 0.0  ;;  %v1006_v5 = vsel %vm991_vm8, %v1001_v3, %v864_v17  ;;  %v1129_v17 = vsel %vm1128_vm9, 1, %v3659_v11 }
 0x934   : > { %3034 = vst.msk [vmem:[%s3759_s28 + $0x4] sm:$0x3] %vm387_vm0, %v1003_v4  ;;  %3218 = vmatmul.mubr.msk.f32.vlgmr.msra.gmra.mrb[2].mxu1 %vm455_vm1, %v1006_v5 }
 0x935   : > { %3392 = vmatpush3.bf16.msra.mxu1 %v3852_v58  ;;  %3239 = vmatprep.mubr.msk.f32.mxu1 %vm3655_vm2, %v3656_v61 }
 0x936   : > { %3393 = vmatprep.subr.bf16.mxu1 %v3654_v59 }
 0x939   : > { %3395 = vmatpush3.bf16.msra.mxu1 %v3859_v60 }
 0x93a   : > { %3402 = vmatprep.subr.bf16.mxu1 %v3654_v59 }
 0xa07   : > { %v1088_v6 = vpop.f32.mrb[2].mxu1 }
 0xa08   : > { %v1092_v7 = vadd.f32 %v1088_v6, %v3847_v57  ;;  %v3219_v8 = vpop.f32.mrb[3].mxu1 }
 0xa0a   : > { %3522 = vtanh.f32 %v1092_v7  ;;  %v3036_v10 = vmul.f32 -1.442695, %v1092_v7 }
 0xa0c   : > { %3524 = vpow2.f32 %v3036_v10 }
 0xa14   : > { %v3523_v9 = vpop.eup %3522 }
 0xa15   : > { %1113 = vrot.lane.b32.xlu0 %v3523_v9, %s3657_s30 }
 0xa16   : > { %v3525_v12 = vpop.eup %3524 }
 0xa17   : > { %v1096_v13 = vadd.f32 1.0, %v3525_v12 }
 0xa19   : > { %3526 = vrcp.f32 %v1096_v13 }
 0xa23   : > { %v3527_v14 = vpop.eup %3526 }
 0xa24   : > { %v1111_v20 = vmul.f32 %v3527_v14, %v1109_v18 }
 0xa87   : > { %v1114_v15 = vpop.permute.xlu0 %1113 }
 0xa88   : > { %v1116_v16 = vmul.f32 %v3527_v14, %v1114_v15 }
 0xa8a   : > { %1118 = vrot.lane.b32.xlu0 %v1116_v16, %s3658_s29 }
 0xa8e   : > { %1131 = vperm.xlu0 %3496, %v1129_v17  }
 0xafc   : > { %v1119_v24 = vpop.permute.xlu0 %1118 }
 0xafd   : > { %v1121_v26 = vadd.f32 %v1119_v24, %v1111_v20 }
 0xaff   : > { %3528 = vtanh.f32 %v1121_v26  ;;  %v1156_v27 = vrot.slane %v1121_v26, %v3769_v25 }
 0xb01   : > { %1157 = vrot.lane.b32.xlu0 %v1156_v27, %s3660_s6 }
 0xb09   : > { %v3529_v28 = vpop.eup %3528 }
 0xb0a   : > { %1124 = vrot.lane.b32.xlu1 %v3529_v28, %s3657_s30 }
 0xb0d   : > { %v1132_v29 = vpop.permute.xlu0 %1131 }
 0xb0e   : > { %vm1133_vm10 = vcmp.eq.s32.totalorder %v1132_v29, 1 }
 0xb73   : > { %v1158_v30 = vpop.permute.xlu0 %1157 }
 0xb74   : > { %v1160_v31 = vsel %vm1133_vm10, %v1158_v30, %v1018_v62 }
 0xb75   : > { %v1249_v32 = vrot.slane %v1160_v31, %v3769_v25 }
 0xb77   : > { %1250 = vrot.lane.b32.xlu0 %v1249_v32, %s3658_s29 }
 0xb7c   : > { %v1125_v33 = vpop.permute.xlu1 %1124 }
 0xb7d   : > { %v1127_v34 = vmul.f32 %v3527_v14, %v1125_v33 }
 0xb7f   : > { %v1141_v43 = vrot.slane %v1127_v34, %v3769_v25 }
 0xb81   : > { %1142 = vrot.lane.b32.xlu1 %v1141_v43, %s3658_s29 }
 0xbe9   : > { %v1251_v6 = vpop.permute.xlu0 %1250 }
 0xbf3   : > { %v1143_v44 = vpop.permute.xlu1 %1142 }
 0xbf4   : > { %v1145_v45 = vsel %vm1133_vm10, %v1143_v44, 0.0  ;;  %v1148_v46 = vsel %vm1133_vm10, %v1143_v44, %v1006_v5  ;;  %v1271_v5 = vsel %vm1270_vm11, 1, %v3659_v11 }
 0xbf5   : > { %3037 = vst.msk [vmem:[%s3759_s28 + $0x6] sm:$0x3] %vm387_vm0, %v1145_v45  ;;  %3229 = vmatmul.mubr.msk.f32.vlgmr.msra.gmra.mrb[4].mxu0 %vm455_vm1, %v1148_v46 }
 0xbf6   : > { %3398 = vmatpush3.bf16.msra.mxu0 %v3852_v58  ;;  %3250 = vmatprep.mubr.msk.f32.mxu0 %vm3655_vm2, %v3656_v61 }
 0xbf7   : > { %3399 = vmatprep.subr.bf16.mxu0 %v3654_v59 }
 0xbfa   : > { %3401 = vmatpush3.bf16.msra.mxu0 %v3859_v60 }
 0xcc8   : > { %v1230_v47 = vpop.f32.mrb[4].mxu0 }
 0xcc9   : > { %v1234_v48 = vadd.f32 %v1230_v47, %v3822_v49  ;;  %v3230_v50 = vpop.f32.mrb[5].mxu0 }
 0xccb   : > { %3530 = vtanh.f32 %v1234_v48  ;;  %v3039_v63 = vmul.f32 -1.442695, %v1234_v48 }
 0xccd   : > { %3532 = vpow2.f32 %v3039_v63 }
 0xcd5   : > { %v3531_v62 = vpop.eup %3530 }
 0xcd6   : > { %1255 = vrot.lane.b32.xlu1 %v3531_v62, %s3657_s30 }
 0xcd7   : > { %v3533_v0 = vpop.eup %3532 }
 0xcd8   : > { %v1238_v1 = vadd.f32 1.0, %v3533_v0 }
 0xcda   : > { %3534 = vrcp.f32 %v1238_v1 }
 0xce4   : > { %v3535_v2 = vpop.eup %3534 }
 0xce5   : > { %v1253_v7 = vmul.f32 %v3535_v2, %v1251_v6 }
 0xd48   : > { %v1256_v3 = vpop.permute.xlu1 %1255 }
 0xd49   : > { %v1258_v4 = vmul.f32 %v3535_v2, %v1256_v3 }
 0xd4b   : > { %1260 = vrot.lane.b32.xlu1 %v1258_v4, %s3658_s29 }
 0xd4f   : > { %1273 = vperm.xlu1 %3497, %v1271_v5  }
 0xdbd   : > { %v1261_v8 = vpop.permute.xlu1 %1260 }
 0xdbe   : > { %v1263_v9 = vadd.f32 %v1261_v8, %v1253_v7 }
 0xdc0   : > { %3536 = vtanh.f32 %v1263_v9  ;;  %v1298_v10 = vrot.slane %v1263_v9, %v3769_v25 }
 0xdc2   : > { %1299 = vrot.lane.b32.xlu1 %v1298_v10, %s3660_s6 }
 0xdca   : > { %v3537_v12 = vpop.eup %3536 }
 0xdcb   : > { %1266 = vrot.lane.b32.xlu0 %v3537_v12, %s3657_s30 }
 0xdce   : > { %v1274_v13 = vpop.permute.xlu1 %1273 }
 0xdcf   : > { %vm1275_vm12 = vcmp.eq.s32.totalorder %v1274_v13, 1 }
 0xe34   : > { %v1300_v14 = vpop.permute.xlu1 %1299 }
 0xe35   : > { %v1302_v15 = vsel %vm1275_vm12, %v1300_v14, %v1160_v31 }
 0xe36   : > { %v1391_v16 = vrot.slane %v1302_v15, %v3769_v25 }
 0xe38   : > { %1392 = vrot.lane.b32.xlu1 %v1391_v16, %s3658_s29 }
 0xe3d   : > { %v1267_v17 = vpop.permute.xlu0 %1266 }
 0xe3e   : > { %v1269_v18 = vmul.f32 %v3535_v2, %v1267_v17 }
 0xe40   : > { %v1283_v20 = vrot.slane %v1269_v18, %v3769_v25  ;;  %v1555_v18 = vsel %vm1554_vm15, 1, %v3659_v11 }
 0xe42   : > { %1284 = vrot.lane.b32.xlu0 %v1283_v20, %s3658_s29 }
 0xeb4   : > { %v1285_v24 = vpop.permute.xlu0 %1284 }
 0xeb5   : > { %v1287_v26 = vsel %vm1275_vm12, %v1285_v24, 0.0  ;;  %v1290_v27 = vsel %vm1275_vm12, %v1285_v24, %v1148_v46 }
 0xeb6   : > { %3040 = vst.msk [vmem:[%s3759_s28 + $0x8] sm:$0x3] %vm387_vm0, %v1287_v26  ;;  %3240 = vmatmul.mubr.msk.f32.vlgmr.msra.gmra.mrb[4].mxu1 %vm455_vm1, %v1290_v27 }
 0xeb7   : > { %3404 = vmatpush3.bf16.msra.mxu1 %v3852_v58  ;;  %3261 = vmatprep.mubr.msk.f32.mxu1 %vm3655_vm2, %v3656_v61 }
 0xeb8   : > { %3405 = vmatprep.subr.bf16.mxu1 %v3654_v59  ;;  %v1413_v59 = vsel %vm1412_vm13, 1, %v3659_v11 }
 0xebb   : > { %3407 = vmatpush3.bf16.msra.mxu1 %v3859_v60  ;;  %v1393_v60 = vpop.permute.xlu1 %1392 }
 0xf89   : > { %v1372_v28 = vpop.f32.mrb[4].mxu1 }
 0xf8a   : > { %v1376_v29 = vadd.f32 %v1372_v28, %v3832_v53  ;;  %v3241_v30 = vpop.f32.mrb[5].mxu1 }
 0xf8c   : > { %3538 = vtanh.f32 %v1376_v29  ;;  %v3042_v32 = vmul.f32 -1.442695, %v1376_v29 }
 0xf8e   : > { %3540 = vpow2.f32 %v3042_v32 }
 0xf96   : > { %v3539_v31 = vpop.eup %3538 }
 0xf97   : > { %1397 = vrot.lane.b32.xlu0 %v3539_v31, %s3657_s30 }
 0xf98   : > { %v3541_v33 = vpop.eup %3540 }
 0xf99   : > { %v1380_v34 = vadd.f32 1.0, %v3541_v33 }
 0xf9b   : > { %3542 = vrcp.f32 %v1380_v34 }
 0xfa5   : > { %v3543_v58 = vpop.eup %3542 }
 0xfa6   : > { %v1395_v44 = vmul.f32 %v3543_v58, %v1393_v60 }
0x1009   : > { %v1398_v43 = vpop.permute.xlu0 %1397 }
0x100a   : > { %v1400_v61 = vmul.f32 %v3543_v58, %v1398_v43 }
0x100c   : > { %1402 = vrot.lane.b32.xlu0 %v1400_v61, %s3658_s29 }
0x1010   : > { %1415 = vperm.xlu0 %3496, %v1413_v59  }
0x107e   : > { %v1403_v45 = vpop.permute.xlu0 %1402 }
0x107f   : > { %v1405_v46 = vadd.f32 %v1403_v45, %v1395_v44 }
0x1081   : > { %3544 = vtanh.f32 %v1405_v46  ;;  %v1440_v47 = vrot.slane %v1405_v46, %v3769_v25 }
0x1083   : > { %1441 = vrot.lane.b32.xlu0 %v1440_v47, %s3660_s6 }
0x108b   : > { %v3545_v48 = vpop.eup %3544 }
0x108c   : > { %1408 = vrot.lane.b32.xlu1 %v3545_v48, %s3657_s30 }
0x108f   : > { %v1416_v50 = vpop.permute.xlu0 %1415 }
0x1090   : > { %vm1417_vm14 = vcmp.eq.s32.totalorder %v1416_v50, 1 }
0x10f5   : > { %v1442_v62 = vpop.permute.xlu0 %1441 }
0x10f6   : > { %v1444_v63 = vsel %vm1417_vm14, %v1442_v62, %v1302_v15 }
0x10f7   : > { %v1533_v0 = vrot.slane %v1444_v63, %v3769_v25 }
0x10f9   : > { %1534 = vrot.lane.b32.xlu0 %v1533_v0, %s3658_s29 }
0x10fe   : > { %v1409_v1 = vpop.permute.xlu1 %1408 }
0x10ff   : > { %v1411_v2 = vmul.f32 %v3543_v58, %v1409_v1 }
0x1101   : > { %v1425_v3 = vrot.slane %v1411_v2, %v3769_v25  ;;  %v1697_v2 = vsel %vm1696_vm3, 1, %v3659_v11 }
0x1103   : > { %1426 = vrot.lane.b32.xlu1 %v1425_v3, %s3658_s29 }
0x116b   : > { %v1535_v20 = vpop.permute.xlu0 %1534 }
0x1175   : > { %v1427_v4 = vpop.permute.xlu1 %1426 }
0x1176   : > { %v1429_v5 = vsel %vm1417_vm14, %v1427_v4, 0.0  ;;  %v1432_v6 = vsel %vm1417_vm14, %v1427_v4, %v1290_v27 }
0x1177   : > { %3043 = vst.msk [vmem:[%s3759_s28 + $0xa] sm:$0x3] %vm387_vm0, %v1429_v5  ;;  %3251 = vmatmul.mubr.msk.f32.vlgmr.msra.gmra.mrb[6].mxu0 %vm455_vm1, %v1432_v6 }
0x124a   : > { %v1514_v7 = vpop.f32.mrb[6].mxu0 }
0x124b   : > { %v1518_v8 = vadd.f32 %v1514_v7, %v3828_v52  ;;  %v3252_v9 = vpop.f32.mrb[7].mxu0 }
0x124d   : > { %3546 = vtanh.f32 %v1518_v8  ;;  %v3045_v12 = vmul.f32 -1.442695, %v1518_v8 }
0x124f   : > { %3548 = vpow2.f32 %v3045_v12 }
0x1257   : > { %v3547_v10 = vpop.eup %3546 }
0x1258   : > { %1539 = vrot.lane.b32.xlu1 %v3547_v10, %s3657_s30 }
0x1259   : > { %v3549_v13 = vpop.eup %3548 }
0x125a   : > { %v1522_v14 = vadd.f32 1.0, %v3549_v13 }
0x125c   : > { %3550 = vrcp.f32 %v1522_v14 }
0x1266   : > { %v3551_v15 = vpop.eup %3550 }
0x1267   : > { %v1537_v24 = vmul.f32 %v3551_v15, %v1535_v20 }
0x12ca   : > { %v1540_v16 = vpop.permute.xlu1 %1539 }
0x12cb   : > { %v1542_v17 = vmul.f32 %v3551_v15, %v1540_v16 }
0x12cd   : > { %1544 = vrot.lane.b32.xlu1 %v1542_v17, %s3658_s29 }
0x12d1   : > { %1557 = vperm.xlu1 %3497, %v1555_v18  }
0x133f   : > { %v1545_v26 = vpop.permute.xlu1 %1544 }
0x1340   : > { %v1547_v27 = vadd.f32 %v1545_v26, %v1537_v24 }
0x1342   : > { %3552 = vtanh.f32 %v1547_v27  ;;  %v1582_v28 = vrot.slane %v1547_v27, %v3769_v25 }
0x1344   : > { %1583 = vrot.lane.b32.xlu1 %v1582_v28, %s3660_s6 }
0x134c   : > { %v3553_v29 = vpop.eup %3552 }
0x134d   : > { %1550 = vrot.lane.b32.xlu0 %v3553_v29, %s3657_s30 }
0x1350   : > { %v1558_v30 = vpop.permute.xlu1 %1557 }
0x1351   : > { %vm1559_vm2 = vcmp.eq.s32.totalorder %v1558_v30, 1 }
0x13b6   : > { %v1584_v31 = vpop.permute.xlu1 %1583 }
0x13b7   : > { %v1586_v32 = vsel %vm1559_vm2, %v1584_v31, %v1444_v63 }
0x13b8   : > { %v1675_v33 = vrot.slane %v1586_v32, %v3769_v25 }
0x13ba   : > { %1676 = vrot.lane.b32.xlu1 %v1675_v33, %s3658_s29 }
0x13bf   : > { %v1551_v34 = vpop.permute.xlu0 %1550 }
0x13c0   : > { %v1553_v58 = vmul.f32 %v3551_v15, %v1551_v34 }
0x13c2   : > { %v1567_v43 = vrot.slane %v1553_v58, %v3769_v25 }
0x13c4   : > { %1568 = vrot.lane.b32.xlu0 %v1567_v43, %s3658_s29 }
0x142c   : > { %v1677_v3 = vpop.permute.xlu1 %1676 }
0x1436   : > { %v1569_v61 = vpop.permute.xlu0 %1568 }
0x1437   : > { %v1571_v59 = vsel %vm1559_vm2, %v1569_v61, 0.0  ;;  %v1574_v60 = vsel %vm1559_vm2, %v1569_v61, %v1432_v6 }
0x1438   : > { %3046 = vst.msk [vmem:[%s3759_s28 + $0xc] sm:$0x3] %vm387_vm0, %v1571_v59  ;;  %3262 = vmatmul.mubr.msk.f32.vlgmr.msra.gmra.mrb[6].mxu1 %vm455_vm1, %v1574_v60 }
0x150b   : > { %v1656_v44 = vpop.f32.mrb[6].mxu1 }
0x150c   : > { %v1660_v45 = vadd.f32 %v1656_v44, %v3843_v56  ;;  %v3263_v46 = vpop.f32.mrb[7].mxu1 }
0x150e   : > { %3554 = vtanh.f32 %v1660_v45  ;;  %v3048_v48 = vmul.f32 -1.442695, %v1660_v45 }
0x1510   : > { %3556 = vpow2.f32 %v3048_v48 }
0x1518   : > { %v3555_v47 = vpop.eup %3554 }
0x1519   : > { %1681 = vrot.lane.b32.xlu0 %v3555_v47, %s3657_s30 }
0x151a   : > { %v3557_v50 = vpop.eup %3556 }
0x151b   : > { %v1664_v62 = vadd.f32 1.0, %v3557_v50 }
0x151d   : > { %3558 = vrcp.f32 %v1664_v62 }
0x1527   : > { %v3559_v63 = vpop.eup %3558 }
0x1528   : > { %v1679_v4 = vmul.f32 %v3559_v63, %v1677_v3 }
0x158b   : > { %v1682_v0 = vpop.permute.xlu0 %1681 }
0x158c   : > { %v1684_v1 = vmul.f32 %v3559_v63, %v1682_v0 }
0x158e   : > { %1686 = vrot.lane.b32.xlu0 %v1684_v1, %s3658_s29 }
0x1592   : > { %1699 = vperm.xlu0 %3496, %v1697_v2  }
0x1600   : > { %v1687_v5 = vpop.permute.xlu0 %1686 }
0x1601   : > { %v1689_v6 = vadd.f32 %v1687_v5, %v1679_v4 }
0x1603   : > { %3560 = vtanh.f32 %v1689_v6  ;;  %v1724_v7 = vrot.slane %v1689_v6, %v3769_v25 }
0x1605   : > { %1725 = vrot.lane.b32.xlu0 %v1724_v7, %s3660_s6 }
0x160d   : > { %v3561_v8 = vpop.eup %3560 }
0x160e   : > { %1692 = vrot.lane.b32.xlu1 %v3561_v8, %s3657_s30 }
0x1611   : > { %v1700_v9 = vpop.permute.xlu0 %1699 }
0x1612   : > { %vm1701_vm4 = vcmp.eq.s32.totalorder %v1700_v9, 1 }
0x1677   : > { %v1726_v10 = vpop.permute.xlu0 %1725 }
0x1678   : > { %v1728_v12 = vsel %vm1701_vm4, %v1726_v10, %v1586_v32 }
0x1679   : > { %1730 = vst.msk [vmem:[#allocation3] sm:$0x3] %vm387_vm0, %v1728_v12 }
0x1680   : > { %v1693_v11 = vpop.permute.xlu1 %1692 }
0x1681   : > { %v1695_v13 = vmul.f32 %v3559_v63, %v1693_v11 }
0x1683   : > { %v1709_v14 = vrot.slane %v1695_v13, %v3769_v25 }
0x1685   : > { %1710 = vrot.lane.b32.xlu1 %v1709_v14, %s3658_s29 }
0x16f7   : > { %v1711_v15 = vpop.permute.xlu1 %1710 }
0x16f8   : > { %v1713_v16 = vsel %vm1701_vm4, %v1711_v15, 0.0  ;;  %v1716_v17 = vsel %vm1701_vm4, %v1711_v15, %v1574_v60 }
0x16f9   : > { %3049 = vst.msk [vmem:[%s3759_s28 + $0xe] sm:$0x3] %vm387_vm0, %v1713_v16  ;;  %1729 = vst.msk [vmem:[#allocation2] sm:$0x3] %vm387_vm0, %v1716_v17 }
0x16fa PF: > { %p3050_p6 = scmp.ne.s32.totalorder %s3642_s18, 1 }
0x16fb   : > { %v4033_v18 = vpack.c.bf16 (!%p3050_p6), %v3763_v21, %v3761_v19  ;;  %v3661_v20 = vmov (!%p3050_p6), 0.0|0.0   ;;  %v4040_v24 = vpack.c.bf16 (!%p3050_p6), %v3767_v23, %v3765_v22  ;;  %vm3662_vm5 = vmmov (!%p3050_p6), 0   ;;  %v1736_v27 = vld [vmem:[#allocation3] sm:$0x3] (!%p3050_p6)  ;;  %s3664_s18 = smov (!%p3050_p6), 64   ;;  %s3665_s7 = smov (!%p3050_p6), 32  }
0x16fc   : > { %1734 = sbr.rel (%p3050_p6) target bundleno = 11533 (0x2d0d), region = 52  ;;  %3408 = vmatprep.subr.bf16.mxu0 (!%p3050_p6), %v3661_v20  ;;  %3414 = vmatprep.subr.bf16.mxu1 (!%p3050_p6), %v3661_v20  ;;  %v3663_v26 = vmov (!%p3050_p6), 0.0   ;;  %v1825_v29 = vrot.slane (!%p3050_p6), %v1736_v27, %v3769_v25  ;;  %vm1846_vm6 = vcmp.gt.f32.partialorder (!%p3050_p6), %v3815_v42, 0.0  ;;  %v3666_v58 = vmov (!%p3050_p6), 0   ;;  %s3667_s8 = smov (!%p3050_p6), 96  }
0x16fd   : > { %3410 = vmatpush3.bf16.msra.mxu0 (!%p3050_p6), %v4033_v18  ;;  %3272 = vmatprep.mubr.msk.f32.mxu0 (!%p3050_p6), %vm3662_vm5, %v3663_v26  ;;  %v1847_v43 = vsel (!%p3050_p6), %vm1846_vm6, 1, %v3666_v58  ;;  %vm1989_vm8 = vcmp.gt.f32.partialorder (!%p3050_p6), %v3810_v41, 0.0  ;;  %vm2131_vm10 = vcmp.gt.f32.partialorder (!%p3050_p6), %v3805_v40, 0.0  ;;  %vm2273_vm12 = vcmp.gt.f32.partialorder (!%p3050_p6), %v3800_v39, 0.0 }
0x16fe   : > { %3411 = vmatprep.subr.bf16.mxu0 (!%p3050_p6), %v3661_v20  ;;  %3416 = vmatpush3.bf16.msra.mxu1 (!%p3050_p6), %v4033_v18  ;;  %v1990_v14 = vsel (!%p3050_p6), %vm1989_vm8, 1, %v3666_v58  ;;  %vm2415_vm14 = vcmp.gt.f32.partialorder (!%p3050_p6), %v3795_v38, 0.0  ;;  %vm2557_vm2 = vcmp.gt.f32.partialorder (!%p3050_p6), %v3790_v37, 0.0  ;;  %vm2699_vm4 = vcmp.gt.f32.partialorder (!%p3050_p6), %v3785_v36, 0.0 }
0x16ff   : > { %3417 = vmatprep.subr.bf16.mxu1 (!%p3050_p6), %v3661_v20  ;;  %3283 = vmatprep.mubr.msk.f32.mxu1 (!%p3050_p6), %vm3662_vm5, %v3663_v26  ;;  %vm2841_vm6 = vcmp.gt.f32.partialorder (!%p3050_p6), %v3780_v35, 0.0 }
0x1700   : > { %v1735_v19 = vld [vmem:[#allocation2] sm:$0x3] (!%p3050_p6)  ;;  %3562 = vset.pattern.permute.xlu0 (!%p3050_p6), %v3666_v58  ;;  %3563 = vset.pattern.permute.xlu1 (!%p3050_p6), %v3666_v58 }
0x1701   : > { %3413 = vmatpush3.bf16.msra.mxu0 (!%p3050_p6), %v4040_v24 }
0x1702   : > { %3419 = vmatpush3.bf16.msra.mxu1 (!%p3050_p6), %v4040_v24  ;;  %3420 = vmatprep.subr.bf16.mxu0 (!%p3050_p6), %v3661_v20 }
0x1703   : > { %3426 = vmatprep.subr.bf16.mxu1 %v3661_v20 }
0x1704   : > { %3273 = vmatmul.mubr.msk.f32.vlgmr.msra.gmra.mrb[0].mxu0 %vm455_vm1, %v1735_v19 }
0x1705   : > { %3422 = vmatpush3.bf16.msra.mxu0 %v4033_v18  ;;  %3294 = vmatprep.mubr.msk.f32.mxu0 %vm3662_vm5, %v3663_v26 }
0x1706   : > { %3423 = vmatprep.subr.bf16.mxu0 %v3661_v20 }
0x1709   : > { %3425 = vmatpush3.bf16.msra.mxu0 %v4040_v24 }
0x170a   : > { %3432 = vmatprep.subr.bf16.mxu0 %v3661_v20 }
0x17d7   : > { %v1806_v21 = vpop.f32.mrb[0].mxu0 }
0x17d8   : > { %v1810_v22 = vadd.f32 %v1806_v21, %v3843_v56  ;;  %v3274_v23 = vpop.f32.mrb[1].mxu0 }
0x17da   : > { %3564 = vtanh.f32 %v1810_v22  ;;  %v3052_v30 = vmul.f32 -1.442695, %v1810_v22 }
0x17dc   : > { %3566 = vpow2.f32 %v3052_v30 }
0x17e4   : > { %v3565_v28 = vpop.eup %3564 }
0x17e5   : > { %1831 = vrot.lane.b32.xlu0 %v3565_v28, %s3664_s18 }
0x17e6   : > { %v3567_v31 = vpop.eup %3566 }
0x17e7   : > { %v1814_v32 = vadd.f32 1.0, %v3567_v31 }
0x17e9   : > { %1826 = vrot.lane.b32.xlu0 %v1825_v29, %s3665_s7  ;;  %3568 = vrcp.f32 %v1814_v32 }
0x17ed   : > { %1849 = vperm.xlu0 %3562, %v1847_v43  }
0x17f3   : > { %v3569_v33 = vpop.eup %3568 }
0x1857   : > { %v1832_v34 = vpop.permute.xlu0 %1831 }
0x1858   : > { %v1834_v56 = vmul.f32 %v3569_v33, %v1832_v34 }
0x185a   : > { %1836 = vrot.lane.b32.xlu1 %v1834_v56, %s3665_s7 }
0x185b   : > { %v1827_v61 = vpop.permute.xlu0 %1826 }
0x185c   : > { %v1829_v59 = vmul.f32 %v3569_v33, %v1827_v61 }
0x186c   : > { %v1850_v50 = vpop.permute.xlu0 %1849 }
0x186d   : > { %vm1851_vm7 = vcmp.eq.s32.totalorder %v1850_v50, 1 }
0x18cc   : > { %v1837_v60 = vpop.permute.xlu1 %1836 }
0x18cd   : > { %v1839_v44 = vadd.f32 %v1837_v60, %v1829_v59 }
0x18cf   : > { %3570 = vtanh.f32 %v1839_v44  ;;  %v1875_v48 = vrot.slane %v1839_v44, %v3769_v25 }
0x18d9   : > { %v3571_v45 = vpop.eup %3570 }
0x18da   : > { %1842 = vrot.lane.b32.xlu1 %v3571_v45, %s3664_s18 }
0x194c   : > { %v1843_v46 = vpop.permute.xlu1 %1842 }
0x194d   : > { %v1845_v47 = vmul.f32 %v3569_v33, %v1843_v46 }
0x194f   : > { %v1859_v42 = vrot.slane %v1845_v47, %v3769_v25 }
0x1951   : > { %1860 = vrot.lane.b32.xlu1 %v1859_v42, %s3665_s7  ;;  %v2132_v42 = vsel %vm2131_vm10, 1, %v3666_v58 }
0x1955   : > { %1876 = vrot.lane.b32.xlu1 %v1875_v48, %s3667_s8 }
0x19c3   : > { %v1861_v62 = vpop.permute.xlu1 %1860 }
0x19c4   : > { %v1863_v63 = vsel %vm1851_vm7, %v1861_v62, 0.0  ;;  %v1867_v0 = vsel %vm1851_vm7, %v1861_v62, %v1735_v19 }
0x19c5   : > { %3053 = vst.msk [vmem:[%s3759_s28 + $0xe] sm:$0x3] %vm387_vm0, %v1863_v63  ;;  %3284 = vmatmul.mubr.msk.f32.vlgmr.msra.gmra.mrb[0].mxu1 %vm455_vm1, %v1867_v0 }
0x19c6   : > { %3428 = vmatpush3.bf16.msra.mxu1 %v4033_v18  ;;  %3305 = vmatprep.mubr.msk.f32.mxu1 %vm3662_vm5, %v3663_v26 }
0x19c7   : > { %v1877_v1 = vpop.permute.xlu1 %1876  ;;  %3429 = vmatprep.subr.bf16.mxu1 %v3661_v20 }
0x19c8   : > { %v1879_v2 = vsel %vm1851_vm7, %v1877_v1, %v1736_v27 }
0x19c9   : > { %v1968_v3 = vrot.slane %v1879_v2, %v3769_v25 }
0x19ca   : > { %3431 = vmatpush3.bf16.msra.mxu1 %v4040_v24 }
0x19cb   : > { %1969 = vrot.lane.b32.xlu1 %v1968_v3, %s3665_s7  ;;  %3438 = vmatprep.subr.bf16.mxu1 %v3661_v20 }
0x1a98   : > { %v1949_v4 = vpop.f32.mrb[0].mxu1 }
0x1a99   : > { %v1953_v5 = vadd.f32 %v1949_v4, %v3828_v52  ;;  %v3285_v6 = vpop.f32.mrb[1].mxu1  ;;  %v1970_v52 = vpop.permute.xlu1 %1969 }
0x1a9b   : > { %3572 = vtanh.f32 %v1953_v5  ;;  %v3055_v8 = vmul.f32 -1.442695, %v1953_v5 }
0x1a9d   : > { %3574 = vpow2.f32 %v3055_v8 }
0x1aa5   : > { %v3573_v7 = vpop.eup %3572 }
0x1aa6   : > { %1974 = vrot.lane.b32.xlu0 %v3573_v7, %s3664_s18 }
0x1aa7   : > { %v3575_v9 = vpop.eup %3574 }
0x1aa8   : > { %v1957_v10 = vadd.f32 1.0, %v3575_v9 }
0x1aaa   : > { %3576 = vrcp.f32 %v1957_v10 }
0x1ab4   : > { %v3577_v12 = vpop.eup %3576 }
0x1ab5   : > { %v1972_v15 = vmul.f32 %v3577_v12, %v1970_v52 }
0x1b18   : > { %v1975_v11 = vpop.permute.xlu0 %1974 }
0x1b19   : > { %v1977_v13 = vmul.f32 %v3577_v12, %v1975_v11 }
0x1b1b   : > { %1979 = vrot.lane.b32.xlu0 %v1977_v13, %s3665_s7 }
0x1b1f   : > { %1992 = vperm.xlu0 %3562, %v1990_v14  }
0x1b8d   : > { %v1980_v16 = vpop.permute.xlu0 %1979 }
0x1b8e   : > { %v1982_v17 = vadd.f32 %v1980_v16, %v1972_v15 }
0x1b90   : > { %3578 = vtanh.f32 %v1982_v17  ;;  %v2017_v19 = vrot.slane %v1982_v17, %v3769_v25 }
0x1b92   : > { %2018 = vrot.lane.b32.xlu0 %v2017_v19, %s3667_s8 }
0x1b9a   : > { %v3579_v21 = vpop.eup %3578 }
0x1b9b   : > { %1985 = vrot.lane.b32.xlu1 %v3579_v21, %s3664_s18  ;;  %v2274_v21 = vsel %vm2273_vm12, 1, %v3666_v58 }
0x1b9e   : > { %v1993_v22 = vpop.permute.xlu0 %1992 }
0x1b9f   : > { %vm1994_vm9 = vcmp.eq.s32.totalorder %v1993_v22, 1 }
0x1c04   : > { %v2019_v41 = vpop.permute.xlu0 %2018 }
0x1c05   : > { %v2021_v23 = vsel %vm1994_vm9, %v2019_v41, %v1879_v2 }
0x1c06   : > { %v2110_v27 = vrot.slane %v2021_v23, %v3769_v25 }
0x1c08   : > { %2111 = vrot.lane.b32.xlu0 %v2110_v27, %s3665_s7 }
0x1c0d   : > { %v1986_v28 = vpop.permute.xlu1 %1985 }
0x1c0e   : > { %v1988_v29 = vmul.f32 %v3577_v12, %v1986_v28 }
0x1c10   : > { %v2002_v30 = vrot.slane %v1988_v29, %v3769_v25 }
0x1c12   : > { %2003 = vrot.lane.b32.xlu1 %v2002_v30, %s3665_s7 }
0x1c84   : > { %v2004_v31 = vpop.permute.xlu1 %2003 }
0x1c85   : > { %v2006_v32 = vsel %vm1994_vm9, %v2004_v31, 0.0  ;;  %v2009_v33 = vsel %vm1994_vm9, %v2004_v31, %v1867_v0 }
0x1c86   : > { %3056 = vst.msk [vmem:[%s3759_s28 + $0xc] sm:$0x3] %vm387_vm0, %v2006_v32  ;;  %3295 = vmatmul.mubr.msk.f32.vlgmr.msra.gmra.mrb[2].mxu0 %vm455_vm1, %v2009_v33 }
0x1c87   : > { %3434 = vmatpush3.bf16.msra.mxu0 %v4033_v18  ;;  %3316 = vmatprep.mubr.msk.f32.mxu0 %vm3662_vm5, %v3663_v26 }
0x1c88   : > { %3435 = vmatprep.subr.bf16.mxu0 %v3661_v20 }
0x1c8b   : > { %3437 = vmatpush3.bf16.msra.mxu0 %v4040_v24 }
0x1c8c   : > { %3444 = vmatprep.subr.bf16.mxu0 %v3661_v20 }
0x1d59   : > { %v2091_v34 = vpop.f32.mrb[2].mxu0 }
0x1d5a   : > { %v2095_v56 = vadd.f32 %v2091_v34, %v3832_v53  ;;  %v3296_v43 = vpop.f32.mrb[3].mxu0  ;;  %v2112_v53 = vpop.permute.xlu0 %2111 }
0x1d5c   : > { %3580 = vtanh.f32 %v2095_v56  ;;  %v3058_v59 = vmul.f32 -1.442695, %v2095_v56 }
0x1d5e   : > { %3582 = vpow2.f32 %v3058_v59 }
0x1d66   : > { %v3581_v61 = vpop.eup %3580 }
0x1d67   : > { %2116 = vrot.lane.b32.xlu1 %v3581_v61, %s3664_s18 }
0x1d68   : > { %v3583_v60 = vpop.eup %3582 }
0x1d69   : > { %v2099_v44 = vadd.f32 1.0, %v3583_v60 }
0x1d6b   : > { %3584 = vrcp.f32 %v2099_v44 }
0x1d75   : > { %v3585_v45 = vpop.eup %3584 }
0x1d76   : > { %v2114_v48 = vmul.f32 %v3585_v45, %v2112_v53 }
0x1dd9   : > { %v2117_v46 = vpop.permute.xlu1 %2116 }
0x1dda   : > { %v2119_v47 = vmul.f32 %v3585_v45, %v2117_v46 }
0x1ddc   : > { %2121 = vrot.lane.b32.xlu1 %v2119_v47, %s3665_s7 }
0x1de0   : > { %2134 = vperm.xlu1 %3563, %v2132_v42  }
0x1e4e   : > { %v2122_v50 = vpop.permute.xlu1 %2121 }
0x1e4f   : > { %v2124_v62 = vadd.f32 %v2122_v50, %v2114_v48 }
0x1e51   : > { %3586 = vtanh.f32 %v2124_v62  ;;  %v2159_v63 = vrot.slane %v2124_v62, %v3769_v25  ;;  %v2416_v62 = vsel %vm2415_vm14, 1, %v3666_v58 }
0x1e53   : > { %2160 = vrot.lane.b32.xlu1 %v2159_v63, %s3667_s8 }
0x1e5b   : > { %v3587_v0 = vpop.eup %3586 }
0x1e5c   : > { %2127 = vrot.lane.b32.xlu0 %v3587_v0, %s3664_s18 }
0x1e5f   : > { %v2135_v1 = vpop.permute.xlu1 %2134 }
0x1e60   : > { %vm2136_vm11 = vcmp.eq.s32.totalorder %v2135_v1, 1 }
0x1ec5   : > { %v2161_v40 = vpop.permute.xlu1 %2160 }
0x1ec6   : > { %v2163_v2 = vsel %vm2136_vm11, %v2161_v40, %v2021_v23 }
0x1ec7   : > { %v2252_v3 = vrot.slane %v2163_v2, %v3769_v25 }
0x1ec9   : > { %2253 = vrot.lane.b32.xlu1 %v2252_v3, %s3665_s7 }
0x1ece   : > { %v2128_v4 = vpop.permute.xlu0 %2127 }
0x1ecf   : > { %v2130_v5 = vmul.f32 %v3585_v45, %v2128_v4 }
0x1ed1   : > { %v2144_v6 = vrot.slane %v2130_v5, %v3769_v25 }
0x1ed3   : > { %2145 = vrot.lane.b32.xlu0 %v2144_v6, %s3665_s7 }
0x1f45   : > { %v2146_v7 = vpop.permute.xlu0 %2145 }
0x1f46   : > { %v2148_v8 = vsel %vm2136_vm11, %v2146_v7, 0.0  ;;  %v2151_v9 = vsel %vm2136_vm11, %v2146_v7, %v2009_v33 }
0x1f47   : > { %3059 = vst.msk [vmem:[%s3759_s28 + $0xa] sm:$0x3] %vm387_vm0, %v2148_v8  ;;  %3306 = vmatmul.mubr.msk.f32.vlgmr.msra.gmra.mrb[2].mxu1 %vm455_vm1, %v2151_v9 }
0x1f48   : > { %3440 = vmatpush3.bf16.msra.mxu1 %v4033_v18  ;;  %3327 = vmatprep.mubr.msk.f32.mxu1 %vm3662_vm5, %v3663_v26 }
0x1f49   : > { %3441 = vmatprep.subr.bf16.mxu1 %v3661_v20 }
0x1f4c   : > { %3443 = vmatpush3.bf16.msra.mxu1 %v4040_v24 }
0x1f4d   : > { %3450 = vmatprep.subr.bf16.mxu1 %v3661_v20 }
0x201a   : > { %v2233_v10 = vpop.f32.mrb[2].mxu1 }
0x201b   : > { %v2237_v12 = vadd.f32 %v2233_v10, %v3822_v49  ;;  %v3307_v11 = vpop.f32.mrb[3].mxu1  ;;  %v2254_v49 = vpop.permute.xlu1 %2253 }
0x201d   : > { %3588 = vtanh.f32 %v2237_v12  ;;  %v3061_v14 = vmul.f32 -1.442695, %v2237_v12 }
0x201f   : > { %3590 = vpow2.f32 %v3061_v14 }
0x2027   : > { %v3589_v13 = vpop.eup %3588 }
0x2028   : > { %2258 = vrot.lane.b32.xlu0 %v3589_v13, %s3664_s18 }
0x2029   : > { %v3591_v52 = vpop.eup %3590 }
0x202a   : > { %v2241_v15 = vadd.f32 1.0, %v3591_v52 }
0x202c   : > { %3592 = vrcp.f32 %v2241_v15 }
0x2036   : > { %v3593_v16 = vpop.eup %3592 }
0x2037   : > { %v2256_v22 = vmul.f32 %v3593_v16, %v2254_v49 }
0x209a   : > { %v2259_v17 = vpop.permute.xlu0 %2258 }
0x209b   : > { %v2261_v19 = vmul.f32 %v3593_v16, %v2259_v17 }
0x209d   : > { %2263 = vrot.lane.b32.xlu0 %v2261_v19, %s3665_s7 }
0x20a1   : > { %2276 = vperm.xlu0 %3562, %v2274_v21  }
0x210f   : > { %v2264_v41 = vpop.permute.xlu0 %2263 }
0x2110   : > { %v2266_v23 = vadd.f32 %v2264_v41, %v2256_v22 }
0x2112   : > { %3594 = vtanh.f32 %v2266_v23  ;;  %v2301_v27 = vrot.slane %v2266_v23, %v3769_v25 }
0x2114   : > { %2302 = vrot.lane.b32.xlu0 %v2301_v27, %s3667_s8 }
0x211c   : > { %v3595_v28 = vpop.eup %3594 }
0x211d   : > { %2269 = vrot.lane.b32.xlu1 %v3595_v28, %s3664_s18 }
0x2120   : > { %v2277_v29 = vpop.permute.xlu0 %2276 }
0x2121   : > { %vm2278_vm13 = vcmp.eq.s32.totalorder %v2277_v29, 1 }
0x2186   : > { %v2303_v39 = vpop.permute.xlu0 %2302 }
0x2187   : > { %v2305_v30 = vsel %vm2278_vm13, %v2303_v39, %v2163_v2 }
0x2188   : > { %v2394_v31 = vrot.slane %v2305_v30, %v3769_v25 }
0x218a   : > { %2395 = vrot.lane.b32.xlu0 %v2394_v31, %s3665_s7 }
0x218f   : > { %v2270_v32 = vpop.permute.xlu1 %2269 }
0x2190   : > { %v2272_v33 = vmul.f32 %v3593_v16, %v2270_v32 }
0x2192   : > { %v2286_v34 = vrot.slane %v2272_v33, %v3769_v25 }
0x2194   : > { %2287 = vrot.lane.b32.xlu1 %v2286_v34, %s3665_s7 }
0x2206   : > { %v2288_v56 = vpop.permute.xlu1 %2287 }
0x2207   : > { %v2290_v43 = vsel %vm2278_vm13, %v2288_v56, 0.0  ;;  %v2293_v61 = vsel %vm2278_vm13, %v2288_v56, %v2151_v9 }
0x2208   : > { %3062 = vst.msk [vmem:[%s3759_s28 + $0x8] sm:$0x3] %vm387_vm0, %v2290_v43  ;;  %3317 = vmatmul.mubr.msk.f32.vlgmr.msra.gmra.mrb[4].mxu0 %vm455_vm1, %v2293_v61 }
0x2209   : > { %3446 = vmatpush3.bf16.msra.mxu0 %v4033_v18  ;;  %3338 = vmatprep.mubr.msk.f32.mxu0 %vm3662_vm5, %v3663_v26 }
0x220a   : > { %3447 = vmatprep.subr.bf16.mxu0 %v3661_v20 }
0x220d   : > { %3449 = vmatpush3.bf16.msra.mxu0 %v4040_v24 }
0x22db   : > { %v2375_v59 = vpop.f32.mrb[4].mxu0 }
0x22dc   : > { %v2379_v60 = vadd.f32 %v2375_v59, %v3847_v57  ;;  %v3318_v44 = vpop.f32.mrb[5].mxu0  ;;  %v2396_v57 = vpop.permute.xlu0 %2395 }
0x22de   : > { %3596 = vtanh.f32 %v2379_v60  ;;  %v3064_v46 = vmul.f32 -1.442695, %v2379_v60 }
0x22e0   : > { %3598 = vpow2.f32 %v3064_v46 }
0x22e8   : > { %v3597_v45 = vpop.eup %3596 }
0x22e9   : > { %2400 = vrot.lane.b32.xlu1 %v3597_v45, %s3664_s18 }
0x22ea   : > { %v3599_v47 = vpop.eup %3598 }
0x22eb   : > { %v2383_v42 = vadd.f32 1.0, %v3599_v47 }
0x22ed   : > { %3600 = vrcp.f32 %v2383_v42  ;;  %v2700_v42 = vsel %vm2699_vm4, 1, %v3666_v58 }
0x22f7   : > { %v3601_v53 = vpop.eup %3600 }
0x22f8   : > { %v2398_v63 = vmul.f32 %v3601_v53, %v2396_v57 }
0x235b   : > { %v2401_v48 = vpop.permute.xlu1 %2400 }
0x235c   : > { %v2403_v50 = vmul.f32 %v3601_v53, %v2401_v48 }
0x235e   : > { %2405 = vrot.lane.b32.xlu1 %v2403_v50, %s3665_s7 }
0x2362   : > { %2418 = vperm.xlu1 %3563, %v2416_v62  }
0x23d0   : > { %v2406_v0 = vpop.permute.xlu1 %2405 }
0x23d1   : > { %v2408_v1 = vadd.f32 %v2406_v0, %v2398_v63 }
0x23d3   : > { %3602 = vtanh.f32 %v2408_v1  ;;  %v2443_v40 = vrot.slane %v2408_v1, %v3769_v25 }
0x23d5   : > { %2444 = vrot.lane.b32.xlu1 %v2443_v40, %s3667_s8 }
0x23dd   : > { %v3603_v2 = vpop.eup %3602 }
0x23de   : > { %2411 = vrot.lane.b32.xlu0 %v3603_v2, %s3664_s18 }
0x23e1   : > { %v2419_v3 = vpop.permute.xlu1 %2418 }
0x23e2   : > { %vm2420_vm15 = vcmp.eq.s32.totalorder %v2419_v3, 1 }
0x2447   : > { %v2445_v38 = vpop.permute.xlu1 %2444 }
0x2448   : > { %v2447_v4 = vsel %vm2420_vm15, %v2445_v38, %v2305_v30 }
0x2449   : > { %v2536_v5 = vrot.slane %v2447_v4, %v3769_v25 }
0x244b   : > { %2537 = vrot.lane.b32.xlu1 %v2536_v5, %s3665_s7 }
0x2450   : > { %v2412_v6 = vpop.permute.xlu0 %2411 }
0x2451   : > { %v2414_v7 = vmul.f32 %v3601_v53, %v2412_v6 }
0x2453   : > { %v2428_v8 = vrot.slane %v2414_v7, %v3769_v25 }
0x2455   : > { %2429 = vrot.lane.b32.xlu0 %v2428_v8, %s3665_s7 }
0x24c7   : > { %v2430_v9 = vpop.permute.xlu0 %2429 }
0x24c8   : > { %v2432_v10 = vsel %vm2420_vm15, %v2430_v9, 0.0  ;;  %v2435_v12 = vsel %vm2420_vm15, %v2430_v9, %v2293_v61 }
0x24c9   : > { %3065 = vst.msk [vmem:[%s3759_s28 + $0x6] sm:$0x3] %vm387_vm0, %v2432_v10  ;;  %3328 = vmatmul.mubr.msk.f32.vlgmr.msra.gmra.mrb[4].mxu1 %vm455_vm1, %v2435_v12 }
0x24ca   : > { %3452 = vmatpush3.bf16.msra.mxu1 %v4033_v18  ;;  %3349 = vmatprep.mubr.msk.f32.mxu1 %vm3662_vm5, %v3663_v26 }
0x24cb   : > { %3453 = vmatprep.subr.bf16.mxu1 %v3661_v20  ;;  %v2558_v20 = vsel %vm2557_vm2, 1, %v3666_v58 }
0x24ce   : > { %3455 = vmatpush3.bf16.msra.mxu1 %v4040_v24 }
0x259c   : > { %v2517_v11 = vpop.f32.mrb[4].mxu1 }
0x259d   : > { %v2521_v13 = vadd.f32 %v2517_v11, %v3835_v54  ;;  %v3329_v14 = vpop.f32.mrb[5].mxu1  ;;  %v2538_v54 = vpop.permute.xlu1 %2537 }
0x259f   : > { %3604 = vtanh.f32 %v2521_v13  ;;  %v3067_v15 = vmul.f32 -1.442695, %v2521_v13 }
0x25a1   : > { %3606 = vpow2.f32 %v3067_v15  ;;  %v2842_v15 = vsel %vm2841_vm6, 1, %v3666_v58 }
0x25a9   : > { %v3605_v52 = vpop.eup %3604 }
0x25aa   : > { %2542 = vrot.lane.b32.xlu0 %v3605_v52, %s3664_s18 }
0x25ab   : > { %v3607_v16 = vpop.eup %3606 }
0x25ac   : > { %v2525_v17 = vadd.f32 1.0, %v3607_v16 }
0x25ae   : > { %3608 = vrcp.f32 %v2525_v17 }
0x25b8   : > { %v3609_v18 = vpop.eup %3608 }
0x25b9   : > { %v2540_v24 = vmul.f32 %v3609_v18, %v2538_v54 }
0x261c   : > { %v2543_v19 = vpop.permute.xlu0 %2542 }
0x261d   : > { %v2545_v26 = vmul.f32 %v3609_v18, %v2543_v19 }
0x261f   : > { %2547 = vrot.lane.b32.xlu0 %v2545_v26, %s3665_s7 }
0x2623   : > { %2560 = vperm.xlu0 %3562, %v2558_v20  }
0x2691   : > { %v2548_v21 = vpop.permute.xlu0 %2547 }
0x2692   : > { %v2550_v49 = vadd.f32 %v2548_v21, %v2540_v24 }
0x2694   : > { %3610 = vtanh.f32 %v2550_v49  ;;  %v2585_v22 = vrot.slane %v2550_v49, %v3769_v25 }
0x2696   : > { %2586 = vrot.lane.b32.xlu0 %v2585_v22, %s3667_s8 }
0x269e   : > { %v3611_v41 = vpop.eup %3610 }
0x269f   : > { %2553 = vrot.lane.b32.xlu1 %v3611_v41, %s3664_s18 }
0x26a2   : > { %v2561_v23 = vpop.permute.xlu0 %2560 }
0x26a3   : > { %vm2562_vm3 = vcmp.eq.s32.totalorder %v2561_v23, 1 }
0x2708   : > { %v2587_v37 = vpop.permute.xlu0 %2586 }
0x2709   : > { %v2589_v27 = vsel %vm2562_vm3, %v2587_v37, %v2447_v4 }
0x270a   : > { %v2678_v28 = vrot.slane %v2589_v27, %v3769_v25 }
0x270c   : > { %2679 = vrot.lane.b32.xlu0 %v2678_v28, %s3665_s7 }
0x2711   : > { %v2554_v29 = vpop.permute.xlu1 %2553 }
0x2712   : > { %v2556_v39 = vmul.f32 %v3609_v18, %v2554_v29 }
0x2714   : > { %v2570_v30 = vrot.slane %v2556_v39, %v3769_v25 }
0x2716   : > { %2571 = vrot.lane.b32.xlu1 %v2570_v30, %s3665_s7 }
0x2788   : > { %v2572_v31 = vpop.permute.xlu1 %2571 }
0x2789   : > { %v2574_v32 = vsel %vm2562_vm3, %v2572_v31, 0.0  ;;  %v2577_v33 = vsel %vm2562_vm3, %v2572_v31, %v2435_v12 }
0x278a   : > { %3068 = vst.msk [vmem:[%s3759_s28 + $0x4] sm:$0x3] %vm387_vm0, %v2574_v32  ;;  %3339 = vmatmul.mubr.msk.f32.vlgmr.msra.gmra.mrb[6].mxu0 %vm455_vm1, %v2577_v33 }
0x285d   : > { %v2659_v34 = vpop.f32.mrb[6].mxu0 }
0x285e   : > { %v2663_v56 = vadd.f32 %v2659_v34, %v3839_v55  ;;  %v3340_v43 = vpop.f32.mrb[7].mxu0  ;;  %v2680_v55 = vpop.permute.xlu0 %2679 }
0x2860   : > { %3612 = vtanh.f32 %v2663_v56  ;;  %v3070_v59 = vmul.f32 -1.442695, %v2663_v56 }
0x2862   : > { %3614 = vpow2.f32 %v3070_v59 }
0x286a   : > { %v3613_v61 = vpop.eup %3612 }
0x286b   : > { %2684 = vrot.lane.b32.xlu1 %v3613_v61, %s3664_s18 }
0x286c   : > { %v3615_v60 = vpop.eup %3614 }
0x286d   : > { %v2667_v44 = vadd.f32 1.0, %v3615_v60 }
0x286f   : > { %3616 = vrcp.f32 %v2667_v44 }
0x2879   : > { %v3617_v45 = vpop.eup %3616 }
0x287a   : > { %v2682_v53 = vmul.f32 %v3617_v45, %v2680_v55 }
0x28dd   : > { %v2685_v46 = vpop.permute.xlu1 %2684 }
0x28de   : > { %v2687_v47 = vmul.f32 %v3617_v45, %v2685_v46 }
0x28e0   : > { %2689 = vrot.lane.b32.xlu1 %v2687_v47, %s3665_s7 }
0x28e4   : > { %2702 = vperm.xlu1 %3563, %v2700_v42  }
0x2952   : > { %v2690_v48 = vpop.permute.xlu1 %2689 }
0x2953   : > { %v2692_v50 = vadd.f32 %v2690_v48, %v2682_v53 }
0x2955   : > { %3618 = vtanh.f32 %v2692_v50  ;;  %v2727_v62 = vrot.slane %v2692_v50, %v3769_v25 }
0x2957   : > { %2728 = vrot.lane.b32.xlu1 %v2727_v62, %s3667_s8 }
0x295f   : > { %v3619_v57 = vpop.eup %3618 }
0x2960   : > { %2695 = vrot.lane.b32.xlu0 %v3619_v57, %s3664_s18 }
0x2963   : > { %v2703_v63 = vpop.permute.xlu1 %2702 }
0x2964   : > { %vm2704_vm5 = vcmp.eq.s32.totalorder %v2703_v63, 1 }
0x29c9   : > { %v2729_v36 = vpop.permute.xlu1 %2728 }
0x29ca   : > { %v2731_v0 = vsel %vm2704_vm5, %v2729_v36, %v2589_v27 }
0x29cb   : > { %v2820_v1 = vrot.slane %v2731_v0, %v3769_v25 }
0x29cd   : > { %2821 = vrot.lane.b32.xlu1 %v2820_v1, %s3665_s7 }
0x29d2   : > { %v2696_v40 = vpop.permute.xlu0 %2695 }
0x29d3   : > { %v2698_v2 = vmul.f32 %v3617_v45, %v2696_v40 }
0x29d5   : > { %v2712_v3 = vrot.slane %v2698_v2, %v3769_v25 }
0x29d7   : > { %2713 = vrot.lane.b32.xlu0 %v2712_v3, %s3665_s7 }
0x2a49   : > { %v2714_v38 = vpop.permute.xlu0 %2713 }
0x2a4a   : > { %v2716_v4 = vsel %vm2704_vm5, %v2714_v38, 0.0  ;;  %v2719_v5 = vsel %vm2704_vm5, %v2714_v38, %v2577_v33 }
0x2a4b   : > { %3071 = vst.msk [vmem:[%s3759_s28 + $0x2] sm:$0x3] %vm387_vm0, %v2716_v4  ;;  %3350 = vmatmul.mubr.msk.f32.vlgmr.msra.gmra.mrb[6].mxu1 %vm455_vm1, %v2719_v5 }
0x2b1e   : > { %v2801_v6 = vpop.f32.mrb[6].mxu1 }
0x2b1f   : > { %v2805_v7 = vadd.f32 %v2801_v6, %v3825_v51  ;;  %v3351_v8 = vpop.f32.mrb[7].mxu1  ;;  %v2822_v51 = vpop.permute.xlu1 %2821 }
0x2b21   : > { %3620 = vtanh.f32 %v2805_v7  ;;  %v3073_v10 = vmul.f32 -1.442695, %v2805_v7 }
0x2b23   : > { %3622 = vpow2.f32 %v3073_v10 }
0x2b2b   : > { %v3621_v9 = vpop.eup %3620 }
0x2b2c   : > { %2826 = vrot.lane.b32.xlu0 %v3621_v9, %s3664_s18 }
0x2b2d   : > { %v3623_v12 = vpop.eup %3622 }
0x2b2e   : > { %v2809_v11 = vadd.f32 1.0, %v3623_v12 }
0x2b30   : > { %3624 = vrcp.f32 %v2809_v11 }
0x2b3a   : > { %v3625_v13 = vpop.eup %3624 }
0x2b3b   : > { %v2824_v16 = vmul.f32 %v3625_v13, %v2822_v51 }
0x2b9e   : > { %v2827_v14 = vpop.permute.xlu0 %2826 }
0x2b9f   : > { %v2829_v52 = vmul.f32 %v3625_v13, %v2827_v14 }
0x2ba1   : > { %2831 = vrot.lane.b32.xlu0 %v2829_v52, %s3665_s7 }
0x2ba5   : > { %2844 = vperm.xlu0 %3562, %v2842_v15  }
0x2c13   : > { %v2832_v17 = vpop.permute.xlu0 %2831 }
0x2c14   : > { %v2834_v18 = vadd.f32 %v2832_v17, %v2824_v16 }
0x2c16   : > { %3626 = vtanh.f32 %v2834_v18  ;;  %v2868_v19 = vrot.slane %v2834_v18, %v3769_v25 }
0x2c18   : > { %2869 = vrot.lane.b32.xlu0 %v2868_v19, %s3667_s8 }
0x2c20   : > { %v3627_v26 = vpop.eup %3626 }
0x2c21   : > { %2837 = vrot.lane.b32.xlu1 %v3627_v26, %s3664_s18 }
0x2c24   : > { %v2845_v20 = vpop.permute.xlu0 %2844 }
0x2c25   : > { %vm2846_vm1 = vcmp.eq.s32.totalorder %v2845_v20, 1 }
0x2c8a   : > { %v2870_v35 = vpop.permute.xlu0 %2869 }
0x2c8b   : > { %v2872_v54 = vsel %vm2846_vm1, %v2870_v35, %v2731_v0 }
0x2c8c   : > { %2874 = vst.msk [vmem:[#allocation3] sm:$0x3] %vm387_vm0, %v2872_v54 }
0x2c93   : > { %v2838_v58 = vpop.permute.xlu1 %2837 }
0x2c94   : > { %v2840_v24 = vmul.f32 %v3625_v13, %v2838_v58 }
0x2c96   : > { %v2854_v21 = vrot.slane %v2840_v24, %v3769_v25 }
0x2c98   : > { %2855 = vrot.lane.b32.xlu1 %v2854_v21, %s3665_s7 }
0x2d0a   : > { %v2856_v49 = vpop.permute.xlu1 %2855 }
0x2d0b   : > { %v2858_v22 = vsel %vm2846_vm1, %v2856_v49, 0.0  ;;  %v2860_v41 = vsel %vm2846_vm1, %v2856_v49, %v2719_v5 }
0x2d0c   : > { %2859 = vst.msk [vmem:[%s3759_s28] sm:$0x3] %vm387_vm0, %v2858_v22  ;;  %2873 = vst.msk [vmem:[#allocation2] sm:$0x3] %vm387_vm0, %v2860_v41 }
0x2d0d PF: > { %s15_s20 = sadd.s32 1, %s3650_s20   ;;  %s4226_s18 = smov %s3646_s19 }
0x2d0e   : > { %p12_p7 = scmp.ge.s32.totalorder %s15_s20, 4   ;;  %s4227_s19 = smov %s4229_s21 }
0x2d10   :  { %14 = sbr.rel (!%p12_p7) target bundleno = 2 (0x2), region = 108 }

</bundles_post_ra>
